<compile_context>
chip_gen: v6e
topology: v6e:2x2x1
jax: 0.10.0
libtpu: 0.0.40
codegen_flags: <defaults>
</compile_context>

<pallas_src>
import numpy as np

import jax
import jax.numpy as jnp
from jax.experimental import pallas as pl
from jax.experimental.pallas import tpu as pltpu


EFF_PAD = 128   # efficacy / classifier head padded to a full lane tile
LANE = 128      # packed parameter slab lane width


# ------------------------------------------------------------------ configuration

def make_config():
    return dict(
        B=2, T=4,
        d_l=16, d_a=8, d_v=8,          # feature_dims
        dh_l=8, dh_a=8, dh_v=8,        # hidden_dims == singleton sizes
        mem=16,                        # memsize
        inner=16,                      # inner_node_dim
        h_att2=16, h_g1=16, h_g2=16, h_out=16,
        out_dim=1,                     # regression head
    )


def make_param_specs(cfg):
    d_l, d_a, d_v = cfg["d_l"], cfg["d_a"], cfg["d_v"]
    dh_l, dh_a, dh_v = cfg["dh_l"], cfg["dh_a"], cfg["dh_v"]
    s_l, s_a, s_v = dh_l, dh_a, dh_v              # singleton sizes == hidden dims
    inner, mem = cfg["inner"], cfg["mem"]
    sum_in = s_l + s_a + s_v
    dim_012 = sum_in + 3 * inner                  # input dim of (0,1,2) network
    t_in = sum_in + 4 * inner                     # input dim of t_network
    gamma_in = inner + mem
    final_out = dh_l + dh_a + dh_v + mem

    specs = [
        # LSTM cells (weights transposed: (in, 4*hid)), gate order [i, f, g, o]
        ("wih_l", (d_l, 4 * dh_l)), ("whh_l", (dh_l, 4 * dh_l)),
        ("bih_l", (1, 4 * dh_l)), ("bhh_l", (1, 4 * dh_l)),
        ("wih_a", (d_a, 4 * dh_a)), ("whh_a", (dh_a, 4 * dh_a)),
        ("bih_a", (1, 4 * dh_a)), ("bhh_a", (1, 4 * dh_a)),
        ("wih_v", (d_v, 4 * dh_v)), ("whh_v", (dh_v, 4 * dh_v)),
        ("bih_v", (1, 4 * dh_v)), ("bhh_v", (1, 4 * dh_v)),
        # singleton transforms
        ("w_ltr", (2 * dh_l, s_l)), ("b_ltr", (1, s_l)),
        ("w_atr", (2 * dh_a, s_a)), ("b_atr", (1, s_a)),
        ("w_vtr", (2 * dh_v, s_v)), ("b_vtr", (1, s_v)),
        # efficacy model: Linear(sum_in,100) -> Linear(100,inner) -> Linear(inner,19)
        ("w_eff1", (sum_in, 100)), ("b_eff1", (1, 100)),
        ("w_eff2", (100, inner)), ("b_eff2", (1, inner)),
        ("w_eff3", (inner, 19)), ("b_eff3", (1, 19)),
        # DFG pattern networks: Linear(in,100) -> Linear(100,inner), no activation
        ("w_n01_1", (s_l + s_a, 100)), ("b_n01_1", (1, 100)),
        ("w_n01_2", (100, inner)), ("b_n01_2", (1, inner)),
        ("w_n02_1", (s_l + s_v, 100)), ("b_n02_1", (1, 100)),
        ("w_n02_2", (100, inner)), ("b_n02_2", (1, inner)),
        ("w_n12_1", (s_a + s_v, 100)), ("b_n12_1", (1, 100)),
        ("w_n12_2", (100, inner)), ("b_n12_2", (1, inner)),
        ("w_n012_1", (dim_012, 100)), ("b_n012_1", (1, 100)),
        ("w_n012_2", (100, inner)), ("b_n012_2", (1, inner)),
        # t_network
        ("w_t1", (t_in, 100)), ("b_t1", (1, 100)),
        ("w_t2", (100, inner)), ("b_t2", (1, inner)),
        # att2
        ("w_att1", (inner, cfg["h_att2"])), ("b_att1", (1, cfg["h_att2"])),
        ("w_att2", (cfg["h_att2"], mem)), ("b_att2", (1, mem)),
        # gamma1 / gamma2
        ("w_g11", (gamma_in, cfg["h_g1"])), ("b_g11", (1, cfg["h_g1"])),
        ("w_g12", (cfg["h_g1"], mem)), ("b_g12", (1, mem)),
        ("w_g21", (gamma_in, cfg["h_g2"])), ("b_g21", (1, cfg["h_g2"])),
        ("w_g22", (cfg["h_g2"], mem)), ("b_g22", (1, mem)),
        # output head
        ("w_o1", (final_out, cfg["h_out"])), ("b_o1", (1, cfg["h_out"])),
        ("w_o2", (cfg["h_out"], cfg["out_dim"])), ("b_o2", (1, cfg["out_dim"])),
    ]
    return specs


def init_params(key, specs):
    params = {}
    for name, shape in specs:
        key, sub = jax.random.split(key)
        params[name] = jax.random.normal(sub, shape, jnp.float32) * 0.1
    return params


# ------------------------------------------------------------------ host-side fusion + packing

def build_packed_params(params, cfg):
    """Fuse the per-modality / per-subnetwork weights into block matrices, build the
    constant permutation + merged efficacy-selector matrices, and pack everything into:
      * one bf16 (rows, 128) weight slab, blocks 16-row aligned (bf16 packed tile),
      * one small f32 bias slab, 8 bias rows per 8-row block.
    Returns (w_slab, w_off, b_slab, b_off) where
      w_off[name] = (row0, nrows, ncols), b_off[name] = (row0, ncols)."""
    P = {k: np.asarray(v, np.float32) for k, v in params.items()}
    d_in = [cfg["d_l"], cfg["d_a"], cfg["d_v"]]
    dh = [cfg["dh_l"], cfg["dh_a"], cfg["dh_v"]]
    s = list(dh)                                   # singleton sizes == hidden dims
    sum_dh, sum_s = sum(dh), sum(s)
    inner, mem = cfg["inner"], cfg["mem"]
    h_g1, h_g2 = cfg["h_g1"], cfg["h_g2"]
    out_dim = cfg["out_dim"]
    mods = ["l", "a", "v"]

    def offs(sizes):
        o = [0]
        for v in sizes:
            o.append(o[-1] + int(v))
        return o

    r_off = offs(d_in)      # wih row offsets per modality
    h_off = offs(dh)        # h / whh offsets
    s_off = offs(s)         # lav column offsets

    # ---- fused LSTMs: gate-grouped layout [i_l i_a i_v | f.. | g.. | o..] -------------
    wih_bd = np.zeros((sum(d_in), 4 * sum_dh), np.float32)
    whh_bd = np.zeros((sum_dh, 4 * sum_dh), np.float32)
    b_lstm = np.zeros((1, 4 * sum_dh), np.float32)          # bih + bhh combined
    for m, nm in enumerate(mods):
        wih, whh = P[f"wih_{nm}"], P[f"whh_{nm}"]
        bih, bhh = P[f"bih_{nm}"], P[f"bhh_{nm}"]
        for k in range(4):                                  # PyTorch gate order [i, f, g, o]
            src = slice(k * dh[m], (k + 1) * dh[m])
            dst = slice(k * sum_dh + h_off[m], k * sum_dh + h_off[m] + dh[m])
            wih_bd[r_off[m]:r_off[m + 1], dst] = wih[:, src]
            whh_bd[h_off[m]:h_off[m + 1], dst] = whh[:, src]
            b_lstm[0, dst] = bih[0, src] + bhh[0, src]

    # ---- singleton transforms, split into prev_h / new_h halves (no concat in-kernel) -
    w_tr_prev = np.zeros((sum_dh, sum_s), np.float32)
    w_tr_new = np.zeros((sum_dh, sum_s), np.float32)
    b_tr = np.zeros((1, sum_s), np.float32)
    for m, nm in enumerate(mods):
        w, bb = P[f"w_{nm}tr"], P[f"b_{nm}tr"]
        w_tr_prev[h_off[m]:h_off[m + 1], s_off[m]:s_off[m + 1]] = w[:dh[m], :]
        w_tr_new[h_off[m]:h_off[m + 1], s_off[m]:s_off[m + 1]] = w[dh[m]:, :]
        b_tr[0, s_off[m]:s_off[m + 1]] = bb[0, :]

    # ---- efficacy head: last layer lane-padded so eff is produced lane-dense ----------
    w_eff3 = np.zeros((inner, EFF_PAD), np.float32); w_eff3[:, :19] = P["w_eff3"]
    b_eff3 = np.zeros((1, EFF_PAD), np.float32);     b_eff3[0, :19] = P["b_eff3"][0]

    # ---- permutation lav -> pair-network inputs [l,a | l,v | a,v] ----------------------
    pair_keys = [(0, 1), (0, 2), (1, 2)]
    pair_total = sum(s[i] + s[j] for i, j in pair_keys)      # 48
    p_pair = np.zeros((sum_s, pair_total), np.float32)
    col = 0
    for i, j in pair_keys:
        for m in (i, j):
            p_pair[s_off[m]:s_off[m + 1], col:col + s[m]] = np.eye(s[m], dtype=np.float32)
            col += s[m]

    # ---- merged efficacy selectors (K = 32 rows; eff columns >= 19 are always zero) ----
    SEL_K = 32
    nA = pair_total + sum_s + 3 * inner       # pair gates | 012-lav gates | 012-pair gates
    nB = sum_s + 3 * inner + inner            # t-lav gates | t-pair gates | t-012 gate
    s_A = np.zeros((SEL_K, nA), np.float32)
    s_B = np.zeros((SEL_K, nB), np.float32)
    col, eidx = 0, 0
    for i, j in pair_keys:                    # e0..e5 -> pair-net inputs
        for m in (i, j):
            s_A[eidx, col:col + s[m]] = 1.0
            col += s[m]
            eidx += 1
    for m in range(3):                        # e6..e8 -> lav part of 012-net input
        s_A[6 + m, col:col + s[m]] = 1.0; col += s[m]
    for k in range(3):                        # e9..e11 -> pair part of 012-net input
        s_A[9 + k, col:col + inner] = 1.0; col += inner
    col = 0
    for m in range(3):                        # e12..e14 -> lav part of t-net input
        s_B[12 + m, col:col + s[m]] = 1.0; col += s[m]
    for k in range(3):                        # e15..e17 -> pair part of t-net input
        s_B[15 + k, col:col + inner] = 1.0; col += inner
    s_B[18, col:col + inner] = 1.0            # e18 -> out012 part of t-net input

    # ---- pair networks: original dense sub-blocks; layer-2 placed at its output column
    #      range so the three layer-2 matmuls accumulate straight into pair_out ---------
    pat_h = P["w_n01_1"].shape[1]             # pattern-model hidden size (100)
    pair_w1, pair_b1, pair_w2 = [], [], []
    b_pair2 = np.zeros((1, 3 * inner), np.float32)
    for k, pn in enumerate(["01", "02", "12"]):
        pair_w1.append(P[f"w_n{pn}_1"])                           # (16, 100)
        pair_b1.append(P[f"b_n{pn}_1"])                           # (1, 100)
        w2 = np.zeros((pat_h, 3 * inner), np.float32)
        w2[:, k * inner:(k + 1) * inner] = P[f"w_n{pn}_2"]
        pair_w2.append(w2)
        b_pair2[0, k * inner:(k + 1) * inner] = P[f"b_n{pn}_2"][0]

    # ---- (0,1,2) network / t network split row-wise (lav part / pair part / 012 part) --
    w012_lav = P["w_n012_1"][:sum_s, :]
    w012_pair = P["w_n012_1"][sum_s:, :]
    wt_lav = P["w_t1"][:sum_s, :]
    wt_pair = P["w_t1"][sum_s:sum_s + 3 * inner, :]
    wt_012 = P["w_t1"][sum_s + 3 * inner:, :]

    # ---- merged att2_fc1 + attended-half of gamma fc1; mem-half of gamma fc1 separate --
    w_att_g1 = np.concatenate([P["w_att1"], P["w_g11"][:inner, :], P["w_g21"][:inner, :]],
                              axis=1)                               # (inner, h_att2+h_g1+h_g2)
    b_att_g1 = np.concatenate([P["b_att1"], P["b_g11"], P["b_g21"]], axis=1)
    w_g1_mem = np.concatenate([P["w_g11"][inner:, :], P["w_g21"][inner:, :]], axis=1)
    w_g2 = np.zeros((h_g1 + h_g2, 2 * mem), np.float32)
    w_g2[:h_g1, :mem] = P["w_g12"]
    w_g2[h_g1:, mem:] = P["w_g22"]
    b_g2 = np.concatenate([P["b_g12"], P["b_g22"]], axis=1)

    # ---- output head split [h | mem]; last layer lane-padded to 128 --------------------
    w_o1_h = P["w_o1"][:sum_dh, :]
    w_o1_mem = P["w_o1"][sum_dh:, :]
    w_o2 = np.zeros((P["w_o2"].shape[0], EFF_PAD), np.float32); w_o2[:, :out_dim] = P["w_o2"]
    b_o2 = np.zeros((1, EFF_PAD), np.float32);                  b_o2[0, :out_dim] = P["b_o2"][0]

    weights = [
        ("wih_bd", wih_bd), ("whh_bd", whh_bd),
        ("w_tr_prev", w_tr_prev), ("w_tr_new", w_tr_new),
        ("w_eff1", P["w_eff1"]), ("w_eff2", P["w_eff2"]), ("w_eff3", w_eff3),
        ("p_pair", p_pair), ("s_A", s_A), ("s_B", s_B),
        ("w_p1_0", pair_w1[0]), ("w_p1_1", pair_w1[1]), ("w_p1_2", pair_w1[2]),
        ("w_p2_0", pair_w2[0]), ("w_p2_1", pair_w2[1]), ("w_p2_2", pair_w2[2]),
        ("w012_lav", w012_lav), ("w012_pair", w012_pair), ("w_n012_2", P["w_n012_2"]),
        ("wt_lav", wt_lav), ("wt_pair", wt_pair), ("wt_012", wt_012), ("w_t2", P["w_t2"]),
        ("w_att_g1", w_att_g1), ("w_att2", P["w_att2"]),
        ("w_g1_mem", w_g1_mem), ("w_g2", w_g2),
        ("w_o1_h", w_o1_h), ("w_o1_mem", w_o1_mem), ("w_o2", w_o2),
    ]
    biases = [
        ("b_lstm", b_lstm), ("b_tr", b_tr),
        ("b_eff1", P["b_eff1"]), ("b_eff2", P["b_eff2"]), ("b_eff3", b_eff3),
        ("b_p1_0", pair_b1[0]), ("b_p1_1", pair_b1[1]), ("b_p1_2", pair_b1[2]),
        ("b_pair2", b_pair2),
        ("b_n012_1", P["b_n012_1"]), ("b_n012_2", P["b_n012_2"]),
        ("b_t1", P["b_t1"]), ("b_t2", P["b_t2"]),
        ("b_att_g1", b_att_g1), ("b_att2", P["b_att2"]),
        ("b_g2", b_g2),
        ("b_o1", P["b_o1"]), ("b_o2", b_o2),
    ]

    # weight slab: bf16, 128 lanes, every block starts on a 16-row boundary
    w_off, w_blocks, r = {}, [], 0
    for name, arr in weights:
        a = np.asarray(arr, np.float32)
        nr, nc = a.shape
        assert nc <= LANE, (name, a.shape)
        pr = ((nr + 15) // 16) * 16
        blk = np.zeros((pr, LANE), np.float32)
        blk[:nr, :nc] = a
        w_off[name] = (r, nr, nc)
        w_blocks.append(blk)
        r += pr
    w_slab = jnp.asarray(np.concatenate(w_blocks, axis=0), dtype=jnp.bfloat16)

    # bias slab: f32, 8 bias rows per 8-row block (no per-bias padding blocks)
    b_off, b_blocks, r = {}, [], 0
    for i0 in range(0, len(biases), 8):
        chunk = biases[i0:i0 + 8]
        blk = np.zeros((8, LANE), np.float32)
        for j, (name, bv) in enumerate(chunk):
            bv = np.asarray(bv, np.float32)
            blk[j, :bv.shape[1]] = bv[0]
            b_off[name] = (r + j, bv.shape[1])
        b_blocks.append(blk)
        r += 8
    b_slab = jnp.asarray(np.concatenate(b_blocks, axis=0), dtype=jnp.float32)

    return w_slab, w_off, b_slab, b_off


# ------------------------------------------------------------------ Pallas kernel

def make_kernel(cfg, w_off, b_off, T, B, out_rows):
    s_l, s_a, s_v = cfg["dh_l"], cfg["dh_a"], cfg["dh_v"]
    sum_dh = s_l + s_a + s_v
    sum_s = sum_dh
    mem_dim = cfg["mem"]
    inner = cfg["inner"]
    h_att2 = cfg["h_att2"]
    h_g = cfg["h_g1"] + cfg["h_g2"]
    p_w = [s_l + s_a, s_l + s_v, s_a + s_v]
    p_off = [0, p_w[0], p_w[0] + p_w[1], p_w[0] + p_w[1] + p_w[2]]
    pair_in_w = p_off[3]            # 48
    pair_out_w = 3 * inner          # 48

    def kernel(x_ref, w_ref, b_ref, out_ref):
        def w(name):                        # bf16 weight block (static, zero-cost ref slice)
            r0, nr, nc = w_off[name]
            return w_ref[r0:r0 + nr, 0:nc]

        def b(name):                        # f32 bias row
            r0, nc = b_off[name]
            return b_ref[r0:r0 + 1, 0:nc]

        def mm(x, wname):                   # bf16 MXU matmul, f32 accumulate
            return jnp.dot(x.astype(jnp.bfloat16), w(wname),
                           preferred_element_type=jnp.float32)

        def lin(x, wname, bname):
            return mm(x, wname) + b(bname)

        relu = lambda z: jnp.maximum(z, 0.0)
        sigmoid = lambda z: 0.5 * (jnp.tanh(0.5 * z) + 1.0)   # EUP tanh instead of exp+div

        # LSTM input projections for all T timesteps in one matmul (off the serial chain).
        xproj = lin(x_ref[...], "wih_bd", "b_lstm")           # (T*B, 4*sum_dh)

        h_all = jnp.zeros((B, sum_dh), jnp.float32)           # [h_l | h_a | h_v]
        c_all = jnp.zeros((B, sum_dh), jnp.float32)
        mem = jnp.zeros((B, mem_dim), jnp.float32)
        effs = []

        # Static unroll (T tiny).  Weight slices stay inside the loop body so the
        # compiler can (re)load them near each matmul instead of keeping 4 unrolled
        # iterations of weight tiles live in vregs.
        for t in range(T):
            prev_h = h_all

            # Matmuls that only need last-step state -> issue at step start and
            # overlap the LSTM gate chain.
            tr_prev = mm(prev_h, "w_tr_prev")                 # (B, sum_s)
            g1_mem = mm(mem, "w_g1_mem")                      # (B, h_g1 + h_g2)

            # fused (block-diagonal) LSTM step for all three modalities
            gates = xproj[t * B:(t + 1) * B, :] + mm(h_all, "whh_bd")
            i_g = sigmoid(gates[:, 0 * sum_dh:1 * sum_dh])
            f_g = sigmoid(gates[:, 1 * sum_dh:2 * sum_dh])
            g_g = jnp.tanh(gates[:, 2 * sum_dh:3 * sum_dh])
            o_g = sigmoid(gates[:, 3 * sum_dh:4 * sum_dh])
            c_all = f_g * c_all + i_g * g_g
            h_all = o_g * jnp.tanh(c_all)

            # fused singleton transforms, split-weight instead of concat([prev_h, h])
            lav = relu(tr_prev + mm(h_all, "w_tr_new") + b("b_tr"))       # (B, sum_s)

            # efficacies (lane-padded to 128; columns >= 19 are exactly zero)
            eff = lin(lin(lin(lav, "w_eff1", "b_eff1"), "w_eff2", "b_eff2"),
                      "w_eff3", "b_eff3")                                 # (B, 128)
            effs.append(eff)

            # merged efficacy-selector matmuls: all 19 per-column broadcasts at once
            eff_k = eff[:, 0:32]
            gA = mm(eff_k, "s_A")     # [pair(48) | 012-lav(24) | 012-pair(48)]
            gB = mm(eff_k, "s_B")     # [t-lav(24) | t-pair(48)  | t-012(16)]

            # pair networks (0,1)/(0,2)/(1,2): permutation matmul + gating, then three
            # 2-layer nets; layer-2 matmuls accumulate straight into pair_out (B, 48).
            pair_in = mm(lav, "p_pair") * gA[:, 0:pair_in_w]
            hid0 = mm(pair_in[:, p_off[0]:p_off[1]], "w_p1_0") + b("b_p1_0")
            hid1 = mm(pair_in[:, p_off[1]:p_off[2]], "w_p1_1") + b("b_p1_1")
            hid2 = mm(pair_in[:, p_off[2]:p_off[3]], "w_p1_2") + b("b_p1_2")
            pair_out = (mm(hid0, "w_p2_0") + mm(hid1, "w_p2_1")
                        + mm(hid2, "w_p2_2") + b("b_pair2"))              # (B, 48)

            # (0,1,2) network: split weights so the lav part issues before pair_out
            o0 = pair_in_w
            hid012 = (mm(lav * gA[:, o0:o0 + sum_s], "w012_lav")
                      + mm(pair_out * gA[:, o0 + sum_s:o0 + sum_s + pair_out_w],
                           "w012_pair")
                      + b("b_n012_1"))
            out012 = lin(hid012, "w_n012_2", "b_n012_2")                  # (B, inner)

            # t network (attended), split the same way
            hid_t = (mm(lav * gB[:, 0:sum_s], "wt_lav")
                     + mm(pair_out * gB[:, sum_s:sum_s + pair_out_w], "wt_pair")
                     + mm(out012 * gB[:, sum_s + pair_out_w:
                                       sum_s + pair_out_w + inner], "wt_012")
                     + b("b_t1"))
            attended = lin(hid_t, "w_t2", "b_t2")                         # (B, inner)

            # MFN memory update; att2_fc1 and the attended half of gamma fc1 share
            # their input so they are one merged matmul.
            z = lin(attended, "w_att_g1", "b_att_g1")                     # (B, h_att2 + h_g)
            c_hat = jnp.tanh(lin(relu(z[:, 0:h_att2]), "w_att2", "b_att2"))
            g_hid = relu(z[:, h_att2:h_att2 + h_g] + g1_mem)
            g_pre = lin(g_hid, "w_g2", "b_g2")                            # (B, 2*mem)
            g1 = sigmoid(g_pre[:, 0:mem_dim])
            g2 = sigmoid(g_pre[:, mem_dim:2 * mem_dim])
            mem = g1 * mem + g2 * c_hat

        # classifier head (split-weight instead of concat([h_all, mem]))
        out_h = relu(mm(h_all, "w_o1_h") + mm(mem, "w_o1_mem") + b("b_o1"))
        m_out = lin(out_h, "w_o2", "b_o2")                                # (B, 128)

        # single lane-dense full-tile store: rows [0, T*B) = per-step efficacies,
        # rows [T*B, T*B+B) = classifier output, rest = zero padding.
        blocks = effs + [m_out]
        pad = out_rows - T * B - B
        if pad > 0:
            blocks.append(jnp.zeros((pad, EFF_PAD), jnp.float32))
        out_ref[...] = jnp.concatenate(blocks, axis=0)

    return kernel


def graph_mfn_pallas(params, text_x, audio_x, video_x, cfg):
    """text_x/audio_x/video_x: (B, T, D) like the PyTorch module signature."""
    B, T, _ = text_x.shape
    # sequence-major, modality-concatenated, flattened input: row t*B + b
    x_cat = jnp.concatenate(
        [jnp.transpose(text_x, (1, 0, 2)),
         jnp.transpose(audio_x, (1, 0, 2)),
         jnp.transpose(video_x, (1, 0, 2))], axis=-1).astype(jnp.float32)
    x_cat = x_cat.reshape(T * B, -1)

    w_slab, w_off, b_slab, b_off = build_packed_params(params, cfg)
    out_rows = ((T * B + B + 7) // 8) * 8
    kernel = make_kernel(cfg, w_off, b_off, T, B, out_rows)

    out = pl.pallas_call(
        kernel,
        out_shape=jax.ShapeDtypeStruct((out_rows, EFF_PAD), jnp.float32),
        compiler_params=pltpu.CompilerParams(vmem_limit_bytes=32 * 1024 * 1024),
    )(x_cat, w_slab, b_slab)

    eff = out[:T * B].reshape(T, B, EFF_PAD)[:, :, :19]
    m = out[T * B:T * B + B, :cfg["out_dim"]]
    return {"M": m, "Efficacies": eff}


# ------------------------------------------------------------------ pure-JAX reference
# (uses the ORIGINAL unfused parameters -> also validates the host-side fusion/packing)

def _sigmoid(x):
    return 1.0 / (1.0 + jnp.exp(-x))


def _linear(x, w, b):
    return jnp.dot(x, w) + b


def _lstm_cell(x, h, c, wih, whh, bih, bhh, hid):
    gates = jnp.dot(x, wih) + bih + jnp.dot(h, whh) + bhh
    i_g = _sigmoid(gates[:, 0:hid])
    f_g = _sigmoid(gates[:, hid:2 * hid])
    g_g = jnp.tanh(gates[:, 2 * hid:3 * hid])
    o_g = _sigmoid(gates[:, 3 * hid:4 * hid])
    c_new = f_g * c + i_g * g_g
    h_new = o_g * jnp.tanh(c_new)
    return h_new, c_new


def _dfg_and_mfn_step(p, prev_h_l, new_h_l, prev_h_a, new_h_a,
                      prev_h_v, new_h_v, mem_old):
    relu = lambda z: jnp.maximum(z, 0.0)

    l_s = relu(_linear(jnp.concatenate([prev_h_l, new_h_l], axis=1), p["w_ltr"], p["b_ltr"]))
    a_s = relu(_linear(jnp.concatenate([prev_h_a, new_h_a], axis=1), p["w_atr"], p["b_atr"]))
    v_s = relu(_linear(jnp.concatenate([prev_h_v, new_h_v], axis=1), p["w_vtr"], p["b_vtr"]))

    eff = _linear(_linear(_linear(jnp.concatenate([l_s, a_s, v_s], axis=1),
                                  p["w_eff1"], p["b_eff1"]),
                          p["w_eff2"], p["b_eff2"]),
                  p["w_eff3"], p["b_eff3"])                      # (B, 19)

    e = lambda i: eff[:, i:i + 1]

    out01 = _linear(_linear(jnp.concatenate([l_s * e(0), a_s * e(1)], axis=1),
                            p["w_n01_1"], p["b_n01_1"]), p["w_n01_2"], p["b_n01_2"])
    out02 = _linear(_linear(jnp.concatenate([l_s * e(2), v_s * e(3)], axis=1),
                            p["w_n02_1"], p["b_n02_1"]), p["w_n02_2"], p["b_n02_2"])
    out12 = _linear(_linear(jnp.concatenate([a_s * e(4), v_s * e(5)], axis=1),
                            p["w_n12_1"], p["b_n12_1"]), p["w_n12_2"], p["b_n12_2"])
    in012 = jnp.concatenate([l_s * e(6), a_s * e(7), v_s * e(8),
                             out01 * e(9), out02 * e(10), out12 * e(11)], axis=1)
    out012 = _linear(_linear(in012, p["w_n012_1"], p["b_n012_1"]),
                     p["w_n012_2"], p["b_n012_2"])
    t_in = jnp.concatenate([l_s * e(12), a_s * e(13), v_s * e(14),
                            out01 * e(15), out02 * e(16), out12 * e(17),
                            out012 * e(18)], axis=1)
    attended = _linear(_linear(t_in, p["w_t1"], p["b_t1"]), p["w_t2"], p["b_t2"])

    c_hat = jnp.tanh(_linear(relu(_linear(attended, p["w_att1"], p["b_att1"])),
                             p["w_att2"], p["b_att2"]))
    both = jnp.concatenate([attended, mem_old], axis=1)
    g1 = _sigmoid(_linear(relu(_linear(both, p["w_g11"], p["b_g11"])), p["w_g12"], p["b_g12"]))
    g2 = _sigmoid(_linear(relu(_linear(both, p["w_g21"], p["b_g21"])), p["w_g22"], p["b_g22"]))
    mem_new = g1 * mem_old + g2 * c_hat
    return eff, mem_new


def graph_mfn_reference(params, text_x, audio_x, video_x, cfg):
    text = jnp.transpose(text_x, (1, 0, 2)).astype(jnp.float32)
    audio = jnp.transpose(audio_x, (1, 0, 2)).astype(jnp.float32)
    video = jnp.transpose(video_x, (1, 0, 2)).astype(jnp.float32)
    T, B, _ = text.shape
    p = params
    dh_l, dh_a, dh_v, mem_dim = cfg["dh_l"], cfg["dh_a"], cfg["dh_v"], cfg["mem"]

    h_l = jnp.zeros((B, dh_l)); c_l = jnp.zeros((B, dh_l))
    h_a = jnp.zeros((B, dh_a)); c_a = jnp.zeros((B, dh_a))
    h_v = jnp.zeros((B, dh_v)); c_v = jnp.zeros((B, dh_v))
    mem = jnp.zeros((B, mem_dim))
    effs = []
    for t in range(T):
        prev_h_l, prev_h_a, prev_h_v = h_l, h_a, h_v
        new_h_l, new_c_l = _lstm_cell(text[t], h_l, c_l, p["wih_l"], p["whh_l"],
                                      p["bih_l"], p["bhh_l"], dh_l)
        new_h_a, new_c_a = _lstm_cell(audio[t], h_a, c_a, p["wih_a"], p["whh_a"],
                                      p["bih_a"], p["bhh_a"], dh_a)
        new_h_v, new_c_v = _lstm_cell(video[t], h_v, c_v, p["wih_v"], p["whh_v"],
                                      p["bih_v"], p["bhh_v"], dh_v)
        eff, mem = _dfg_and_mfn_step(p, prev_h_l, new_h_l, prev_h_a, new_h_a,
                                     prev_h_v, new_h_v, mem)
        effs.append(eff)
        h_l, c_l = new_h_l, new_c_l
        h_a, c_a = new_h_a, new_c_a
        h_v, c_v = new_h_v, new_c_v

    last_hs = jnp.concatenate([h_l, h_a, h_v, mem], axis=1)
    relu = lambda z: jnp.maximum(z, 0.0)
    out = _linear(relu(_linear(last_hs, p["w_o1"], p["b_o1"])), p["w_o2"], p["b_o2"])
    return {"M": out, "Efficacies": jnp.stack(effs, axis=0)}


# ------------------------------------------------------------------ main

if __name__ == "__main__":
    cfg = make_config()
    specs = make_param_specs(cfg)

    key = jax.random.PRNGKey(0)
    key, kp, kt, ka, kv = jax.random.split(key, 5)
    params = init_params(kp, specs)

    B, T = cfg["B"], cfg["T"]
    text_x = jax.random.normal(kt, (B, T, cfg["d_l"]), jnp.float32)
    audio_x = jax.random.normal(ka, (B, T, cfg["d_a"]), jnp.float32)
    video_x = jax.random.normal(kv, (B, T, cfg["d_v"]), jnp.float32)

    res = graph_mfn_pallas(params, text_x, audio_x, video_x, cfg)
    jax.block_until_ready(res["M"])
    jax.block_until_ready(res["Efficacies"])

    ref = graph_mfn_reference(params, text_x, audio_x, video_x, cfg)
    np.testing.assert_allclose(np.asarray(res["M"]), np.asarray(ref["M"]),
                               rtol=5e-2, atol=5e-2)
    np.testing.assert_allclose(np.asarray(res["Efficacies"]),
                               np.asarray(ref["Efficacies"]),
                               rtol=5e-2, atol=5e-2)

    # TODO(synk): dropout layers are identity (eval mode); the PyTorch per-step
    # .cpu().detach().numpy() of efficacies is replaced by returning a (T, B, 19) array.
    print("KERNEL_OK")
</pallas_src>

<mosaic_0001>
module attributes {stable_mosaic.version = 11 : i64} {
  func.func @kernel(%arg0: memref<8x32xf32, #tpu.memory_space<vmem>>, %arg1: memref<1312x128xbf16, #tpu.memory_space<vmem>>, %arg2: memref<24x128xf32, #tpu.memory_space<vmem>>, %arg3: memref<16x128xf32, #tpu.memory_space<vmem>>) attributes {dimension_semantics = [], scalar_prefetch = 0 : i64, scratch_operands = 0 : i64, tpu.core_type = #tpu.core_type<tc>} {
    %c0 = arith.constant 0 : index
    %c0_0 = arith.constant 0 : index
    %0 = vector.load %arg0[%c0, %c0_0] : memref<8x32xf32, #tpu.memory_space<vmem>>, vector<8x32xf32>
    %1 = arith.truncf %0 : vector<8x32xf32> to vector<8x32xbf16>
    %c0_1 = arith.constant 0 : index
    %c0_2 = arith.constant 0 : index
    %2 = vector.load %arg1[%c0_1, %c0_2] : memref<1312x128xbf16, #tpu.memory_space<vmem>>, vector<32x96xbf16>
    %cst = arith.constant dense<0.000000e+00> : vector<8x96xf32>
    %3 = tpu.matmul %1, %2, %cst {dimension_numbers = #tpu.dot_dimension_numbers<[1], [0], [0], [1], [0, 0, 1, 1], [], []>} : vector<8x32xbf16>, vector<32x96xbf16>, vector<8x96xf32> -> vector<8x96xf32>
    %c0_3 = arith.constant 0 : index
    %c0_4 = arith.constant 0 : index
    %4 = vector.load %arg2[%c0_3, %c0_4] : memref<24x128xf32, #tpu.memory_space<vmem>>, vector<1x96xf32>
    %5 = vector.broadcast %4 : vector<1x96xf32> to vector<8x96xf32>
    %6 = arith.addf %3, %5 : vector<8x96xf32>
    %cst_5 = arith.constant 0.000000e+00 : f32
    %7 = vector.broadcast %cst_5 : f32 to vector<2x24xf32>
    %cst_6 = arith.constant 0.000000e+00 : f32
    %8 = vector.broadcast %cst_6 : f32 to vector<2x24xf32>
    %cst_7 = arith.constant 0.000000e+00 : f32
    %9 = vector.broadcast %cst_7 : f32 to vector<2x16xf32>
    %10 = arith.truncf %7 : vector<2x24xf32> to vector<2x24xbf16>
    %c64 = arith.constant 64 : index
    %c0_8 = arith.constant 0 : index
    %11 = vector.load %arg1[%c64, %c0_8] : memref<1312x128xbf16, #tpu.memory_space<vmem>>, vector<24x24xbf16>
    %cst_9 = arith.constant dense<0.000000e+00> : vector<2x24xf32>
    %12 = tpu.matmul %10, %11, %cst_9 {dimension_numbers = #tpu.dot_dimension_numbers<[1], [0], [0], [1], [0, 0, 1, 1], [], []>} : vector<2x24xbf16>, vector<24x24xbf16>, vector<2x24xf32> -> vector<2x24xf32>
    %13 = arith.truncf %9 : vector<2x16xf32> to vector<2x16xbf16>
    %c1200 = arith.constant 1200 : index
    %c0_10 = arith.constant 0 : index
    %14 = vector.load %arg1[%c1200, %c0_10] : memref<1312x128xbf16, #tpu.memory_space<vmem>>, vector<16x32xbf16>
    %cst_11 = arith.constant dense<0.000000e+00> : vector<2x32xf32>
    %15 = tpu.matmul %13, %14, %cst_11 {dimension_numbers = #tpu.dot_dimension_numbers<[1], [0], [0], [1], [0, 0, 1, 1], [], []>} : vector<2x16xbf16>, vector<16x32xbf16>, vector<2x32xf32> -> vector<2x32xf32>
    %16 = vector.extract_strided_slice %6 {offsets = [0, 0], sizes = [2, 96], strides = [1, 1]} : vector<8x96xf32> to vector<2x96xf32>
    %17 = arith.truncf %7 : vector<2x24xf32> to vector<2x24xbf16>
    %c32 = arith.constant 32 : index
    %c0_12 = arith.constant 0 : index
    %18 = vector.load %arg1[%c32, %c0_12] : memref<1312x128xbf16, #tpu.memory_space<vmem>>, vector<24x96xbf16>
    %cst_13 = arith.constant dense<0.000000e+00> : vector<2x96xf32>
    %19 = tpu.matmul %17, %18, %cst_13 {dimension_numbers = #tpu.dot_dimension_numbers<[1], [0], [0], [1], [0, 0, 1, 1], [], []>} : vector<2x24xbf16>, vector<24x96xbf16>, vector<2x96xf32> -> vector<2x96xf32>
    %20 = arith.addf %16, %19 : vector<2x96xf32>
    %21 = vector.extract_strided_slice %20 {offsets = [0, 0], sizes = [2, 24], strides = [1, 1]} : vector<2x96xf32> to vector<2x24xf32>
    %cst_14 = arith.constant 5.000000e-01 : f32
    %22 = vector.broadcast %cst_14 : f32 to vector<2x24xf32>
    %23 = arith.mulf %22, %21 : vector<2x24xf32>
    %24 = math.tanh %23 : vector<2x24xf32>
    %cst_15 = arith.constant 1.000000e+00 : f32
    %25 = vector.broadcast %cst_15 : f32 to vector<2x24xf32>
    %26 = arith.addf %24, %25 : vector<2x24xf32>
    %cst_16 = arith.constant 5.000000e-01 : f32
    %27 = vector.broadcast %cst_16 : f32 to vector<2x24xf32>
    %28 = arith.mulf %27, %26 : vector<2x24xf32>
    %29 = vector.extract_strided_slice %20 {offsets = [0, 24], sizes = [2, 24], strides = [1, 1]} : vector<2x96xf32> to vector<2x24xf32>
    %cst_17 = arith.constant 5.000000e-01 : f32
    %30 = vector.broadcast %cst_17 : f32 to vector<2x24xf32>
    %31 = arith.mulf %30, %29 : vector<2x24xf32>
    %32 = math.tanh %31 : vector<2x24xf32>
    %cst_18 = arith.constant 1.000000e+00 : f32
    %33 = vector.broadcast %cst_18 : f32 to vector<2x24xf32>
    %34 = arith.addf %32, %33 : vector<2x24xf32>
    %cst_19 = arith.constant 5.000000e-01 : f32
    %35 = vector.broadcast %cst_19 : f32 to vector<2x24xf32>
    %36 = arith.mulf %35, %34 : vector<2x24xf32>
    %37 = vector.extract_strided_slice %20 {offsets = [0, 48], sizes = [2, 24], strides = [1, 1]} : vector<2x96xf32> to vector<2x24xf32>
    %38 = math.tanh %37 : vector<2x24xf32>
    %39 = vector.extract_strided_slice %20 {offsets = [0, 72], sizes = [2, 24], strides = [1, 1]} : vector<2x96xf32> to vector<2x24xf32>
    %cst_20 = arith.constant 5.000000e-01 : f32
    %40 = vector.broadcast %cst_20 : f32 to vector<2x24xf32>
    %41 = arith.mulf %40, %39 : vector<2x24xf32>
    %42 = math.tanh %41 : vector<2x24xf32>
    %cst_21 = arith.constant 1.000000e+00 : f32
    %43 = vector.broadcast %cst_21 : f32 to vector<2x24xf32>
    %44 = arith.addf %42, %43 : vector<2x24xf32>
    %cst_22 = arith.constant 5.000000e-01 : f32
    %45 = vector.broadcast %cst_22 : f32 to vector<2x24xf32>
    %46 = arith.mulf %45, %44 : vector<2x24xf32>
    %47 = arith.mulf %36, %8 : vector<2x24xf32>
    %48 = arith.mulf %28, %38 : vector<2x24xf32>
    %49 = arith.addf %47, %48 : vector<2x24xf32>
    %50 = math.tanh %49 : vector<2x24xf32>
    %51 = arith.mulf %46, %50 : vector<2x24xf32>
    %52 = arith.truncf %51 : vector<2x24xf32> to vector<2x24xbf16>
    %c96 = arith.constant 96 : index
    %c0_23 = arith.constant 0 : index
    %53 = vector.load %arg1[%c96, %c0_23] : memref<1312x128xbf16, #tpu.memory_space<vmem>>, vector<24x24xbf16>
    %cst_24 = arith.constant dense<0.000000e+00> : vector<2x24xf32>
    %54 = tpu.matmul %52, %53, %cst_24 {dimension_numbers = #tpu.dot_dimension_numbers<[1], [0], [0], [1], [0, 0, 1, 1], [], []>} : vector<2x24xbf16>, vector<24x24xbf16>, vector<2x24xf32> -> vector<2x24xf32>
    %55 = arith.addf %12, %54 : vector<2x24xf32>
    %c1 = arith.constant 1 : index
    %c0_25 = arith.constant 0 : index
    %56 = vector.load %arg2[%c1, %c0_25] : memref<24x128xf32, #tpu.memory_space<vmem>>, vector<1x24xf32>
    %57 = vector.broadcast %56 : vector<1x24xf32> to vector<2x24xf32>
    %58 = arith.addf %55, %57 : vector<2x24xf32>
    %cst_26 = arith.constant 0.000000e+00 : f32
    %59 = vector.broadcast %cst_26 : f32 to vector<2x24xf32>
    %60 = arith.maximumf %58, %59 : vector<2x24xf32>
    %61 = arith.truncf %60 : vector<2x24xf32> to vector<2x24xbf16>
    %c128 = arith.constant 128 : index
    %c0_27 = arith.constant 0 : index
    %62 = vector.load %arg1[%c128, %c0_27] : memref<1312x128xbf16, #tpu.memory_space<vmem>>, vector<24x100xbf16>
    %cst_28 = arith.constant dense<0.000000e+00> : vector<2x100xf32>
    %63 = tpu.matmul %61, %62, %cst_28 {dimension_numbers = #tpu.dot_dimension_numbers<[1], [0], [0], [1], [0, 0, 1, 1], [], []>} : vector<2x24xbf16>, vector<24x100xbf16>, vector<2x100xf32> -> vector<2x100xf32>
    %c2 = arith.constant 2 : index
    %c0_29 = arith.constant 0 : index
    %64 = vector.load %arg2[%c2, %c0_29] : memref<24x128xf32, #tpu.memory_space<vmem>>, vector<1x100xf32>
    %65 = vector.broadcast %64 : vector<1x100xf32> to vector<2x100xf32>
    %66 = arith.addf %63, %65 : vector<2x100xf32>
    %67 = arith.truncf %66 : vector<2x100xf32> to vector<2x100xbf16>
    %c160 = arith.constant 160 : index
    %c0_30 = arith.constant 0 : index
    %68 = vector.load %arg1[%c160, %c0_30] : memref<1312x128xbf16, #tpu.memory_space<vmem>>, vector<100x16xbf16>
    %cst_31 = arith.constant dense<0.000000e+00> : vector<2x16xf32>
    %69 = tpu.matmul %67, %68, %cst_31 {dimension_numbers = #tpu.dot_dimension_numbers<[1], [0], [0], [1], [0, 0, 1, 1], [], []>} : vector<2x100xbf16>, vector<100x16xbf16>, vector<2x16xf32> -> vector<2x16xf32>
    %c3 = arith.constant 3 : index
    %c0_32 = arith.constant 0 : index
    %70 = vector.load %arg2[%c3, %c0_32] : memref<24x128xf32, #tpu.memory_space<vmem>>, vector<1x16xf32>
    %71 = vector.broadcast %70 : vector<1x16xf32> to vector<2x16xf32>
    %72 = arith.addf %69, %71 : vector<2x16xf32>
    %73 = arith.truncf %72 : vector<2x16xf32> to vector<2x16xbf16>
    %c272 = arith.constant 272 : index
    %c0_33 = arith.constant 0 : index
    %74 = vector.load %arg1[%c272, %c0_33] : memref<1312x128xbf16, #tpu.memory_space<vmem>>, vector<16x128xbf16>
    %cst_34 = arith.constant dense<0.000000e+00> : vector<2x128xf32>
    %75 = tpu.matmul %73, %74, %cst_34 {dimension_numbers = #tpu.dot_dimension_numbers<[1], [0], [0], [1], [0, 0, 1, 1], [], []>} : vector<2x16xbf16>, vector<16x128xbf16>, vector<2x128xf32> -> vector<2x128xf32>
    %c4 = arith.constant 4 : index
    %c0_35 = arith.constant 0 : index
    %76 = vector.load %arg2[%c4, %c0_35] : memref<24x128xf32, #tpu.memory_space<vmem>>, vector<1x128xf32>
    %77 = vector.broadcast %76 : vector<1x128xf32> to vector<2x128xf32>
    %78 = arith.addf %75, %77 : vector<2x128xf32>
    %79 = vector.extract_strided_slice %78 {offsets = [0, 0], sizes = [2, 32], strides = [1, 1]} : vector<2x128xf32> to vector<2x32xf32>
    %80 = arith.truncf %79 : vector<2x32xf32> to vector<2x32xbf16>
    %c320 = arith.constant 320 : index
    %c0_36 = arith.constant 0 : index
    %81 = vector.load %arg1[%c320, %c0_36] : memref<1312x128xbf16, #tpu.memory_space<vmem>>, vector<32x120xbf16>
    %cst_37 = arith.constant dense<0.000000e+00> : vector<2x120xf32>
    %82 = tpu.matmul %80, %81, %cst_37 {dimension_numbers = #tpu.dot_dimension_numbers<[1], [0], [0], [1], [0, 0, 1, 1], [], []>} : vector<2x32xbf16>, vector<32x120xbf16>, vector<2x120xf32> -> vector<2x120xf32>
    %83 = arith.truncf %79 : vector<2x32xf32> to vector<2x32xbf16>
    %c352 = arith.constant 352 : index
    %c0_38 = arith.constant 0 : index
    %84 = vector.load %arg1[%c352, %c0_38] : memref<1312x128xbf16, #tpu.memory_space<vmem>>, vector<32x88xbf16>
    %cst_39 = arith.constant dense<0.000000e+00> : vector<2x88xf32>
    %85 = tpu.matmul %83, %84, %cst_39 {dimension_numbers = #tpu.dot_dimension_numbers<[1], [0], [0], [1], [0, 0, 1, 1], [], []>} : vector<2x32xbf16>, vector<32x88xbf16>, vector<2x88xf32> -> vector<2x88xf32>
    %86 = arith.truncf %60 : vector<2x24xf32> to vector<2x24xbf16>
    %c288 = arith.constant 288 : index
    %c0_40 = arith.constant 0 : index
    %87 = vector.load %arg1[%c288, %c0_40] : memref<1312x128xbf16, #tpu.memory_space<vmem>>, vector<24x48xbf16>
    %cst_41 = arith.constant dense<0.000000e+00> : vector<2x48xf32>
    %88 = tpu.matmul %86, %87, %cst_41 {dimension_numbers = #tpu.dot_dimension_numbers<[1], [0], [0], [1], [0, 0, 1, 1], [], []>} : vector<2x24xbf16>, vector<24x48xbf16>, vector<2x48xf32> -> vector<2x48xf32>
    %89 = vector.extract_strided_slice %82 {offsets = [0, 0], sizes = [2, 48], strides = [1, 1]} : vector<2x120xf32> to vector<2x48xf32>
    %90 = arith.mulf %88, %89 : vector<2x48xf32>
    %91 = vector.extract_strided_slice %90 {offsets = [0, 0], sizes = [2, 16], strides = [1, 1]} : vector<2x48xf32> to vector<2x16xf32>
    %92 = arith.truncf %91 : vector<2x16xf32> to vector<2x16xbf16>
    %c384 = arith.constant 384 : index
    %c0_42 = arith.constant 0 : index
    %93 = vector.load %arg1[%c384, %c0_42] : memref<1312x128xbf16, #tpu.memory_space<vmem>>, vector<16x100xbf16>
    %cst_43 = arith.constant dense<0.000000e+00> : vector<2x100xf32>
    %94 = tpu.matmul %92, %93, %cst_43 {dimension_numbers = #tpu.dot_dimension_numbers<[1], [0], [0], [1], [0, 0, 1, 1], [], []>} : vector<2x16xbf16>, vector<16x100xbf16>, vector<2x100xf32> -> vector<2x100xf32>
    %c5 = arith.constant 5 : index
    %c0_44 = arith.constant 0 : index
    %95 = vector.load %arg2[%c5, %c0_44] : memref<24x128xf32, #tpu.memory_space<vmem>>, vector<1x100xf32>
    %96 = vector.broadcast %95 : vector<1x100xf32> to vector<2x100xf32>
    %97 = arith.addf %94, %96 : vector<2x100xf32>
    %98 = vector.extract_strided_slice %90 {offsets = [0, 16], sizes = [2, 16], strides = [1, 1]} : vector<2x48xf32> to vector<2x16xf32>
    %99 = arith.truncf %98 : vector<2x16xf32> to vector<2x16xbf16>
    %c400 = arith.constant 400 : index
    %c0_45 = arith.constant 0 : index
    %100 = vector.load %arg1[%c400, %c0_45] : memref<1312x128xbf16, #tpu.memory_space<vmem>>, vector<16x100xbf16>
    %cst_46 = arith.constant dense<0.000000e+00> : vector<2x100xf32>
    %101 = tpu.matmul %99, %100, %cst_46 {dimension_numbers = #tpu.dot_dimension_numbers<[1], [0], [0], [1], [0, 0, 1, 1], [], []>} : vector<2x16xbf16>, vector<16x100xbf16>, vector<2x100xf32> -> vector<2x100xf32>
    %c6 = arith.constant 6 : index
    %c0_47 = arith.constant 0 : index
    %102 = vector.load %arg2[%c6, %c0_47] : memref<24x128xf32, #tpu.memory_space<vmem>>, vector<1x100xf32>
    %103 = vector.broadcast %102 : vector<1x100xf32> to vector<2x100xf32>
    %104 = arith.addf %101, %103 : vector<2x100xf32>
    %105 = vector.extract_strided_slice %90 {offsets = [0, 32], sizes = [2, 16], strides = [1, 1]} : vector<2x48xf32> to vector<2x16xf32>
    %106 = arith.truncf %105 : vector<2x16xf32> to vector<2x16xbf16>
    %c416 = arith.constant 416 : index
    %c0_48 = arith.constant 0 : index
    %107 = vector.load %arg1[%c416, %c0_48] : memref<1312x128xbf16, #tpu.memory_space<vmem>>, vector<16x100xbf16>
    %cst_49 = arith.constant dense<0.000000e+00> : vector<2x100xf32>
    %108 = tpu.matmul %106, %107, %cst_49 {dimension_numbers = #tpu.dot_dimension_numbers<[1], [0], [0], [1], [0, 0, 1, 1], [], []>} : vector<2x16xbf16>, vector<16x100xbf16>, vector<2x100xf32> -> vector<2x100xf32>
    %c7 = arith.constant 7 : index
    %c0_50 = arith.constant 0 : index
    %109 = vector.load %arg2[%c7, %c0_50] : memref<24x128xf32, #tpu.memory_space<vmem>>, vector<1x100xf32>
    %110 = vector.broadcast %109 : vector<1x100xf32> to vector<2x100xf32>
    %111 = arith.addf %108, %110 : vector<2x100xf32>
    %112 = arith.truncf %97 : vector<2x100xf32> to vector<2x100xbf16>
    %c432 = arith.constant 432 : index
    %c0_51 = arith.constant 0 : index
    %113 = vector.load %arg1[%c432, %c0_51] : memref<1312x128xbf16, #tpu.memory_space<vmem>>, vector<100x48xbf16>
    %cst_52 = arith.constant dense<0.000000e+00> : vector<2x48xf32>
    %114 = tpu.matmul %112, %113, %cst_52 {dimension_numbers = #tpu.dot_dimension_numbers<[1], [0], [0], [1], [0, 0, 1, 1], [], []>} : vector<2x100xbf16>, vector<100x48xbf16>, vector<2x48xf32> -> vector<2x48xf32>
    %115 = arith.truncf %104 : vector<2x100xf32> to vector<2x100xbf16>
    %c544 = arith.constant 544 : index
    %c0_53 = arith.constant 0 : index
    %116 = vector.load %arg1[%c544, %c0_53] : memref<1312x128xbf16, #tpu.memory_space<vmem>>, vector<100x48xbf16>
    %cst_54 = arith.constant dense<0.000000e+00> : vector<2x48xf32>
    %117 = tpu.matmul %115, %116, %cst_54 {dimension_numbers = #tpu.dot_dimension_numbers<[1], [0], [0], [1], [0, 0, 1, 1], [], []>} : vector<2x100xbf16>, vector<100x48xbf16>, vector<2x48xf32> -> vector<2x48xf32>
    %118 = arith.addf %114, %117 : vector<2x48xf32>
    %119 = arith.truncf %111 : vector<2x100xf32> to vector<2x100xbf16>
    %c656 = arith.constant 656 : index
    %c0_55 = arith.constant 0 : index
    %120 = vector.load %arg1[%c656, %c0_55] : memref<1312x128xbf16, #tpu.memory_space<vmem>>, vector<100x48xbf16>
    %cst_56 = arith.constant dense<0.000000e+00> : vector<2x48xf32>
    %121 = tpu.matmul %119, %120, %cst_56 {dimension_numbers = #tpu.dot_dimension_numbers<[1], [0], [0], [1], [0, 0, 1, 1], [], []>} : vector<2x100xbf16>, vector<100x48xbf16>, vector<2x48xf32> -> vector<2x48xf32>
    %122 = arith.addf %118, %121 : vector<2x48xf32>
    %c8 = arith.constant 8 : index
    %c0_57 = arith.constant 0 : index
    %123 = vector.load %arg2[%c8, %c0_57] : memref<24x128xf32, #tpu.memory_space<vmem>>, vector<1x48xf32>
    %124 = vector.broadcast %123 : vector<1x48xf32> to vector<2x48xf32>
    %125 = arith.addf %122, %124 : vector<2x48xf32>
    %126 = vector.extract_strided_slice %82 {offsets = [0, 48], sizes = [2, 24], strides = [1, 1]} : vector<2x120xf32> to vector<2x24xf32>
    %127 = arith.mulf %60, %126 : vector<2x24xf32>
    %128 = arith.truncf %127 : vector<2x24xf32> to vector<2x24xbf16>
    %c768 = arith.constant 768 : index
    %c0_58 = arith.constant 0 : index
    %129 = vector.load %arg1[%c768, %c0_58] : memref<1312x128xbf16, #tpu.memory_space<vmem>>, vector<24x100xbf16>
    %cst_59 = arith.constant dense<0.000000e+00> : vector<2x100xf32>
    %130 = tpu.matmul %128, %129, %cst_59 {dimension_numbers = #tpu.dot_dimension_numbers<[1], [0], [0], [1], [0, 0, 1, 1], [], []>} : vector<2x24xbf16>, vector<24x100xbf16>, vector<2x100xf32> -> vector<2x100xf32>
    %131 = vector.extract_strided_slice %82 {offsets = [0, 72], sizes = [2, 48], strides = [1, 1]} : vector<2x120xf32> to vector<2x48xf32>
    %132 = arith.mulf %125, %131 : vector<2x48xf32>
    %133 = arith.truncf %132 : vector<2x48xf32> to vector<2x48xbf16>
    %c800 = arith.constant 800 : index
    %c0_60 = arith.constant 0 : index
    %134 = vector.load %arg1[%c800, %c0_60] : memref<1312x128xbf16, #tpu.memory_space<vmem>>, vector<48x100xbf16>
    %cst_61 = arith.constant dense<0.000000e+00> : vector<2x100xf32>
    %135 = tpu.matmul %133, %134, %cst_61 {dimension_numbers = #tpu.dot_dimension_numbers<[1], [0], [0], [1], [0, 0, 1, 1], [], []>} : vector<2x48xbf16>, vector<48x100xbf16>, vector<2x100xf32> -> vector<2x100xf32>
    %136 = arith.addf %130, %135 : vector<2x100xf32>
    %c9 = arith.constant 9 : index
    %c0_62 = arith.constant 0 : index
    %137 = vector.load %arg2[%c9, %c0_62] : memref<24x128xf32, #tpu.memory_space<vmem>>, vector<1x100xf32>
    %138 = vector.broadcast %137 : vector<1x100xf32> to vector<2x100xf32>
    %139 = arith.addf %136, %138 : vector<2x100xf32>
    %140 = arith.truncf %139 : vector<2x100xf32> to vector<2x100xbf16>
    %c848 = arith.constant 848 : index
    %c0_63 = arith.constant 0 : index
    %141 = vector.load %arg1[%c848, %c0_63] : memref<1312x128xbf16, #tpu.memory_space<vmem>>, vector<100x16xbf16>
    %cst_64 = arith.constant dense<0.000000e+00> : vector<2x16xf32>
    %142 = tpu.matmul %140, %141, %cst_64 {dimension_numbers = #tpu.dot_dimension_numbers<[1], [0], [0], [1], [0, 0, 1, 1], [], []>} : vector<2x100xbf16>, vector<100x16xbf16>, vector<2x16xf32> -> vector<2x16xf32>
    %c10 = arith.constant 10 : index
    %c0_65 = arith.constant 0 : index
    %143 = vector.load %arg2[%c10, %c0_65] : memref<24x128xf32, #tpu.memory_space<vmem>>, vector<1x16xf32>
    %144 = vector.broadcast %143 : vector<1x16xf32> to vector<2x16xf32>
    %145 = arith.addf %142, %144 : vector<2x16xf32>
    %146 = vector.extract_strided_slice %85 {offsets = [0, 0], sizes = [2, 24], strides = [1, 1]} : vector<2x88xf32> to vector<2x24xf32>
    %147 = arith.mulf %60, %146 : vector<2x24xf32>
    %148 = arith.truncf %147 : vector<2x24xf32> to vector<2x24xbf16>
    %c960 = arith.constant 960 : index
    %c0_66 = arith.constant 0 : index
    %149 = vector.load %arg1[%c960, %c0_66] : memref<1312x128xbf16, #tpu.memory_space<vmem>>, vector<24x100xbf16>
    %cst_67 = arith.constant dense<0.000000e+00> : vector<2x100xf32>
    %150 = tpu.matmul %148, %149, %cst_67 {dimension_numbers = #tpu.dot_dimension_numbers<[1], [0], [0], [1], [0, 0, 1, 1], [], []>} : vector<2x24xbf16>, vector<24x100xbf16>, vector<2x100xf32> -> vector<2x100xf32>
    %151 = vector.extract_strided_slice %85 {offsets = [0, 24], sizes = [2, 48], strides = [1, 1]} : vector<2x88xf32> to vector<2x48xf32>
    %152 = arith.mulf %125, %151 : vector<2x48xf32>
    %153 = arith.truncf %152 : vector<2x48xf32> to vector<2x48xbf16>
    %c992 = arith.constant 992 : index
    %c0_68 = arith.constant 0 : index
    %154 = vector.load %arg1[%c992, %c0_68] : memref<1312x128xbf16, #tpu.memory_space<vmem>>, vector<48x100xbf16>
    %cst_69 = arith.constant dense<0.000000e+00> : vector<2x100xf32>
    %155 = tpu.matmul %153, %154, %cst_69 {dimension_numbers = #tpu.dot_dimension_numbers<[1], [0], [0], [1], [0, 0, 1, 1], [], []>} : vector<2x48xbf16>, vector<48x100xbf16>, vector<2x100xf32> -> vector<2x100xf32>
    %156 = arith.addf %150, %155 : vector<2x100xf32>
    %157 = vector.extract_strided_slice %85 {offsets = [0, 72], sizes = [2, 16], strides = [1, 1]} : vector<2x88xf32> to vector<2x16xf32>
    %158 = arith.mulf %145, %157 : vector<2x16xf32>
    %159 = arith.truncf %158 : vector<2x16xf32> to vector<2x16xbf16>
    %c1040 = arith.constant 1040 : index
    %c0_70 = arith.constant 0 : index
    %160 = vector.load %arg1[%c1040, %c0_70] : memref<1312x128xbf16, #tpu.memory_space<vmem>>, vector<16x100xbf16>
    %cst_71 = arith.constant dense<0.000000e+00> : vector<2x100xf32>
    %161 = tpu.matmul %159, %160, %cst_71 {dimension_numbers = #tpu.dot_dimension_numbers<[1], [0], [0], [1], [0, 0, 1, 1], [], []>} : vector<2x16xbf16>, vector<16x100xbf16>, vector<2x100xf32> -> vector<2x100xf32>
    %162 = arith.addf %156, %161 : vector<2x100xf32>
    %c11 = arith.constant 11 : index
    %c0_72 = arith.constant 0 : index
    %163 = vector.load %arg2[%c11, %c0_72] : memref<24x128xf32, #tpu.memory_space<vmem>>, vector<1x100xf32>
    %164 = vector.broadcast %163 : vector<1x100xf32> to vector<2x100xf32>
    %165 = arith.addf %162, %164 : vector<2x100xf32>
    %166 = arith.truncf %165 : vector<2x100xf32> to vector<2x100xbf16>
    %c1056 = arith.constant 1056 : index
    %c0_73 = arith.constant 0 : index
    %167 = vector.load %arg1[%c1056, %c0_73] : memref<1312x128xbf16, #tpu.memory_space<vmem>>, vector<100x16xbf16>
    %cst_74 = arith.constant dense<0.000000e+00> : vector<2x16xf32>
    %168 = tpu.matmul %166, %167, %cst_74 {dimension_numbers = #tpu.dot_dimension_numbers<[1], [0], [0], [1], [0, 0, 1, 1], [], []>} : vector<2x100xbf16>, vector<100x16xbf16>, vector<2x16xf32> -> vector<2x16xf32>
    %c12 = arith.constant 12 : index
    %c0_75 = arith.constant 0 : index
    %169 = vector.load %arg2[%c12, %c0_75] : memref<24x128xf32, #tpu.memory_space<vmem>>, vector<1x16xf32>
    %170 = vector.broadcast %169 : vector<1x16xf32> to vector<2x16xf32>
    %171 = arith.addf %168, %170 : vector<2x16xf32>
    %172 = arith.truncf %171 : vector<2x16xf32> to vector<2x16xbf16>
    %c1168 = arith.constant 1168 : index
    %c0_76 = arith.constant 0 : index
    %173 = vector.load %arg1[%c1168, %c0_76] : memref<1312x128xbf16, #tpu.memory_space<vmem>>, vector<16x48xbf16>
    %cst_77 = arith.constant dense<0.000000e+00> : vector<2x48xf32>
    %174 = tpu.matmul %172, %173, %cst_77 {dimension_numbers = #tpu.dot_dimension_numbers<[1], [0], [0], [1], [0, 0, 1, 1], [], []>} : vector<2x16xbf16>, vector<16x48xbf16>, vector<2x48xf32> -> vector<2x48xf32>
    %c13 = arith.constant 13 : index
    %c0_78 = arith.constant 0 : index
    %175 = vector.load %arg2[%c13, %c0_78] : memref<24x128xf32, #tpu.memory_space<vmem>>, vector<1x48xf32>
    %176 = vector.broadcast %175 : vector<1x48xf32> to vector<2x48xf32>
    %177 = arith.addf %174, %176 : vector<2x48xf32>
    %178 = vector.extract_strided_slice %177 {offsets = [0, 0], sizes = [2, 16], strides = [1, 1]} : vector<2x48xf32> to vector<2x16xf32>
    %cst_79 = arith.constant 0.000000e+00 : f32
    %179 = vector.broadcast %cst_79 : f32 to vector<2x16xf32>
    %180 = arith.maximumf %178, %179 : vector<2x16xf32>
    %181 = arith.truncf %180 : vector<2x16xf32> to vector<2x16xbf16>
    %c1184 = arith.constant 1184 : index
    %c0_80 = arith.constant 0 : index
    %182 = vector.load %arg1[%c1184, %c0_80] : memref<1312x128xbf16, #tpu.memory_space<vmem>>, vector<16x16xbf16>
    %cst_81 = arith.constant dense<0.000000e+00> : vector<2x16xf32>
    %183 = tpu.matmul %181, %182, %cst_81 {dimension_numbers = #tpu.dot_dimension_numbers<[1], [0], [0], [1], [0, 0, 1, 1], [], []>} : vector<2x16xbf16>, vector<16x16xbf16>, vector<2x16xf32> -> vector<2x16xf32>
    %c14 = arith.constant 14 : index
    %c0_82 = arith.constant 0 : index
    %184 = vector.load %arg2[%c14, %c0_82] : memref<24x128xf32, #tpu.memory_space<vmem>>, vector<1x16xf32>
    %185 = vector.broadcast %184 : vector<1x16xf32> to vector<2x16xf32>
    %186 = arith.addf %183, %185 : vector<2x16xf32>
    %187 = math.tanh %186 : vector<2x16xf32>
    %188 = vector.extract_strided_slice %177 {offsets = [0, 16], sizes = [2, 32], strides = [1, 1]} : vector<2x48xf32> to vector<2x32xf32>
    %189 = arith.addf %188, %15 : vector<2x32xf32>
    %cst_83 = arith.constant 0.000000e+00 : f32
    %190 = vector.broadcast %cst_83 : f32 to vector<2x32xf32>
    %191 = arith.maximumf %189, %190 : vector<2x32xf32>
    %192 = arith.truncf %191 : vector<2x32xf32> to vector<2x32xbf16>
    %c1216 = arith.constant 1216 : index
    %c0_84 = arith.constant 0 : index
    %193 = vector.load %arg1[%c1216, %c0_84] : memref<1312x128xbf16, #tpu.memory_space<vmem>>, vector<32x32xbf16>
    %cst_85 = arith.constant dense<0.000000e+00> : vector<2x32xf32>
    %194 = tpu.matmul %192, %193, %cst_85 {dimension_numbers = #tpu.dot_dimension_numbers<[1], [0], [0], [1], [0, 0, 1, 1], [], []>} : vector<2x32xbf16>, vector<32x32xbf16>, vector<2x32xf32> -> vector<2x32xf32>
    %c15 = arith.constant 15 : index
    %c0_86 = arith.constant 0 : index
    %195 = vector.load %arg2[%c15, %c0_86] : memref<24x128xf32, #tpu.memory_space<vmem>>, vector<1x32xf32>
    %196 = vector.broadcast %195 : vector<1x32xf32> to vector<2x32xf32>
    %197 = arith.addf %194, %196 : vector<2x32xf32>
    %198 = vector.extract_strided_slice %197 {offsets = [0, 0], sizes = [2, 16], strides = [1, 1]} : vector<2x32xf32> to vector<2x16xf32>
    %cst_87 = arith.constant 5.000000e-01 : f32
    %199 = vector.broadcast %cst_87 : f32 to vector<2x16xf32>
    %200 = arith.mulf %199, %198 : vector<2x16xf32>
    %201 = math.tanh %200 : vector<2x16xf32>
    %cst_88 = arith.constant 1.000000e+00 : f32
    %202 = vector.broadcast %cst_88 : f32 to vector<2x16xf32>
    %203 = arith.addf %201, %202 : vector<2x16xf32>
    %cst_89 = arith.constant 5.000000e-01 : f32
    %204 = vector.broadcast %cst_89 : f32 to vector<2x16xf32>
    %205 = arith.mulf %204, %203 : vector<2x16xf32>
    %206 = vector.extract_strided_slice %197 {offsets = [0, 16], sizes = [2, 16], strides = [1, 1]} : vector<2x32xf32> to vector<2x16xf32>
    %cst_90 = arith.constant 5.000000e-01 : f32
    %207 = vector.broadcast %cst_90 : f32 to vector<2x16xf32>
    %208 = arith.mulf %207, %206 : vector<2x16xf32>
    %209 = math.tanh %208 : vector<2x16xf32>
    %cst_91 = arith.constant 1.000000e+00 : f32
    %210 = vector.broadcast %cst_91 : f32 to vector<2x16xf32>
    %211 = arith.addf %209, %210 : vector<2x16xf32>
    %cst_92 = arith.constant 5.000000e-01 : f32
    %212 = vector.broadcast %cst_92 : f32 to vector<2x16xf32>
    %213 = arith.mulf %212, %211 : vector<2x16xf32>
    %214 = arith.mulf %205, %9 : vector<2x16xf32>
    %215 = arith.mulf %213, %187 : vector<2x16xf32>
    %216 = arith.addf %214, %215 : vector<2x16xf32>
    %217 = arith.truncf %51 : vector<2x24xf32> to vector<2x24xbf16>
    %c64_93 = arith.constant 64 : index
    %c0_94 = arith.constant 0 : index
    %218 = vector.load %arg1[%c64_93, %c0_94] : memref<1312x128xbf16, #tpu.memory_space<vmem>>, vector<24x24xbf16>
    %cst_95 = arith.constant dense<0.000000e+00> : vector<2x24xf32>
    %219 = tpu.matmul %217, %218, %cst_95 {dimension_numbers = #tpu.dot_dimension_numbers<[1], [0], [0], [1], [0, 0, 1, 1], [], []>} : vector<2x24xbf16>, vector<24x24xbf16>, vector<2x24xf32> -> vector<2x24xf32>
    %220 = arith.truncf %216 : vector<2x16xf32> to vector<2x16xbf16>
    %c1200_96 = arith.constant 1200 : index
    %c0_97 = arith.constant 0 : index
    %221 = vector.load %arg1[%c1200_96, %c0_97] : memref<1312x128xbf16, #tpu.memory_space<vmem>>, vector<16x32xbf16>
    %cst_98 = arith.constant dense<0.000000e+00> : vector<2x32xf32>
    %222 = tpu.matmul %220, %221, %cst_98 {dimension_numbers = #tpu.dot_dimension_numbers<[1], [0], [0], [1], [0, 0, 1, 1], [], []>} : vector<2x16xbf16>, vector<16x32xbf16>, vector<2x32xf32> -> vector<2x32xf32>
    %223 = vector.extract_strided_slice %6 {offsets = [2, 0], sizes = [2, 96], strides = [1, 1]} : vector<8x96xf32> to vector<2x96xf32>
    %224 = arith.truncf %51 : vector<2x24xf32> to vector<2x24xbf16>
    %c32_99 = arith.constant 32 : index
    %c0_100 = arith.constant 0 : index
    %225 = vector.load %arg1[%c32_99, %c0_100] : memref<1312x128xbf16, #tpu.memory_space<vmem>>, vector<24x96xbf16>
    %cst_101 = arith.constant dense<0.000000e+00> : vector<2x96xf32>
    %226 = tpu.matmul %224, %225, %cst_101 {dimension_numbers = #tpu.dot_dimension_numbers<[1], [0], [0], [1], [0, 0, 1, 1], [], []>} : vector<2x24xbf16>, vector<24x96xbf16>, vector<2x96xf32> -> vector<2x96xf32>
    %227 = arith.addf %223, %226 : vector<2x96xf32>
    %228 = vector.extract_strided_slice %227 {offsets = [0, 0], sizes = [2, 24], strides = [1, 1]} : vector<2x96xf32> to vector<2x24xf32>
    %cst_102 = arith.constant 5.000000e-01 : f32
    %229 = vector.broadcast %cst_102 : f32 to vector<2x24xf32>
    %230 = arith.mulf %229, %228 : vector<2x24xf32>
    %231 = math.tanh %230 : vector<2x24xf32>
    %cst_103 = arith.constant 1.000000e+00 : f32
    %232 = vector.broadcast %cst_103 : f32 to vector<2x24xf32>
    %233 = arith.addf %231, %232 : vector<2x24xf32>
    %cst_104 = arith.constant 5.000000e-01 : f32
    %234 = vector.broadcast %cst_104 : f32 to vector<2x24xf32>
    %235 = arith.mulf %234, %233 : vector<2x24xf32>
    %236 = vector.extract_strided_slice %227 {offsets = [0, 24], sizes = [2, 24], strides = [1, 1]} : vector<2x96xf32> to vector<2x24xf32>
    %cst_105 = arith.constant 5.000000e-01 : f32
    %237 = vector.broadcast %cst_105 : f32 to vector<2x24xf32>
    %238 = arith.mulf %237, %236 : vector<2x24xf32>
    %239 = math.tanh %238 : vector<2x24xf32>
    %cst_106 = arith.constant 1.000000e+00 : f32
    %240 = vector.broadcast %cst_106 : f32 to vector<2x24xf32>
    %241 = arith.addf %239, %240 : vector<2x24xf32>
    %cst_107 = arith.constant 5.000000e-01 : f32
    %242 = vector.broadcast %cst_107 : f32 to vector<2x24xf32>
    %243 = arith.mulf %242, %241 : vector<2x24xf32>
    %244 = vector.extract_strided_slice %227 {offsets = [0, 48], sizes = [2, 24], strides = [1, 1]} : vector<2x96xf32> to vector<2x24xf32>
    %245 = math.tanh %244 : vector<2x24xf32>
    %246 = vector.extract_strided_slice %227 {offsets = [0, 72], sizes = [2, 24], strides = [1, 1]} : vector<2x96xf32> to vector<2x24xf32>
    %cst_108 = arith.constant 5.000000e-01 : f32
    %247 = vector.broadcast %cst_108 : f32 to vector<2x24xf32>
    %248 = arith.mulf %247, %246 : vector<2x24xf32>
    %249 = math.tanh %248 : vector<2x24xf32>
    %cst_109 = arith.constant 1.000000e+00 : f32
    %250 = vector.broadcast %cst_109 : f32 to vector<2x24xf32>
    %251 = arith.addf %249, %250 : vector<2x24xf32>
    %cst_110 = arith.constant 5.000000e-01 : f32
    %252 = vector.broadcast %cst_110 : f32 to vector<2x24xf32>
    %253 = arith.mulf %252, %251 : vector<2x24xf32>
    %254 = arith.mulf %243, %49 : vector<2x24xf32>
    %255 = arith.mulf %235, %245 : vector<2x24xf32>
    %256 = arith.addf %254, %255 : vector<2x24xf32>
    %257 = math.tanh %256 : vector<2x24xf32>
    %258 = arith.mulf %253, %257 : vector<2x24xf32>
    %259 = arith.truncf %258 : vector<2x24xf32> to vector<2x24xbf16>
    %c96_111 = arith.constant 96 : index
    %c0_112 = arith.constant 0 : index
    %260 = vector.load %arg1[%c96_111, %c0_112] : memref<1312x128xbf16, #tpu.memory_space<vmem>>, vector<24x24xbf16>
    %cst_113 = arith.constant dense<0.000000e+00> : vector<2x24xf32>
    %261 = tpu.matmul %259, %260, %cst_113 {dimension_numbers = #tpu.dot_dimension_numbers<[1], [0], [0], [1], [0, 0, 1, 1], [], []>} : vector<2x24xbf16>, vector<24x24xbf16>, vector<2x24xf32> -> vector<2x24xf32>
    %262 = arith.addf %219, %261 : vector<2x24xf32>
    %c1_114 = arith.constant 1 : index
    %c0_115 = arith.constant 0 : index
    %263 = vector.load %arg2[%c1_114, %c0_115] : memref<24x128xf32, #tpu.memory_space<vmem>>, vector<1x24xf32>
    %264 = vector.broadcast %263 : vector<1x24xf32> to vector<2x24xf32>
    %265 = arith.addf %262, %264 : vector<2x24xf32>
    %cst_116 = arith.constant 0.000000e+00 : f32
    %266 = vector.broadcast %cst_116 : f32 to vector<2x24xf32>
    %267 = arith.maximumf %265, %266 : vector<2x24xf32>
    %268 = arith.truncf %267 : vector<2x24xf32> to vector<2x24xbf16>
    %c128_117 = arith.constant 128 : index
    %c0_118 = arith.constant 0 : index
    %269 = vector.load %arg1[%c128_117, %c0_118] : memref<1312x128xbf16, #tpu.memory_space<vmem>>, vector<24x100xbf16>
    %cst_119 = arith.constant dense<0.000000e+00> : vector<2x100xf32>
    %270 = tpu.matmul %268, %269, %cst_119 {dimension_numbers = #tpu.dot_dimension_numbers<[1], [0], [0], [1], [0, 0, 1, 1], [], []>} : vector<2x24xbf16>, vector<24x100xbf16>, vector<2x100xf32> -> vector<2x100xf32>
    %c2_120 = arith.constant 2 : index
    %c0_121 = arith.constant 0 : index
    %271 = vector.load %arg2[%c2_120, %c0_121] : memref<24x128xf32, #tpu.memory_space<vmem>>, vector<1x100xf32>
    %272 = vector.broadcast %271 : vector<1x100xf32> to vector<2x100xf32>
    %273 = arith.addf %270, %272 : vector<2x100xf32>
    %274 = arith.truncf %273 : vector<2x100xf32> to vector<2x100xbf16>
    %c160_122 = arith.constant 160 : index
    %c0_123 = arith.constant 0 : index
    %275 = vector.load %arg1[%c160_122, %c0_123] : memref<1312x128xbf16, #tpu.memory_space<vmem>>, vector<100x16xbf16>
    %cst_124 = arith.constant dense<0.000000e+00> : vector<2x16xf32>
    %276 = tpu.matmul %274, %275, %cst_124 {dimension_numbers = #tpu.dot_dimension_numbers<[1], [0], [0], [1], [0, 0, 1, 1], [], []>} : vector<2x100xbf16>, vector<100x16xbf16>, vector<2x16xf32> -> vector<2x16xf32>
    %c3_125 = arith.constant 3 : index
    %c0_126 = arith.constant 0 : index
    %277 = vector.load %arg2[%c3_125, %c0_126] : memref<24x128xf32, #tpu.memory_space<vmem>>, vector<1x16xf32>
    %278 = vector.broadcast %277 : vector<1x16xf32> to vector<2x16xf32>
    %279 = arith.addf %276, %278 : vector<2x16xf32>
    %280 = arith.truncf %279 : vector<2x16xf32> to vector<2x16xbf16>
    %c272_127 = arith.constant 272 : index
    %c0_128 = arith.constant 0 : index
    %281 = vector.load %arg1[%c272_127, %c0_128] : memref<1312x128xbf16, #tpu.memory_space<vmem>>, vector<16x128xbf16>
    %cst_129 = arith.constant dense<0.000000e+00> : vector<2x128xf32>
    %282 = tpu.matmul %280, %281, %cst_129 {dimension_numbers = #tpu.dot_dimension_numbers<[1], [0], [0], [1], [0, 0, 1, 1], [], []>} : vector<2x16xbf16>, vector<16x128xbf16>, vector<2x128xf32> -> vector<2x128xf32>
    %c4_130 = arith.constant 4 : index
    %c0_131 = arith.constant 0 : index
    %283 = vector.load %arg2[%c4_130, %c0_131] : memref<24x128xf32, #tpu.memory_space<vmem>>, vector<1x128xf32>
    %284 = vector.broadcast %283 : vector<1x128xf32> to vector<2x128xf32>
    %285 = arith.addf %282, %284 : vector<2x128xf32>
    %286 = vector.extract_strided_slice %285 {offsets = [0, 0], sizes = [2, 32], strides = [1, 1]} : vector<2x128xf32> to vector<2x32xf32>
    %287 = arith.truncf %286 : vector<2x32xf32> to vector<2x32xbf16>
    %c320_132 = arith.constant 320 : index
    %c0_133 = arith.constant 0 : index
    %288 = vector.load %arg1[%c320_132, %c0_133] : memref<1312x128xbf16, #tpu.memory_space<vmem>>, vector<32x120xbf16>
    %cst_134 = arith.constant dense<0.000000e+00> : vector<2x120xf32>
    %289 = tpu.matmul %287, %288, %cst_134 {dimension_numbers = #tpu.dot_dimension_numbers<[1], [0], [0], [1], [0, 0, 1, 1], [], []>} : vector<2x32xbf16>, vector<32x120xbf16>, vector<2x120xf32> -> vector<2x120xf32>
    %290 = arith.truncf %286 : vector<2x32xf32> to vector<2x32xbf16>
    %c352_135 = arith.constant 352 : index
    %c0_136 = arith.constant 0 : index
    %291 = vector.load %arg1[%c352_135, %c0_136] : memref<1312x128xbf16, #tpu.memory_space<vmem>>, vector<32x88xbf16>
    %cst_137 = arith.constant dense<0.000000e+00> : vector<2x88xf32>
    %292 = tpu.matmul %290, %291, %cst_137 {dimension_numbers = #tpu.dot_dimension_numbers<[1], [0], [0], [1], [0, 0, 1, 1], [], []>} : vector<2x32xbf16>, vector<32x88xbf16>, vector<2x88xf32> -> vector<2x88xf32>
    %293 = arith.truncf %267 : vector<2x24xf32> to vector<2x24xbf16>
    %c288_138 = arith.constant 288 : index
    %c0_139 = arith.constant 0 : index
    %294 = vector.load %arg1[%c288_138, %c0_139] : memref<1312x128xbf16, #tpu.memory_space<vmem>>, vector<24x48xbf16>
    %cst_140 = arith.constant dense<0.000000e+00> : vector<2x48xf32>
    %295 = tpu.matmul %293, %294, %cst_140 {dimension_numbers = #tpu.dot_dimension_numbers<[1], [0], [0], [1], [0, 0, 1, 1], [], []>} : vector<2x24xbf16>, vector<24x48xbf16>, vector<2x48xf32> -> vector<2x48xf32>
    %296 = vector.extract_strided_slice %289 {offsets = [0, 0], sizes = [2, 48], strides = [1, 1]} : vector<2x120xf32> to vector<2x48xf32>
    %297 = arith.mulf %295, %296 : vector<2x48xf32>
    %298 = vector.extract_strided_slice %297 {offsets = [0, 0], sizes = [2, 16], strides = [1, 1]} : vector<2x48xf32> to vector<2x16xf32>
    %299 = arith.truncf %298 : vector<2x16xf32> to vector<2x16xbf16>
    %c384_141 = arith.constant 384 : index
    %c0_142 = arith.constant 0 : index
    %300 = vector.load %arg1[%c384_141, %c0_142] : memref<1312x128xbf16, #tpu.memory_space<vmem>>, vector<16x100xbf16>
    %cst_143 = arith.constant dense<0.000000e+00> : vector<2x100xf32>
    %301 = tpu.matmul %299, %300, %cst_143 {dimension_numbers = #tpu.dot_dimension_numbers<[1], [0], [0], [1], [0, 0, 1, 1], [], []>} : vector<2x16xbf16>, vector<16x100xbf16>, vector<2x100xf32> -> vector<2x100xf32>
    %c5_144 = arith.constant 5 : index
    %c0_145 = arith.constant 0 : index
    %302 = vector.load %arg2[%c5_144, %c0_145] : memref<24x128xf32, #tpu.memory_space<vmem>>, vector<1x100xf32>
    %303 = vector.broadcast %302 : vector<1x100xf32> to vector<2x100xf32>
    %304 = arith.addf %301, %303 : vector<2x100xf32>
    %305 = vector.extract_strided_slice %297 {offsets = [0, 16], sizes = [2, 16], strides = [1, 1]} : vector<2x48xf32> to vector<2x16xf32>
    %306 = arith.truncf %305 : vector<2x16xf32> to vector<2x16xbf16>
    %c400_146 = arith.constant 400 : index
    %c0_147 = arith.constant 0 : index
    %307 = vector.load %arg1[%c400_146, %c0_147] : memref<1312x128xbf16, #tpu.memory_space<vmem>>, vector<16x100xbf16>
    %cst_148 = arith.constant dense<0.000000e+00> : vector<2x100xf32>
    %308 = tpu.matmul %306, %307, %cst_148 {dimension_numbers = #tpu.dot_dimension_numbers<[1], [0], [0], [1], [0, 0, 1, 1], [], []>} : vector<2x16xbf16>, vector<16x100xbf16>, vector<2x100xf32> -> vector<2x100xf32>
    %c6_149 = arith.constant 6 : index
    %c0_150 = arith.constant 0 : index
    %309 = vector.load %arg2[%c6_149, %c0_150] : memref<24x128xf32, #tpu.memory_space<vmem>>, vector<1x100xf32>
    %310 = vector.broadcast %309 : vector<1x100xf32> to vector<2x100xf32>
    %311 = arith.addf %308, %310 : vector<2x100xf32>
    %312 = vector.extract_strided_slice %297 {offsets = [0, 32], sizes = [2, 16], strides = [1, 1]} : vector<2x48xf32> to vector<2x16xf32>
    %313 = arith.truncf %312 : vector<2x16xf32> to vector<2x16xbf16>
    %c416_151 = arith.constant 416 : index
    %c0_152 = arith.constant 0 : index
    %314 = vector.load %arg1[%c416_151, %c0_152] : memref<1312x128xbf16, #tpu.memory_space<vmem>>, vector<16x100xbf16>
    %cst_153 = arith.constant dense<0.000000e+00> : vector<2x100xf32>
    %315 = tpu.matmul %313, %314, %cst_153 {dimension_numbers = #tpu.dot_dimension_numbers<[1], [0], [0], [1], [0, 0, 1, 1], [], []>} : vector<2x16xbf16>, vector<16x100xbf16>, vector<2x100xf32> -> vector<2x100xf32>
    %c7_154 = arith.constant 7 : index
    %c0_155 = arith.constant 0 : index
    %316 = vector.load %arg2[%c7_154, %c0_155] : memref<24x128xf32, #tpu.memory_space<vmem>>, vector<1x100xf32>
    %317 = vector.broadcast %316 : vector<1x100xf32> to vector<2x100xf32>
    %318 = arith.addf %315, %317 : vector<2x100xf32>
    %319 = arith.truncf %304 : vector<2x100xf32> to vector<2x100xbf16>
    %c432_156 = arith.constant 432 : index
    %c0_157 = arith.constant 0 : index
    %320 = vector.load %arg1[%c432_156, %c0_157] : memref<1312x128xbf16, #tpu.memory_space<vmem>>, vector<100x48xbf16>
    %cst_158 = arith.constant dense<0.000000e+00> : vector<2x48xf32>
    %321 = tpu.matmul %319, %320, %cst_158 {dimension_numbers = #tpu.dot_dimension_numbers<[1], [0], [0], [1], [0, 0, 1, 1], [], []>} : vector<2x100xbf16>, vector<100x48xbf16>, vector<2x48xf32> -> vector<2x48xf32>
    %322 = arith.truncf %311 : vector<2x100xf32> to vector<2x100xbf16>
    %c544_159 = arith.constant 544 : index
    %c0_160 = arith.constant 0 : index
    %323 = vector.load %arg1[%c544_159, %c0_160] : memref<1312x128xbf16, #tpu.memory_space<vmem>>, vector<100x48xbf16>
    %cst_161 = arith.constant dense<0.000000e+00> : vector<2x48xf32>
    %324 = tpu.matmul %322, %323, %cst_161 {dimension_numbers = #tpu.dot_dimension_numbers<[1], [0], [0], [1], [0, 0, 1, 1], [], []>} : vector<2x100xbf16>, vector<100x48xbf16>, vector<2x48xf32> -> vector<2x48xf32>
    %325 = arith.addf %321, %324 : vector<2x48xf32>
    %326 = arith.truncf %318 : vector<2x100xf32> to vector<2x100xbf16>
    %c656_162 = arith.constant 656 : index
    %c0_163 = arith.constant 0 : index
    %327 = vector.load %arg1[%c656_162, %c0_163] : memref<1312x128xbf16, #tpu.memory_space<vmem>>, vector<100x48xbf16>
    %cst_164 = arith.constant dense<0.000000e+00> : vector<2x48xf32>
    %328 = tpu.matmul %326, %327, %cst_164 {dimension_numbers = #tpu.dot_dimension_numbers<[1], [0], [0], [1], [0, 0, 1, 1], [], []>} : vector<2x100xbf16>, vector<100x48xbf16>, vector<2x48xf32> -> vector<2x48xf32>
    %329 = arith.addf %325, %328 : vector<2x48xf32>
    %c8_165 = arith.constant 8 : index
    %c0_166 = arith.constant 0 : index
    %330 = vector.load %arg2[%c8_165, %c0_166] : memref<24x128xf32, #tpu.memory_space<vmem>>, vector<1x48xf32>
    %331 = vector.broadcast %330 : vector<1x48xf32> to vector<2x48xf32>
    %332 = arith.addf %329, %331 : vector<2x48xf32>
    %333 = vector.extract_strided_slice %289 {offsets = [0, 48], sizes = [2, 24], strides = [1, 1]} : vector<2x120xf32> to vector<2x24xf32>
    %334 = arith.mulf %267, %333 : vector<2x24xf32>
    %335 = arith.truncf %334 : vector<2x24xf32> to vector<2x24xbf16>
    %c768_167 = arith.constant 768 : index
    %c0_168 = arith.constant 0 : index
    %336 = vector.load %arg1[%c768_167, %c0_168] : memref<1312x128xbf16, #tpu.memory_space<vmem>>, vector<24x100xbf16>
    %cst_169 = arith.constant dense<0.000000e+00> : vector<2x100xf32>
    %337 = tpu.matmul %335, %336, %cst_169 {dimension_numbers = #tpu.dot_dimension_numbers<[1], [0], [0], [1], [0, 0, 1, 1], [], []>} : vector<2x24xbf16>, vector<24x100xbf16>, vector<2x100xf32> -> vector<2x100xf32>
    %338 = vector.extract_strided_slice %289 {offsets = [0, 72], sizes = [2, 48], strides = [1, 1]} : vector<2x120xf32> to vector<2x48xf32>
    %339 = arith.mulf %332, %338 : vector<2x48xf32>
    %340 = arith.truncf %339 : vector<2x48xf32> to vector<2x48xbf16>
    %c800_170 = arith.constant 800 : index
    %c0_171 = arith.constant 0 : index
    %341 = vector.load %arg1[%c800_170, %c0_171] : memref<1312x128xbf16, #tpu.memory_space<vmem>>, vector<48x100xbf16>
    %cst_172 = arith.constant dense<0.000000e+00> : vector<2x100xf32>
    %342 = tpu.matmul %340, %341, %cst_172 {dimension_numbers = #tpu.dot_dimension_numbers<[1], [0], [0], [1], [0, 0, 1, 1], [], []>} : vector<2x48xbf16>, vector<48x100xbf16>, vector<2x100xf32> -> vector<2x100xf32>
    %343 = arith.addf %337, %342 : vector<2x100xf32>
    %c9_173 = arith.constant 9 : index
    %c0_174 = arith.constant 0 : index
    %344 = vector.load %arg2[%c9_173, %c0_174] : memref<24x128xf32, #tpu.memory_space<vmem>>, vector<1x100xf32>
    %345 = vector.broadcast %344 : vector<1x100xf32> to vector<2x100xf32>
    %346 = arith.addf %343, %345 : vector<2x100xf32>
    %347 = arith.truncf %346 : vector<2x100xf32> to vector<2x100xbf16>
    %c848_175 = arith.constant 848 : index
    %c0_176 = arith.constant 0 : index
    %348 = vector.load %arg1[%c848_175, %c0_176] : memref<1312x128xbf16, #tpu.memory_space<vmem>>, vector<100x16xbf16>
    %cst_177 = arith.constant dense<0.000000e+00> : vector<2x16xf32>
    %349 = tpu.matmul %347, %348, %cst_177 {dimension_numbers = #tpu.dot_dimension_numbers<[1], [0], [0], [1], [0, 0, 1, 1], [], []>} : vector<2x100xbf16>, vector<100x16xbf16>, vector<2x16xf32> -> vector<2x16xf32>
    %c10_178 = arith.constant 10 : index
    %c0_179 = arith.constant 0 : index
    %350 = vector.load %arg2[%c10_178, %c0_179] : memref<24x128xf32, #tpu.memory_space<vmem>>, vector<1x16xf32>
    %351 = vector.broadcast %350 : vector<1x16xf32> to vector<2x16xf32>
    %352 = arith.addf %349, %351 : vector<2x16xf32>
    %353 = vector.extract_strided_slice %292 {offsets = [0, 0], sizes = [2, 24], strides = [1, 1]} : vector<2x88xf32> to vector<2x24xf32>
    %354 = arith.mulf %267, %353 : vector<2x24xf32>
    %355 = arith.truncf %354 : vector<2x24xf32> to vector<2x24xbf16>
    %c960_180 = arith.constant 960 : index
    %c0_181 = arith.constant 0 : index
    %356 = vector.load %arg1[%c960_180, %c0_181] : memref<1312x128xbf16, #tpu.memory_space<vmem>>, vector<24x100xbf16>
    %cst_182 = arith.constant dense<0.000000e+00> : vector<2x100xf32>
    %357 = tpu.matmul %355, %356, %cst_182 {dimension_numbers = #tpu.dot_dimension_numbers<[1], [0], [0], [1], [0, 0, 1, 1], [], []>} : vector<2x24xbf16>, vector<24x100xbf16>, vector<2x100xf32> -> vector<2x100xf32>
    %358 = vector.extract_strided_slice %292 {offsets = [0, 24], sizes = [2, 48], strides = [1, 1]} : vector<2x88xf32> to vector<2x48xf32>
    %359 = arith.mulf %332, %358 : vector<2x48xf32>
    %360 = arith.truncf %359 : vector<2x48xf32> to vector<2x48xbf16>
    %c992_183 = arith.constant 992 : index
    %c0_184 = arith.constant 0 : index
    %361 = vector.load %arg1[%c992_183, %c0_184] : memref<1312x128xbf16, #tpu.memory_space<vmem>>, vector<48x100xbf16>
    %cst_185 = arith.constant dense<0.000000e+00> : vector<2x100xf32>
    %362 = tpu.matmul %360, %361, %cst_185 {dimension_numbers = #tpu.dot_dimension_numbers<[1], [0], [0], [1], [0, 0, 1, 1], [], []>} : vector<2x48xbf16>, vector<48x100xbf16>, vector<2x100xf32> -> vector<2x100xf32>
    %363 = arith.addf %357, %362 : vector<2x100xf32>
    %364 = vector.extract_strided_slice %292 {offsets = [0, 72], sizes = [2, 16], strides = [1, 1]} : vector<2x88xf32> to vector<2x16xf32>
    %365 = arith.mulf %352, %364 : vector<2x16xf32>
    %366 = arith.truncf %365 : vector<2x16xf32> to vector<2x16xbf16>
    %c1040_186 = arith.constant 1040 : index
    %c0_187 = arith.constant 0 : index
    %367 = vector.load %arg1[%c1040_186, %c0_187] : memref<1312x128xbf16, #tpu.memory_space<vmem>>, vector<16x100xbf16>
    %cst_188 = arith.constant dense<0.000000e+00> : vector<2x100xf32>
    %368 = tpu.matmul %366, %367, %cst_188 {dimension_numbers = #tpu.dot_dimension_numbers<[1], [0], [0], [1], [0, 0, 1, 1], [], []>} : vector<2x16xbf16>, vector<16x100xbf16>, vector<2x100xf32> -> vector<2x100xf32>
    %369 = arith.addf %363, %368 : vector<2x100xf32>
    %c11_189 = arith.constant 11 : index
    %c0_190 = arith.constant 0 : index
    %370 = vector.load %arg2[%c11_189, %c0_190] : memref<24x128xf32, #tpu.memory_space<vmem>>, vector<1x100xf32>
    %371 = vector.broadcast %370 : vector<1x100xf32> to vector<2x100xf32>
    %372 = arith.addf %369, %371 : vector<2x100xf32>
    %373 = arith.truncf %372 : vector<2x100xf32> to vector<2x100xbf16>
    %c1056_191 = arith.constant 1056 : index
    %c0_192 = arith.constant 0 : index
    %374 = vector.load %arg1[%c1056_191, %c0_192] : memref<1312x128xbf16, #tpu.memory_space<vmem>>, vector<100x16xbf16>
    %cst_193 = arith.constant dense<0.000000e+00> : vector<2x16xf32>
    %375 = tpu.matmul %373, %374, %cst_193 {dimension_numbers = #tpu.dot_dimension_numbers<[1], [0], [0], [1], [0, 0, 1, 1], [], []>} : vector<2x100xbf16>, vector<100x16xbf16>, vector<2x16xf32> -> vector<2x16xf32>
    %c12_194 = arith.constant 12 : index
    %c0_195 = arith.constant 0 : index
    %376 = vector.load %arg2[%c12_194, %c0_195] : memref<24x128xf32, #tpu.memory_space<vmem>>, vector<1x16xf32>
    %377 = vector.broadcast %376 : vector<1x16xf32> to vector<2x16xf32>
    %378 = arith.addf %375, %377 : vector<2x16xf32>
    %379 = arith.truncf %378 : vector<2x16xf32> to vector<2x16xbf16>
    %c1168_196 = arith.constant 1168 : index
    %c0_197 = arith.constant 0 : index
    %380 = vector.load %arg1[%c1168_196, %c0_197] : memref<1312x128xbf16, #tpu.memory_space<vmem>>, vector<16x48xbf16>
    %cst_198 = arith.constant dense<0.000000e+00> : vector<2x48xf32>
    %381 = tpu.matmul %379, %380, %cst_198 {dimension_numbers = #tpu.dot_dimension_numbers<[1], [0], [0], [1], [0, 0, 1, 1], [], []>} : vector<2x16xbf16>, vector<16x48xbf16>, vector<2x48xf32> -> vector<2x48xf32>
    %c13_199 = arith.constant 13 : index
    %c0_200 = arith.constant 0 : index
    %382 = vector.load %arg2[%c13_199, %c0_200] : memref<24x128xf32, #tpu.memory_space<vmem>>, vector<1x48xf32>
    %383 = vector.broadcast %382 : vector<1x48xf32> to vector<2x48xf32>
    %384 = arith.addf %381, %383 : vector<2x48xf32>
    %385 = vector.extract_strided_slice %384 {offsets = [0, 0], sizes = [2, 16], strides = [1, 1]} : vector<2x48xf32> to vector<2x16xf32>
    %cst_201 = arith.constant 0.000000e+00 : f32
    %386 = vector.broadcast %cst_201 : f32 to vector<2x16xf32>
    %387 = arith.maximumf %385, %386 : vector<2x16xf32>
    %388 = arith.truncf %387 : vector<2x16xf32> to vector<2x16xbf16>
    %c1184_202 = arith.constant 1184 : index
    %c0_203 = arith.constant 0 : index
    %389 = vector.load %arg1[%c1184_202, %c0_203] : memref<1312x128xbf16, #tpu.memory_space<vmem>>, vector<16x16xbf16>
    %cst_204 = arith.constant dense<0.000000e+00> : vector<2x16xf32>
    %390 = tpu.matmul %388, %389, %cst_204 {dimension_numbers = #tpu.dot_dimension_numbers<[1], [0], [0], [1], [0, 0, 1, 1], [], []>} : vector<2x16xbf16>, vector<16x16xbf16>, vector<2x16xf32> -> vector<2x16xf32>
    %c14_205 = arith.constant 14 : index
    %c0_206 = arith.constant 0 : index
    %391 = vector.load %arg2[%c14_205, %c0_206] : memref<24x128xf32, #tpu.memory_space<vmem>>, vector<1x16xf32>
    %392 = vector.broadcast %391 : vector<1x16xf32> to vector<2x16xf32>
    %393 = arith.addf %390, %392 : vector<2x16xf32>
    %394 = math.tanh %393 : vector<2x16xf32>
    %395 = vector.extract_strided_slice %384 {offsets = [0, 16], sizes = [2, 32], strides = [1, 1]} : vector<2x48xf32> to vector<2x32xf32>
    %396 = arith.addf %395, %222 : vector<2x32xf32>
    %cst_207 = arith.constant 0.000000e+00 : f32
    %397 = vector.broadcast %cst_207 : f32 to vector<2x32xf32>
    %398 = arith.maximumf %396, %397 : vector<2x32xf32>
    %399 = arith.truncf %398 : vector<2x32xf32> to vector<2x32xbf16>
    %c1216_208 = arith.constant 1216 : index
    %c0_209 = arith.constant 0 : index
    %400 = vector.load %arg1[%c1216_208, %c0_209] : memref<1312x128xbf16, #tpu.memory_space<vmem>>, vector<32x32xbf16>
    %cst_210 = arith.constant dense<0.000000e+00> : vector<2x32xf32>
    %401 = tpu.matmul %399, %400, %cst_210 {dimension_numbers = #tpu.dot_dimension_numbers<[1], [0], [0], [1], [0, 0, 1, 1], [], []>} : vector<2x32xbf16>, vector<32x32xbf16>, vector<2x32xf32> -> vector<2x32xf32>
    %c15_211 = arith.constant 15 : index
    %c0_212 = arith.constant 0 : index
    %402 = vector.load %arg2[%c15_211, %c0_212] : memref<24x128xf32, #tpu.memory_space<vmem>>, vector<1x32xf32>
    %403 = vector.broadcast %402 : vector<1x32xf32> to vector<2x32xf32>
    %404 = arith.addf %401, %403 : vector<2x32xf32>
    %405 = vector.extract_strided_slice %404 {offsets = [0, 0], sizes = [2, 16], strides = [1, 1]} : vector<2x32xf32> to vector<2x16xf32>
    %cst_213 = arith.constant 5.000000e-01 : f32
    %406 = vector.broadcast %cst_213 : f32 to vector<2x16xf32>
    %407 = arith.mulf %406, %405 : vector<2x16xf32>
    %408 = math.tanh %407 : vector<2x16xf32>
    %cst_214 = arith.constant 1.000000e+00 : f32
    %409 = vector.broadcast %cst_214 : f32 to vector<2x16xf32>
    %410 = arith.addf %408, %409 : vector<2x16xf32>
    %cst_215 = arith.constant 5.000000e-01 : f32
    %411 = vector.broadcast %cst_215 : f32 to vector<2x16xf32>
    %412 = arith.mulf %411, %410 : vector<2x16xf32>
    %413 = vector.extract_strided_slice %404 {offsets = [0, 16], sizes = [2, 16], strides = [1, 1]} : vector<2x32xf32> to vector<2x16xf32>
    %cst_216 = arith.constant 5.000000e-01 : f32
    %414 = vector.broadcast %cst_216 : f32 to vector<2x16xf32>
    %415 = arith.mulf %414, %413 : vector<2x16xf32>
    %416 = math.tanh %415 : vector<2x16xf32>
    %cst_217 = arith.constant 1.000000e+00 : f32
    %417 = vector.broadcast %cst_217 : f32 to vector<2x16xf32>
    %418 = arith.addf %416, %417 : vector<2x16xf32>
    %cst_218 = arith.constant 5.000000e-01 : f32
    %419 = vector.broadcast %cst_218 : f32 to vector<2x16xf32>
    %420 = arith.mulf %419, %418 : vector<2x16xf32>
    %421 = arith.mulf %412, %216 : vector<2x16xf32>
    %422 = arith.mulf %420, %394 : vector<2x16xf32>
    %423 = arith.addf %421, %422 : vector<2x16xf32>
    %424 = arith.truncf %258 : vector<2x24xf32> to vector<2x24xbf16>
    %c64_219 = arith.constant 64 : index
    %c0_220 = arith.constant 0 : index
    %425 = vector.load %arg1[%c64_219, %c0_220] : memref<1312x128xbf16, #tpu.memory_space<vmem>>, vector<24x24xbf16>
    %cst_221 = arith.constant dense<0.000000e+00> : vector<2x24xf32>
    %426 = tpu.matmul %424, %425, %cst_221 {dimension_numbers = #tpu.dot_dimension_numbers<[1], [0], [0], [1], [0, 0, 1, 1], [], []>} : vector<2x24xbf16>, vector<24x24xbf16>, vector<2x24xf32> -> vector<2x24xf32>
    %427 = arith.truncf %423 : vector<2x16xf32> to vector<2x16xbf16>
    %c1200_222 = arith.constant 1200 : index
    %c0_223 = arith.constant 0 : index
    %428 = vector.load %arg1[%c1200_222, %c0_223] : memref<1312x128xbf16, #tpu.memory_space<vmem>>, vector<16x32xbf16>
    %cst_224 = arith.constant dense<0.000000e+00> : vector<2x32xf32>
    %429 = tpu.matmul %427, %428, %cst_224 {dimension_numbers = #tpu.dot_dimension_numbers<[1], [0], [0], [1], [0, 0, 1, 1], [], []>} : vector<2x16xbf16>, vector<16x32xbf16>, vector<2x32xf32> -> vector<2x32xf32>
    %430 = vector.extract_strided_slice %6 {offsets = [4, 0], sizes = [2, 96], strides = [1, 1]} : vector<8x96xf32> to vector<2x96xf32>
    %431 = arith.truncf %258 : vector<2x24xf32> to vector<2x24xbf16>
    %c32_225 = arith.constant 32 : index
    %c0_226 = arith.constant 0 : index
    %432 = vector.load %arg1[%c32_225, %c0_226] : memref<1312x128xbf16, #tpu.memory_space<vmem>>, vector<24x96xbf16>
    %cst_227 = arith.constant dense<0.000000e+00> : vector<2x96xf32>
    %433 = tpu.matmul %431, %432, %cst_227 {dimension_numbers = #tpu.dot_dimension_numbers<[1], [0], [0], [1], [0, 0, 1, 1], [], []>} : vector<2x24xbf16>, vector<24x96xbf16>, vector<2x96xf32> -> vector<2x96xf32>
    %434 = arith.addf %430, %433 : vector<2x96xf32>
    %435 = vector.extract_strided_slice %434 {offsets = [0, 0], sizes = [2, 24], strides = [1, 1]} : vector<2x96xf32> to vector<2x24xf32>
    %cst_228 = arith.constant 5.000000e-01 : f32
    %436 = vector.broadcast %cst_228 : f32 to vector<2x24xf32>
    %437 = arith.mulf %436, %435 : vector<2x24xf32>
    %438 = math.tanh %437 : vector<2x24xf32>
    %cst_229 = arith.constant 1.000000e+00 : f32
    %439 = vector.broadcast %cst_229 : f32 to vector<2x24xf32>
    %440 = arith.addf %438, %439 : vector<2x24xf32>
    %cst_230 = arith.constant 5.000000e-01 : f32
    %441 = vector.broadcast %cst_230 : f32 to vector<2x24xf32>
    %442 = arith.mulf %441, %440 : vector<2x24xf32>
    %443 = vector.extract_strided_slice %434 {offsets = [0, 24], sizes = [2, 24], strides = [1, 1]} : vector<2x96xf32> to vector<2x24xf32>
    %cst_231 = arith.constant 5.000000e-01 : f32
    %444 = vector.broadcast %cst_231 : f32 to vector<2x24xf32>
    %445 = arith.mulf %444, %443 : vector<2x24xf32>
    %446 = math.tanh %445 : vector<2x24xf32>
    %cst_232 = arith.constant 1.000000e+00 : f32
    %447 = vector.broadcast %cst_232 : f32 to vector<2x24xf32>
    %448 = arith.addf %446, %447 : vector<2x24xf32>
    %cst_233 = arith.constant 5.000000e-01 : f32
    %449 = vector.broadcast %cst_233 : f32 to vector<2x24xf32>
    %450 = arith.mulf %449, %448 : vector<2x24xf32>
    %451 = vector.extract_strided_slice %434 {offsets = [0, 48], sizes = [2, 24], strides = [1, 1]} : vector<2x96xf32> to vector<2x24xf32>
    %452 = math.tanh %451 : vector<2x24xf32>
    %453 = vector.extract_strided_slice %434 {offsets = [0, 72], sizes = [2, 24], strides = [1, 1]} : vector<2x96xf32> to vector<2x24xf32>
    %cst_234 = arith.constant 5.000000e-01 : f32
    %454 = vector.broadcast %cst_234 : f32 to vector<2x24xf32>
    %455 = arith.mulf %454, %453 : vector<2x24xf32>
    %456 = math.tanh %455 : vector<2x24xf32>
    %cst_235 = arith.constant 1.000000e+00 : f32
    %457 = vector.broadcast %cst_235 : f32 to vector<2x24xf32>
    %458 = arith.addf %456, %457 : vector<2x24xf32>
    %cst_236 = arith.constant 5.000000e-01 : f32
    %459 = vector.broadcast %cst_236 : f32 to vector<2x24xf32>
    %460 = arith.mulf %459, %458 : vector<2x24xf32>
    %461 = arith.mulf %450, %256 : vector<2x24xf32>
    %462 = arith.mulf %442, %452 : vector<2x24xf32>
    %463 = arith.addf %461, %462 : vector<2x24xf32>
    %464 = math.tanh %463 : vector<2x24xf32>
    %465 = arith.mulf %460, %464 : vector<2x24xf32>
    %466 = arith.truncf %465 : vector<2x24xf32> to vector<2x24xbf16>
    %c96_237 = arith.constant 96 : index
    %c0_238 = arith.constant 0 : index
    %467 = vector.load %arg1[%c96_237, %c0_238] : memref<1312x128xbf16, #tpu.memory_space<vmem>>, vector<24x24xbf16>
    %cst_239 = arith.constant dense<0.000000e+00> : vector<2x24xf32>
    %468 = tpu.matmul %466, %467, %cst_239 {dimension_numbers = #tpu.dot_dimension_numbers<[1], [0], [0], [1], [0, 0, 1, 1], [], []>} : vector<2x24xbf16>, vector<24x24xbf16>, vector<2x24xf32> -> vector<2x24xf32>
    %469 = arith.addf %426, %468 : vector<2x24xf32>
    %c1_240 = arith.constant 1 : index
    %c0_241 = arith.constant 0 : index
    %470 = vector.load %arg2[%c1_240, %c0_241] : memref<24x128xf32, #tpu.memory_space<vmem>>, vector<1x24xf32>
    %471 = vector.broadcast %470 : vector<1x24xf32> to vector<2x24xf32>
    %472 = arith.addf %469, %471 : vector<2x24xf32>
    %cst_242 = arith.constant 0.000000e+00 : f32
    %473 = vector.broadcast %cst_242 : f32 to vector<2x24xf32>
    %474 = arith.maximumf %472, %473 : vector<2x24xf32>
    %475 = arith.truncf %474 : vector<2x24xf32> to vector<2x24xbf16>
    %c128_243 = arith.constant 128 : index
    %c0_244 = arith.constant 0 : index
    %476 = vector.load %arg1[%c128_243, %c0_244] : memref<1312x128xbf16, #tpu.memory_space<vmem>>, vector<24x100xbf16>
    %cst_245 = arith.constant dense<0.000000e+00> : vector<2x100xf32>
    %477 = tpu.matmul %475, %476, %cst_245 {dimension_numbers = #tpu.dot_dimension_numbers<[1], [0], [0], [1], [0, 0, 1, 1], [], []>} : vector<2x24xbf16>, vector<24x100xbf16>, vector<2x100xf32> -> vector<2x100xf32>
    %c2_246 = arith.constant 2 : index
    %c0_247 = arith.constant 0 : index
    %478 = vector.load %arg2[%c2_246, %c0_247] : memref<24x128xf32, #tpu.memory_space<vmem>>, vector<1x100xf32>
    %479 = vector.broadcast %478 : vector<1x100xf32> to vector<2x100xf32>
    %480 = arith.addf %477, %479 : vector<2x100xf32>
    %481 = arith.truncf %480 : vector<2x100xf32> to vector<2x100xbf16>
    %c160_248 = arith.constant 160 : index
    %c0_249 = arith.constant 0 : index
    %482 = vector.load %arg1[%c160_248, %c0_249] : memref<1312x128xbf16, #tpu.memory_space<vmem>>, vector<100x16xbf16>
    %cst_250 = arith.constant dense<0.000000e+00> : vector<2x16xf32>
    %483 = tpu.matmul %481, %482, %cst_250 {dimension_numbers = #tpu.dot_dimension_numbers<[1], [0], [0], [1], [0, 0, 1, 1], [], []>} : vector<2x100xbf16>, vector<100x16xbf16>, vector<2x16xf32> -> vector<2x16xf32>
    %c3_251 = arith.constant 3 : index
    %c0_252 = arith.constant 0 : index
    %484 = vector.load %arg2[%c3_251, %c0_252] : memref<24x128xf32, #tpu.memory_space<vmem>>, vector<1x16xf32>
    %485 = vector.broadcast %484 : vector<1x16xf32> to vector<2x16xf32>
    %486 = arith.addf %483, %485 : vector<2x16xf32>
    %487 = arith.truncf %486 : vector<2x16xf32> to vector<2x16xbf16>
    %c272_253 = arith.constant 272 : index
    %c0_254 = arith.constant 0 : index
    %488 = vector.load %arg1[%c272_253, %c0_254] : memref<1312x128xbf16, #tpu.memory_space<vmem>>, vector<16x128xbf16>
    %cst_255 = arith.constant dense<0.000000e+00> : vector<2x128xf32>
    %489 = tpu.matmul %487, %488, %cst_255 {dimension_numbers = #tpu.dot_dimension_numbers<[1], [0], [0], [1], [0, 0, 1, 1], [], []>} : vector<2x16xbf16>, vector<16x128xbf16>, vector<2x128xf32> -> vector<2x128xf32>
    %c4_256 = arith.constant 4 : index
    %c0_257 = arith.constant 0 : index
    %490 = vector.load %arg2[%c4_256, %c0_257] : memref<24x128xf32, #tpu.memory_space<vmem>>, vector<1x128xf32>
    %491 = vector.broadcast %490 : vector<1x128xf32> to vector<2x128xf32>
    %492 = arith.addf %489, %491 : vector<2x128xf32>
    %493 = vector.extract_strided_slice %492 {offsets = [0, 0], sizes = [2, 32], strides = [1, 1]} : vector<2x128xf32> to vector<2x32xf32>
    %494 = arith.truncf %493 : vector<2x32xf32> to vector<2x32xbf16>
    %c320_258 = arith.constant 320 : index
    %c0_259 = arith.constant 0 : index
    %495 = vector.load %arg1[%c320_258, %c0_259] : memref<1312x128xbf16, #tpu.memory_space<vmem>>, vector<32x120xbf16>
    %cst_260 = arith.constant dense<0.000000e+00> : vector<2x120xf32>
    %496 = tpu.matmul %494, %495, %cst_260 {dimension_numbers = #tpu.dot_dimension_numbers<[1], [0], [0], [1], [0, 0, 1, 1], [], []>} : vector<2x32xbf16>, vector<32x120xbf16>, vector<2x120xf32> -> vector<2x120xf32>
    %497 = arith.truncf %493 : vector<2x32xf32> to vector<2x32xbf16>
    %c352_261 = arith.constant 352 : index
    %c0_262 = arith.constant 0 : index
    %498 = vector.load %arg1[%c352_261, %c0_262] : memref<1312x128xbf16, #tpu.memory_space<vmem>>, vector<32x88xbf16>
    %cst_263 = arith.constant dense<0.000000e+00> : vector<2x88xf32>
    %499 = tpu.matmul %497, %498, %cst_263 {dimension_numbers = #tpu.dot_dimension_numbers<[1], [0], [0], [1], [0, 0, 1, 1], [], []>} : vector<2x32xbf16>, vector<32x88xbf16>, vector<2x88xf32> -> vector<2x88xf32>
    %500 = arith.truncf %474 : vector<2x24xf32> to vector<2x24xbf16>
    %c288_264 = arith.constant 288 : index
    %c0_265 = arith.constant 0 : index
    %501 = vector.load %arg1[%c288_264, %c0_265] : memref<1312x128xbf16, #tpu.memory_space<vmem>>, vector<24x48xbf16>
    %cst_266 = arith.constant dense<0.000000e+00> : vector<2x48xf32>
    %502 = tpu.matmul %500, %501, %cst_266 {dimension_numbers = #tpu.dot_dimension_numbers<[1], [0], [0], [1], [0, 0, 1, 1], [], []>} : vector<2x24xbf16>, vector<24x48xbf16>, vector<2x48xf32> -> vector<2x48xf32>
    %503 = vector.extract_strided_slice %496 {offsets = [0, 0], sizes = [2, 48], strides = [1, 1]} : vector<2x120xf32> to vector<2x48xf32>
    %504 = arith.mulf %502, %503 : vector<2x48xf32>
    %505 = vector.extract_strided_slice %504 {offsets = [0, 0], sizes = [2, 16], strides = [1, 1]} : vector<2x48xf32> to vector<2x16xf32>
    %506 = arith.truncf %505 : vector<2x16xf32> to vector<2x16xbf16>
    %c384_267 = arith.constant 384 : index
    %c0_268 = arith.constant 0 : index
    %507 = vector.load %arg1[%c384_267, %c0_268] : memref<1312x128xbf16, #tpu.memory_space<vmem>>, vector<16x100xbf16>
    %cst_269 = arith.constant dense<0.000000e+00> : vector<2x100xf32>
    %508 = tpu.matmul %506, %507, %cst_269 {dimension_numbers = #tpu.dot_dimension_numbers<[1], [0], [0], [1], [0, 0, 1, 1], [], []>} : vector<2x16xbf16>, vector<16x100xbf16>, vector<2x100xf32> -> vector<2x100xf32>
    %c5_270 = arith.constant 5 : index
    %c0_271 = arith.constant 0 : index
    %509 = vector.load %arg2[%c5_270, %c0_271] : memref<24x128xf32, #tpu.memory_space<vmem>>, vector<1x100xf32>
    %510 = vector.broadcast %509 : vector<1x100xf32> to vector<2x100xf32>
    %511 = arith.addf %508, %510 : vector<2x100xf32>
    %512 = vector.extract_strided_slice %504 {offsets = [0, 16], sizes = [2, 16], strides = [1, 1]} : vector<2x48xf32> to vector<2x16xf32>
    %513 = arith.truncf %512 : vector<2x16xf32> to vector<2x16xbf16>
    %c400_272 = arith.constant 400 : index
    %c0_273 = arith.constant 0 : index
    %514 = vector.load %arg1[%c400_272, %c0_273] : memref<1312x128xbf16, #tpu.memory_space<vmem>>, vector<16x100xbf16>
    %cst_274 = arith.constant dense<0.000000e+00> : vector<2x100xf32>
    %515 = tpu.matmul %513, %514, %cst_274 {dimension_numbers = #tpu.dot_dimension_numbers<[1], [0], [0], [1], [0, 0, 1, 1], [], []>} : vector<2x16xbf16>, vector<16x100xbf16>, vector<2x100xf32> -> vector<2x100xf32>
    %c6_275 = arith.constant 6 : index
    %c0_276 = arith.constant 0 : index
    %516 = vector.load %arg2[%c6_275, %c0_276] : memref<24x128xf32, #tpu.memory_space<vmem>>, vector<1x100xf32>
    %517 = vector.broadcast %516 : vector<1x100xf32> to vector<2x100xf32>
    %518 = arith.addf %515, %517 : vector<2x100xf32>
    %519 = vector.extract_strided_slice %504 {offsets = [0, 32], sizes = [2, 16], strides = [1, 1]} : vector<2x48xf32> to vector<2x16xf32>
    %520 = arith.truncf %519 : vector<2x16xf32> to vector<2x16xbf16>
    %c416_277 = arith.constant 416 : index
    %c0_278 = arith.constant 0 : index
    %521 = vector.load %arg1[%c416_277, %c0_278] : memref<1312x128xbf16, #tpu.memory_space<vmem>>, vector<16x100xbf16>
    %cst_279 = arith.constant dense<0.000000e+00> : vector<2x100xf32>
    %522 = tpu.matmul %520, %521, %cst_279 {dimension_numbers = #tpu.dot_dimension_numbers<[1], [0], [0], [1], [0, 0, 1, 1], [], []>} : vector<2x16xbf16>, vector<16x100xbf16>, vector<2x100xf32> -> vector<2x100xf32>
    %c7_280 = arith.constant 7 : index
    %c0_281 = arith.constant 0 : index
    %523 = vector.load %arg2[%c7_280, %c0_281] : memref<24x128xf32, #tpu.memory_space<vmem>>, vector<1x100xf32>
    %524 = vector.broadcast %523 : vector<1x100xf32> to vector<2x100xf32>
    %525 = arith.addf %522, %524 : vector<2x100xf32>
    %526 = arith.truncf %511 : vector<2x100xf32> to vector<2x100xbf16>
    %c432_282 = arith.constant 432 : index
    %c0_283 = arith.constant 0 : index
    %527 = vector.load %arg1[%c432_282, %c0_283] : memref<1312x128xbf16, #tpu.memory_space<vmem>>, vector<100x48xbf16>
    %cst_284 = arith.constant dense<0.000000e+00> : vector<2x48xf32>
    %528 = tpu.matmul %526, %527, %cst_284 {dimension_numbers = #tpu.dot_dimension_numbers<[1], [0], [0], [1], [0, 0, 1, 1], [], []>} : vector<2x100xbf16>, vector<100x48xbf16>, vector<2x48xf32> -> vector<2x48xf32>
    %529 = arith.truncf %518 : vector<2x100xf32> to vector<2x100xbf16>
    %c544_285 = arith.constant 544 : index
    %c0_286 = arith.constant 0 : index
    %530 = vector.load %arg1[%c544_285, %c0_286] : memref<1312x128xbf16, #tpu.memory_space<vmem>>, vector<100x48xbf16>
    %cst_287 = arith.constant dense<0.000000e+00> : vector<2x48xf32>
    %531 = tpu.matmul %529, %530, %cst_287 {dimension_numbers = #tpu.dot_dimension_numbers<[1], [0], [0], [1], [0, 0, 1, 1], [], []>} : vector<2x100xbf16>, vector<100x48xbf16>, vector<2x48xf32> -> vector<2x48xf32>
    %532 = arith.addf %528, %531 : vector<2x48xf32>
    %533 = arith.truncf %525 : vector<2x100xf32> to vector<2x100xbf16>
    %c656_288 = arith.constant 656 : index
    %c0_289 = arith.constant 0 : index
    %534 = vector.load %arg1[%c656_288, %c0_289] : memref<1312x128xbf16, #tpu.memory_space<vmem>>, vector<100x48xbf16>
    %cst_290 = arith.constant dense<0.000000e+00> : vector<2x48xf32>
    %535 = tpu.matmul %533, %534, %cst_290 {dimension_numbers = #tpu.dot_dimension_numbers<[1], [0], [0], [1], [0, 0, 1, 1], [], []>} : vector<2x100xbf16>, vector<100x48xbf16>, vector<2x48xf32> -> vector<2x48xf32>
    %536 = arith.addf %532, %535 : vector<2x48xf32>
    %c8_291 = arith.constant 8 : index
    %c0_292 = arith.constant 0 : index
    %537 = vector.load %arg2[%c8_291, %c0_292] : memref<24x128xf32, #tpu.memory_space<vmem>>, vector<1x48xf32>
    %538 = vector.broadcast %537 : vector<1x48xf32> to vector<2x48xf32>
    %539 = arith.addf %536, %538 : vector<2x48xf32>
    %540 = vector.extract_strided_slice %496 {offsets = [0, 48], sizes = [2, 24], strides = [1, 1]} : vector<2x120xf32> to vector<2x24xf32>
    %541 = arith.mulf %474, %540 : vector<2x24xf32>
    %542 = arith.truncf %541 : vector<2x24xf32> to vector<2x24xbf16>
    %c768_293 = arith.constant 768 : index
    %c0_294 = arith.constant 0 : index
    %543 = vector.load %arg1[%c768_293, %c0_294] : memref<1312x128xbf16, #tpu.memory_space<vmem>>, vector<24x100xbf16>
    %cst_295 = arith.constant dense<0.000000e+00> : vector<2x100xf32>
    %544 = tpu.matmul %542, %543, %cst_295 {dimension_numbers = #tpu.dot_dimension_numbers<[1], [0], [0], [1], [0, 0, 1, 1], [], []>} : vector<2x24xbf16>, vector<24x100xbf16>, vector<2x100xf32> -> vector<2x100xf32>
    %545 = vector.extract_strided_slice %496 {offsets = [0, 72], sizes = [2, 48], strides = [1, 1]} : vector<2x120xf32> to vector<2x48xf32>
    %546 = arith.mulf %539, %545 : vector<2x48xf32>
    %547 = arith.truncf %546 : vector<2x48xf32> to vector<2x48xbf16>
    %c800_296 = arith.constant 800 : index
    %c0_297 = arith.constant 0 : index
    %548 = vector.load %arg1[%c800_296, %c0_297] : memref<1312x128xbf16, #tpu.memory_space<vmem>>, vector<48x100xbf16>
    %cst_298 = arith.constant dense<0.000000e+00> : vector<2x100xf32>
    %549 = tpu.matmul %547, %548, %cst_298 {dimension_numbers = #tpu.dot_dimension_numbers<[1], [0], [0], [1], [0, 0, 1, 1], [], []>} : vector<2x48xbf16>, vector<48x100xbf16>, vector<2x100xf32> -> vector<2x100xf32>
    %550 = arith.addf %544, %549 : vector<2x100xf32>
    %c9_299 = arith.constant 9 : index
    %c0_300 = arith.constant 0 : index
    %551 = vector.load %arg2[%c9_299, %c0_300] : memref<24x128xf32, #tpu.memory_space<vmem>>, vector<1x100xf32>
    %552 = vector.broadcast %551 : vector<1x100xf32> to vector<2x100xf32>
    %553 = arith.addf %550, %552 : vector<2x100xf32>
    %554 = arith.truncf %553 : vector<2x100xf32> to vector<2x100xbf16>
    %c848_301 = arith.constant 848 : index
    %c0_302 = arith.constant 0 : index
    %555 = vector.load %arg1[%c848_301, %c0_302] : memref<1312x128xbf16, #tpu.memory_space<vmem>>, vector<100x16xbf16>
    %cst_303 = arith.constant dense<0.000000e+00> : vector<2x16xf32>
    %556 = tpu.matmul %554, %555, %cst_303 {dimension_numbers = #tpu.dot_dimension_numbers<[1], [0], [0], [1], [0, 0, 1, 1], [], []>} : vector<2x100xbf16>, vector<100x16xbf16>, vector<2x16xf32> -> vector<2x16xf32>
    %c10_304 = arith.constant 10 : index
    %c0_305 = arith.constant 0 : index
    %557 = vector.load %arg2[%c10_304, %c0_305] : memref<24x128xf32, #tpu.memory_space<vmem>>, vector<1x16xf32>
    %558 = vector.broadcast %557 : vector<1x16xf32> to vector<2x16xf32>
    %559 = arith.addf %556, %558 : vector<2x16xf32>
    %560 = vector.extract_strided_slice %499 {offsets = [0, 0], sizes = [2, 24], strides = [1, 1]} : vector<2x88xf32> to vector<2x24xf32>
    %561 = arith.mulf %474, %560 : vector<2x24xf32>
    %562 = arith.truncf %561 : vector<2x24xf32> to vector<2x24xbf16>
    %c960_306 = arith.constant 960 : index
    %c0_307 = arith.constant 0 : index
    %563 = vector.load %arg1[%c960_306, %c0_307] : memref<1312x128xbf16, #tpu.memory_space<vmem>>, vector<24x100xbf16>
    %cst_308 = arith.constant dense<0.000000e+00> : vector<2x100xf32>
    %564 = tpu.matmul %562, %563, %cst_308 {dimension_numbers = #tpu.dot_dimension_numbers<[1], [0], [0], [1], [0, 0, 1, 1], [], []>} : vector<2x24xbf16>, vector<24x100xbf16>, vector<2x100xf32> -> vector<2x100xf32>
    %565 = vector.extract_strided_slice %499 {offsets = [0, 24], sizes = [2, 48], strides = [1, 1]} : vector<2x88xf32> to vector<2x48xf32>
    %566 = arith.mulf %539, %565 : vector<2x48xf32>
    %567 = arith.truncf %566 : vector<2x48xf32> to vector<2x48xbf16>
    %c992_309 = arith.constant 992 : index
    %c0_310 = arith.constant 0 : index
    %568 = vector.load %arg1[%c992_309, %c0_310] : memref<1312x128xbf16, #tpu.memory_space<vmem>>, vector<48x100xbf16>
    %cst_311 = arith.constant dense<0.000000e+00> : vector<2x100xf32>
    %569 = tpu.matmul %567, %568, %cst_311 {dimension_numbers = #tpu.dot_dimension_numbers<[1], [0], [0], [1], [0, 0, 1, 1], [], []>} : vector<2x48xbf16>, vector<48x100xbf16>, vector<2x100xf32> -> vector<2x100xf32>
    %570 = arith.addf %564, %569 : vector<2x100xf32>
    %571 = vector.extract_strided_slice %499 {offsets = [0, 72], sizes = [2, 16], strides = [1, 1]} : vector<2x88xf32> to vector<2x16xf32>
    %572 = arith.mulf %559, %571 : vector<2x16xf32>
    %573 = arith.truncf %572 : vector<2x16xf32> to vector<2x16xbf16>
    %c1040_312 = arith.constant 1040 : index
    %c0_313 = arith.constant 0 : index
    %574 = vector.load %arg1[%c1040_312, %c0_313] : memref<1312x128xbf16, #tpu.memory_space<vmem>>, vector<16x100xbf16>
    %cst_314 = arith.constant dense<0.000000e+00> : vector<2x100xf32>
    %575 = tpu.matmul %573, %574, %cst_314 {dimension_numbers = #tpu.dot_dimension_numbers<[1], [0], [0], [1], [0, 0, 1, 1], [], []>} : vector<2x16xbf16>, vector<16x100xbf16>, vector<2x100xf32> -> vector<2x100xf32>
    %576 = arith.addf %570, %575 : vector<2x100xf32>
    %c11_315 = arith.constant 11 : index
    %c0_316 = arith.constant 0 : index
    %577 = vector.load %arg2[%c11_315, %c0_316] : memref<24x128xf32, #tpu.memory_space<vmem>>, vector<1x100xf32>
    %578 = vector.broadcast %577 : vector<1x100xf32> to vector<2x100xf32>
    %579 = arith.addf %576, %578 : vector<2x100xf32>
    %580 = arith.truncf %579 : vector<2x100xf32> to vector<2x100xbf16>
    %c1056_317 = arith.constant 1056 : index
    %c0_318 = arith.constant 0 : index
    %581 = vector.load %arg1[%c1056_317, %c0_318] : memref<1312x128xbf16, #tpu.memory_space<vmem>>, vector<100x16xbf16>
    %cst_319 = arith.constant dense<0.000000e+00> : vector<2x16xf32>
    %582 = tpu.matmul %580, %581, %cst_319 {dimension_numbers = #tpu.dot_dimension_numbers<[1], [0], [0], [1], [0, 0, 1, 1], [], []>} : vector<2x100xbf16>, vector<100x16xbf16>, vector<2x16xf32> -> vector<2x16xf32>
    %c12_320 = arith.constant 12 : index
    %c0_321 = arith.constant 0 : index
    %583 = vector.load %arg2[%c12_320, %c0_321] : memref<24x128xf32, #tpu.memory_space<vmem>>, vector<1x16xf32>
    %584 = vector.broadcast %583 : vector<1x16xf32> to vector<2x16xf32>
    %585 = arith.addf %582, %584 : vector<2x16xf32>
    %586 = arith.truncf %585 : vector<2x16xf32> to vector<2x16xbf16>
    %c1168_322 = arith.constant 1168 : index
    %c0_323 = arith.constant 0 : index
    %587 = vector.load %arg1[%c1168_322, %c0_323] : memref<1312x128xbf16, #tpu.memory_space<vmem>>, vector<16x48xbf16>
    %cst_324 = arith.constant dense<0.000000e+00> : vector<2x48xf32>
    %588 = tpu.matmul %586, %587, %cst_324 {dimension_numbers = #tpu.dot_dimension_numbers<[1], [0], [0], [1], [0, 0, 1, 1], [], []>} : vector<2x16xbf16>, vector<16x48xbf16>, vector<2x48xf32> -> vector<2x48xf32>
    %c13_325 = arith.constant 13 : index
    %c0_326 = arith.constant 0 : index
    %589 = vector.load %arg2[%c13_325, %c0_326] : memref<24x128xf32, #tpu.memory_space<vmem>>, vector<1x48xf32>
    %590 = vector.broadcast %589 : vector<1x48xf32> to vector<2x48xf32>
    %591 = arith.addf %588, %590 : vector<2x48xf32>
    %592 = vector.extract_strided_slice %591 {offsets = [0, 0], sizes = [2, 16], strides = [1, 1]} : vector<2x48xf32> to vector<2x16xf32>
    %cst_327 = arith.constant 0.000000e+00 : f32
    %593 = vector.broadcast %cst_327 : f32 to vector<2x16xf32>
    %594 = arith.maximumf %592, %593 : vector<2x16xf32>
    %595 = arith.truncf %594 : vector<2x16xf32> to vector<2x16xbf16>
    %c1184_328 = arith.constant 1184 : index
    %c0_329 = arith.constant 0 : index
    %596 = vector.load %arg1[%c1184_328, %c0_329] : memref<1312x128xbf16, #tpu.memory_space<vmem>>, vector<16x16xbf16>
    %cst_330 = arith.constant dense<0.000000e+00> : vector<2x16xf32>
    %597 = tpu.matmul %595, %596, %cst_330 {dimension_numbers = #tpu.dot_dimension_numbers<[1], [0], [0], [1], [0, 0, 1, 1], [], []>} : vector<2x16xbf16>, vector<16x16xbf16>, vector<2x16xf32> -> vector<2x16xf32>
    %c14_331 = arith.constant 14 : index
    %c0_332 = arith.constant 0 : index
    %598 = vector.load %arg2[%c14_331, %c0_332] : memref<24x128xf32, #tpu.memory_space<vmem>>, vector<1x16xf32>
    %599 = vector.broadcast %598 : vector<1x16xf32> to vector<2x16xf32>
    %600 = arith.addf %597, %599 : vector<2x16xf32>
    %601 = math.tanh %600 : vector<2x16xf32>
    %602 = vector.extract_strided_slice %591 {offsets = [0, 16], sizes = [2, 32], strides = [1, 1]} : vector<2x48xf32> to vector<2x32xf32>
    %603 = arith.addf %602, %429 : vector<2x32xf32>
    %cst_333 = arith.constant 0.000000e+00 : f32
    %604 = vector.broadcast %cst_333 : f32 to vector<2x32xf32>
    %605 = arith.maximumf %603, %604 : vector<2x32xf32>
    %606 = arith.truncf %605 : vector<2x32xf32> to vector<2x32xbf16>
    %c1216_334 = arith.constant 1216 : index
    %c0_335 = arith.constant 0 : index
    %607 = vector.load %arg1[%c1216_334, %c0_335] : memref<1312x128xbf16, #tpu.memory_space<vmem>>, vector<32x32xbf16>
    %cst_336 = arith.constant dense<0.000000e+00> : vector<2x32xf32>
    %608 = tpu.matmul %606, %607, %cst_336 {dimension_numbers = #tpu.dot_dimension_numbers<[1], [0], [0], [1], [0, 0, 1, 1], [], []>} : vector<2x32xbf16>, vector<32x32xbf16>, vector<2x32xf32> -> vector<2x32xf32>
    %c15_337 = arith.constant 15 : index
    %c0_338 = arith.constant 0 : index
    %609 = vector.load %arg2[%c15_337, %c0_338] : memref<24x128xf32, #tpu.memory_space<vmem>>, vector<1x32xf32>
    %610 = vector.broadcast %609 : vector<1x32xf32> to vector<2x32xf32>
    %611 = arith.addf %608, %610 : vector<2x32xf32>
    %612 = vector.extract_strided_slice %611 {offsets = [0, 0], sizes = [2, 16], strides = [1, 1]} : vector<2x32xf32> to vector<2x16xf32>
    %cst_339 = arith.constant 5.000000e-01 : f32
    %613 = vector.broadcast %cst_339 : f32 to vector<2x16xf32>
    %614 = arith.mulf %613, %612 : vector<2x16xf32>
    %615 = math.tanh %614 : vector<2x16xf32>
    %cst_340 = arith.constant 1.000000e+00 : f32
    %616 = vector.broadcast %cst_340 : f32 to vector<2x16xf32>
    %617 = arith.addf %615, %616 : vector<2x16xf32>
    %cst_341 = arith.constant 5.000000e-01 : f32
    %618 = vector.broadcast %cst_341 : f32 to vector<2x16xf32>
    %619 = arith.mulf %618, %617 : vector<2x16xf32>
    %620 = vector.extract_strided_slice %611 {offsets = [0, 16], sizes = [2, 16], strides = [1, 1]} : vector<2x32xf32> to vector<2x16xf32>
    %cst_342 = arith.constant 5.000000e-01 : f32
    %621 = vector.broadcast %cst_342 : f32 to vector<2x16xf32>
    %622 = arith.mulf %621, %620 : vector<2x16xf32>
    %623 = math.tanh %622 : vector<2x16xf32>
    %cst_343 = arith.constant 1.000000e+00 : f32
    %624 = vector.broadcast %cst_343 : f32 to vector<2x16xf32>
    %625 = arith.addf %623, %624 : vector<2x16xf32>
    %cst_344 = arith.constant 5.000000e-01 : f32
    %626 = vector.broadcast %cst_344 : f32 to vector<2x16xf32>
    %627 = arith.mulf %626, %625 : vector<2x16xf32>
    %628 = arith.mulf %619, %423 : vector<2x16xf32>
    %629 = arith.mulf %627, %601 : vector<2x16xf32>
    %630 = arith.addf %628, %629 : vector<2x16xf32>
    %631 = arith.truncf %465 : vector<2x24xf32> to vector<2x24xbf16>
    %c64_345 = arith.constant 64 : index
    %c0_346 = arith.constant 0 : index
    %632 = vector.load %arg1[%c64_345, %c0_346] : memref<1312x128xbf16, #tpu.memory_space<vmem>>, vector<24x24xbf16>
    %cst_347 = arith.constant dense<0.000000e+00> : vector<2x24xf32>
    %633 = tpu.matmul %631, %632, %cst_347 {dimension_numbers = #tpu.dot_dimension_numbers<[1], [0], [0], [1], [0, 0, 1, 1], [], []>} : vector<2x24xbf16>, vector<24x24xbf16>, vector<2x24xf32> -> vector<2x24xf32>
    %634 = arith.truncf %630 : vector<2x16xf32> to vector<2x16xbf16>
    %c1200_348 = arith.constant 1200 : index
    %c0_349 = arith.constant 0 : index
    %635 = vector.load %arg1[%c1200_348, %c0_349] : memref<1312x128xbf16, #tpu.memory_space<vmem>>, vector<16x32xbf16>
    %cst_350 = arith.constant dense<0.000000e+00> : vector<2x32xf32>
    %636 = tpu.matmul %634, %635, %cst_350 {dimension_numbers = #tpu.dot_dimension_numbers<[1], [0], [0], [1], [0, 0, 1, 1], [], []>} : vector<2x16xbf16>, vector<16x32xbf16>, vector<2x32xf32> -> vector<2x32xf32>
    %637 = vector.extract_strided_slice %6 {offsets = [6, 0], sizes = [2, 96], strides = [1, 1]} : vector<8x96xf32> to vector<2x96xf32>
    %638 = arith.truncf %465 : vector<2x24xf32> to vector<2x24xbf16>
    %c32_351 = arith.constant 32 : index
    %c0_352 = arith.constant 0 : index
    %639 = vector.load %arg1[%c32_351, %c0_352] : memref<1312x128xbf16, #tpu.memory_space<vmem>>, vector<24x96xbf16>
    %cst_353 = arith.constant dense<0.000000e+00> : vector<2x96xf32>
    %640 = tpu.matmul %638, %639, %cst_353 {dimension_numbers = #tpu.dot_dimension_numbers<[1], [0], [0], [1], [0, 0, 1, 1], [], []>} : vector<2x24xbf16>, vector<24x96xbf16>, vector<2x96xf32> -> vector<2x96xf32>
    %641 = arith.addf %637, %640 : vector<2x96xf32>
    %642 = vector.extract_strided_slice %641 {offsets = [0, 0], sizes = [2, 24], strides = [1, 1]} : vector<2x96xf32> to vector<2x24xf32>
    %cst_354 = arith.constant 5.000000e-01 : f32
    %643 = vector.broadcast %cst_354 : f32 to vector<2x24xf32>
    %644 = arith.mulf %643, %642 : vector<2x24xf32>
    %645 = math.tanh %644 : vector<2x24xf32>
    %cst_355 = arith.constant 1.000000e+00 : f32
    %646 = vector.broadcast %cst_355 : f32 to vector<2x24xf32>
    %647 = arith.addf %645, %646 : vector<2x24xf32>
    %cst_356 = arith.constant 5.000000e-01 : f32
    %648 = vector.broadcast %cst_356 : f32 to vector<2x24xf32>
    %649 = arith.mulf %648, %647 : vector<2x24xf32>
    %650 = vector.extract_strided_slice %641 {offsets = [0, 24], sizes = [2, 24], strides = [1, 1]} : vector<2x96xf32> to vector<2x24xf32>
    %cst_357 = arith.constant 5.000000e-01 : f32
    %651 = vector.broadcast %cst_357 : f32 to vector<2x24xf32>
    %652 = arith.mulf %651, %650 : vector<2x24xf32>
    %653 = math.tanh %652 : vector<2x24xf32>
    %cst_358 = arith.constant 1.000000e+00 : f32
    %654 = vector.broadcast %cst_358 : f32 to vector<2x24xf32>
    %655 = arith.addf %653, %654 : vector<2x24xf32>
    %cst_359 = arith.constant 5.000000e-01 : f32
    %656 = vector.broadcast %cst_359 : f32 to vector<2x24xf32>
    %657 = arith.mulf %656, %655 : vector<2x24xf32>
    %658 = vector.extract_strided_slice %641 {offsets = [0, 48], sizes = [2, 24], strides = [1, 1]} : vector<2x96xf32> to vector<2x24xf32>
    %659 = math.tanh %658 : vector<2x24xf32>
    %660 = vector.extract_strided_slice %641 {offsets = [0, 72], sizes = [2, 24], strides = [1, 1]} : vector<2x96xf32> to vector<2x24xf32>
    %cst_360 = arith.constant 5.000000e-01 : f32
    %661 = vector.broadcast %cst_360 : f32 to vector<2x24xf32>
    %662 = arith.mulf %661, %660 : vector<2x24xf32>
    %663 = math.tanh %662 : vector<2x24xf32>
    %cst_361 = arith.constant 1.000000e+00 : f32
    %664 = vector.broadcast %cst_361 : f32 to vector<2x24xf32>
    %665 = arith.addf %663, %664 : vector<2x24xf32>
    %cst_362 = arith.constant 5.000000e-01 : f32
    %666 = vector.broadcast %cst_362 : f32 to vector<2x24xf32>
    %667 = arith.mulf %666, %665 : vector<2x24xf32>
    %668 = arith.mulf %657, %463 : vector<2x24xf32>
    %669 = arith.mulf %649, %659 : vector<2x24xf32>
    %670 = arith.addf %668, %669 : vector<2x24xf32>
    %671 = math.tanh %670 : vector<2x24xf32>
    %672 = arith.mulf %667, %671 : vector<2x24xf32>
    %673 = arith.truncf %672 : vector<2x24xf32> to vector<2x24xbf16>
    %c96_363 = arith.constant 96 : index
    %c0_364 = arith.constant 0 : index
    %674 = vector.load %arg1[%c96_363, %c0_364] : memref<1312x128xbf16, #tpu.memory_space<vmem>>, vector<24x24xbf16>
    %cst_365 = arith.constant dense<0.000000e+00> : vector<2x24xf32>
    %675 = tpu.matmul %673, %674, %cst_365 {dimension_numbers = #tpu.dot_dimension_numbers<[1], [0], [0], [1], [0, 0, 1, 1], [], []>} : vector<2x24xbf16>, vector<24x24xbf16>, vector<2x24xf32> -> vector<2x24xf32>
    %676 = arith.addf %633, %675 : vector<2x24xf32>
    %c1_366 = arith.constant 1 : index
    %c0_367 = arith.constant 0 : index
    %677 = vector.load %arg2[%c1_366, %c0_367] : memref<24x128xf32, #tpu.memory_space<vmem>>, vector<1x24xf32>
    %678 = vector.broadcast %677 : vector<1x24xf32> to vector<2x24xf32>
    %679 = arith.addf %676, %678 : vector<2x24xf32>
    %cst_368 = arith.constant 0.000000e+00 : f32
    %680 = vector.broadcast %cst_368 : f32 to vector<2x24xf32>
    %681 = arith.maximumf %679, %680 : vector<2x24xf32>
    %682 = arith.truncf %681 : vector<2x24xf32> to vector<2x24xbf16>
    %c128_369 = arith.constant 128 : index
    %c0_370 = arith.constant 0 : index
    %683 = vector.load %arg1[%c128_369, %c0_370] : memref<1312x128xbf16, #tpu.memory_space<vmem>>, vector<24x100xbf16>
    %cst_371 = arith.constant dense<0.000000e+00> : vector<2x100xf32>
    %684 = tpu.matmul %682, %683, %cst_371 {dimension_numbers = #tpu.dot_dimension_numbers<[1], [0], [0], [1], [0, 0, 1, 1], [], []>} : vector<2x24xbf16>, vector<24x100xbf16>, vector<2x100xf32> -> vector<2x100xf32>
    %c2_372 = arith.constant 2 : index
    %c0_373 = arith.constant 0 : index
    %685 = vector.load %arg2[%c2_372, %c0_373] : memref<24x128xf32, #tpu.memory_space<vmem>>, vector<1x100xf32>
    %686 = vector.broadcast %685 : vector<1x100xf32> to vector<2x100xf32>
    %687 = arith.addf %684, %686 : vector<2x100xf32>
    %688 = arith.truncf %687 : vector<2x100xf32> to vector<2x100xbf16>
    %c160_374 = arith.constant 160 : index
    %c0_375 = arith.constant 0 : index
    %689 = vector.load %arg1[%c160_374, %c0_375] : memref<1312x128xbf16, #tpu.memory_space<vmem>>, vector<100x16xbf16>
    %cst_376 = arith.constant dense<0.000000e+00> : vector<2x16xf32>
    %690 = tpu.matmul %688, %689, %cst_376 {dimension_numbers = #tpu.dot_dimension_numbers<[1], [0], [0], [1], [0, 0, 1, 1], [], []>} : vector<2x100xbf16>, vector<100x16xbf16>, vector<2x16xf32> -> vector<2x16xf32>
    %c3_377 = arith.constant 3 : index
    %c0_378 = arith.constant 0 : index
    %691 = vector.load %arg2[%c3_377, %c0_378] : memref<24x128xf32, #tpu.memory_space<vmem>>, vector<1x16xf32>
    %692 = vector.broadcast %691 : vector<1x16xf32> to vector<2x16xf32>
    %693 = arith.addf %690, %692 : vector<2x16xf32>
    %694 = arith.truncf %693 : vector<2x16xf32> to vector<2x16xbf16>
    %c272_379 = arith.constant 272 : index
    %c0_380 = arith.constant 0 : index
    %695 = vector.load %arg1[%c272_379, %c0_380] : memref<1312x128xbf16, #tpu.memory_space<vmem>>, vector<16x128xbf16>
    %cst_381 = arith.constant dense<0.000000e+00> : vector<2x128xf32>
    %696 = tpu.matmul %694, %695, %cst_381 {dimension_numbers = #tpu.dot_dimension_numbers<[1], [0], [0], [1], [0, 0, 1, 1], [], []>} : vector<2x16xbf16>, vector<16x128xbf16>, vector<2x128xf32> -> vector<2x128xf32>
    %c4_382 = arith.constant 4 : index
    %c0_383 = arith.constant 0 : index
    %697 = vector.load %arg2[%c4_382, %c0_383] : memref<24x128xf32, #tpu.memory_space<vmem>>, vector<1x128xf32>
    %698 = vector.broadcast %697 : vector<1x128xf32> to vector<2x128xf32>
    %699 = arith.addf %696, %698 : vector<2x128xf32>
    %700 = vector.extract_strided_slice %699 {offsets = [0, 0], sizes = [2, 32], strides = [1, 1]} : vector<2x128xf32> to vector<2x32xf32>
    %701 = arith.truncf %700 : vector<2x32xf32> to vector<2x32xbf16>
    %c320_384 = arith.constant 320 : index
    %c0_385 = arith.constant 0 : index
    %702 = vector.load %arg1[%c320_384, %c0_385] : memref<1312x128xbf16, #tpu.memory_space<vmem>>, vector<32x120xbf16>
    %cst_386 = arith.constant dense<0.000000e+00> : vector<2x120xf32>
    %703 = tpu.matmul %701, %702, %cst_386 {dimension_numbers = #tpu.dot_dimension_numbers<[1], [0], [0], [1], [0, 0, 1, 1], [], []>} : vector<2x32xbf16>, vector<32x120xbf16>, vector<2x120xf32> -> vector<2x120xf32>
    %704 = arith.truncf %700 : vector<2x32xf32> to vector<2x32xbf16>
    %c352_387 = arith.constant 352 : index
    %c0_388 = arith.constant 0 : index
    %705 = vector.load %arg1[%c352_387, %c0_388] : memref<1312x128xbf16, #tpu.memory_space<vmem>>, vector<32x88xbf16>
    %cst_389 = arith.constant dense<0.000000e+00> : vector<2x88xf32>
    %706 = tpu.matmul %704, %705, %cst_389 {dimension_numbers = #tpu.dot_dimension_numbers<[1], [0], [0], [1], [0, 0, 1, 1], [], []>} : vector<2x32xbf16>, vector<32x88xbf16>, vector<2x88xf32> -> vector<2x88xf32>
    %707 = arith.truncf %681 : vector<2x24xf32> to vector<2x24xbf16>
    %c288_390 = arith.constant 288 : index
    %c0_391 = arith.constant 0 : index
    %708 = vector.load %arg1[%c288_390, %c0_391] : memref<1312x128xbf16, #tpu.memory_space<vmem>>, vector<24x48xbf16>
    %cst_392 = arith.constant dense<0.000000e+00> : vector<2x48xf32>
    %709 = tpu.matmul %707, %708, %cst_392 {dimension_numbers = #tpu.dot_dimension_numbers<[1], [0], [0], [1], [0, 0, 1, 1], [], []>} : vector<2x24xbf16>, vector<24x48xbf16>, vector<2x48xf32> -> vector<2x48xf32>
    %710 = vector.extract_strided_slice %703 {offsets = [0, 0], sizes = [2, 48], strides = [1, 1]} : vector<2x120xf32> to vector<2x48xf32>
    %711 = arith.mulf %709, %710 : vector<2x48xf32>
    %712 = vector.extract_strided_slice %711 {offsets = [0, 0], sizes = [2, 16], strides = [1, 1]} : vector<2x48xf32> to vector<2x16xf32>
    %713 = arith.truncf %712 : vector<2x16xf32> to vector<2x16xbf16>
    %c384_393 = arith.constant 384 : index
    %c0_394 = arith.constant 0 : index
    %714 = vector.load %arg1[%c384_393, %c0_394] : memref<1312x128xbf16, #tpu.memory_space<vmem>>, vector<16x100xbf16>
    %cst_395 = arith.constant dense<0.000000e+00> : vector<2x100xf32>
    %715 = tpu.matmul %713, %714, %cst_395 {dimension_numbers = #tpu.dot_dimension_numbers<[1], [0], [0], [1], [0, 0, 1, 1], [], []>} : vector<2x16xbf16>, vector<16x100xbf16>, vector<2x100xf32> -> vector<2x100xf32>
    %c5_396 = arith.constant 5 : index
    %c0_397 = arith.constant 0 : index
    %716 = vector.load %arg2[%c5_396, %c0_397] : memref<24x128xf32, #tpu.memory_space<vmem>>, vector<1x100xf32>
    %717 = vector.broadcast %716 : vector<1x100xf32> to vector<2x100xf32>
    %718 = arith.addf %715, %717 : vector<2x100xf32>
    %719 = vector.extract_strided_slice %711 {offsets = [0, 16], sizes = [2, 16], strides = [1, 1]} : vector<2x48xf32> to vector<2x16xf32>
    %720 = arith.truncf %719 : vector<2x16xf32> to vector<2x16xbf16>
    %c400_398 = arith.constant 400 : index
    %c0_399 = arith.constant 0 : index
    %721 = vector.load %arg1[%c400_398, %c0_399] : memref<1312x128xbf16, #tpu.memory_space<vmem>>, vector<16x100xbf16>
    %cst_400 = arith.constant dense<0.000000e+00> : vector<2x100xf32>
    %722 = tpu.matmul %720, %721, %cst_400 {dimension_numbers = #tpu.dot_dimension_numbers<[1], [0], [0], [1], [0, 0, 1, 1], [], []>} : vector<2x16xbf16>, vector<16x100xbf16>, vector<2x100xf32> -> vector<2x100xf32>
    %c6_401 = arith.constant 6 : index
    %c0_402 = arith.constant 0 : index
    %723 = vector.load %arg2[%c6_401, %c0_402] : memref<24x128xf32, #tpu.memory_space<vmem>>, vector<1x100xf32>
    %724 = vector.broadcast %723 : vector<1x100xf32> to vector<2x100xf32>
    %725 = arith.addf %722, %724 : vector<2x100xf32>
    %726 = vector.extract_strided_slice %711 {offsets = [0, 32], sizes = [2, 16], strides = [1, 1]} : vector<2x48xf32> to vector<2x16xf32>
    %727 = arith.truncf %726 : vector<2x16xf32> to vector<2x16xbf16>
    %c416_403 = arith.constant 416 : index
    %c0_404 = arith.constant 0 : index
    %728 = vector.load %arg1[%c416_403, %c0_404] : memref<1312x128xbf16, #tpu.memory_space<vmem>>, vector<16x100xbf16>
    %cst_405 = arith.constant dense<0.000000e+00> : vector<2x100xf32>
    %729 = tpu.matmul %727, %728, %cst_405 {dimension_numbers = #tpu.dot_dimension_numbers<[1], [0], [0], [1], [0, 0, 1, 1], [], []>} : vector<2x16xbf16>, vector<16x100xbf16>, vector<2x100xf32> -> vector<2x100xf32>
    %c7_406 = arith.constant 7 : index
    %c0_407 = arith.constant 0 : index
    %730 = vector.load %arg2[%c7_406, %c0_407] : memref<24x128xf32, #tpu.memory_space<vmem>>, vector<1x100xf32>
    %731 = vector.broadcast %730 : vector<1x100xf32> to vector<2x100xf32>
    %732 = arith.addf %729, %731 : vector<2x100xf32>
    %733 = arith.truncf %718 : vector<2x100xf32> to vector<2x100xbf16>
    %c432_408 = arith.constant 432 : index
    %c0_409 = arith.constant 0 : index
    %734 = vector.load %arg1[%c432_408, %c0_409] : memref<1312x128xbf16, #tpu.memory_space<vmem>>, vector<100x48xbf16>
    %cst_410 = arith.constant dense<0.000000e+00> : vector<2x48xf32>
    %735 = tpu.matmul %733, %734, %cst_410 {dimension_numbers = #tpu.dot_dimension_numbers<[1], [0], [0], [1], [0, 0, 1, 1], [], []>} : vector<2x100xbf16>, vector<100x48xbf16>, vector<2x48xf32> -> vector<2x48xf32>
    %736 = arith.truncf %725 : vector<2x100xf32> to vector<2x100xbf16>
    %c544_411 = arith.constant 544 : index
    %c0_412 = arith.constant 0 : index
    %737 = vector.load %arg1[%c544_411, %c0_412] : memref<1312x128xbf16, #tpu.memory_space<vmem>>, vector<100x48xbf16>
    %cst_413 = arith.constant dense<0.000000e+00> : vector<2x48xf32>
    %738 = tpu.matmul %736, %737, %cst_413 {dimension_numbers = #tpu.dot_dimension_numbers<[1], [0], [0], [1], [0, 0, 1, 1], [], []>} : vector<2x100xbf16>, vector<100x48xbf16>, vector<2x48xf32> -> vector<2x48xf32>
    %739 = arith.addf %735, %738 : vector<2x48xf32>
    %740 = arith.truncf %732 : vector<2x100xf32> to vector<2x100xbf16>
    %c656_414 = arith.constant 656 : index
    %c0_415 = arith.constant 0 : index
    %741 = vector.load %arg1[%c656_414, %c0_415] : memref<1312x128xbf16, #tpu.memory_space<vmem>>, vector<100x48xbf16>
    %cst_416 = arith.constant dense<0.000000e+00> : vector<2x48xf32>
    %742 = tpu.matmul %740, %741, %cst_416 {dimension_numbers = #tpu.dot_dimension_numbers<[1], [0], [0], [1], [0, 0, 1, 1], [], []>} : vector<2x100xbf16>, vector<100x48xbf16>, vector<2x48xf32> -> vector<2x48xf32>
    %743 = arith.addf %739, %742 : vector<2x48xf32>
    %c8_417 = arith.constant 8 : index
    %c0_418 = arith.constant 0 : index
    %744 = vector.load %arg2[%c8_417, %c0_418] : memref<24x128xf32, #tpu.memory_space<vmem>>, vector<1x48xf32>
    %745 = vector.broadcast %744 : vector<1x48xf32> to vector<2x48xf32>
    %746 = arith.addf %743, %745 : vector<2x48xf32>
    %747 = vector.extract_strided_slice %703 {offsets = [0, 48], sizes = [2, 24], strides = [1, 1]} : vector<2x120xf32> to vector<2x24xf32>
    %748 = arith.mulf %681, %747 : vector<2x24xf32>
    %749 = arith.truncf %748 : vector<2x24xf32> to vector<2x24xbf16>
    %c768_419 = arith.constant 768 : index
    %c0_420 = arith.constant 0 : index
    %750 = vector.load %arg1[%c768_419, %c0_420] : memref<1312x128xbf16, #tpu.memory_space<vmem>>, vector<24x100xbf16>
    %cst_421 = arith.constant dense<0.000000e+00> : vector<2x100xf32>
    %751 = tpu.matmul %749, %750, %cst_421 {dimension_numbers = #tpu.dot_dimension_numbers<[1], [0], [0], [1], [0, 0, 1, 1], [], []>} : vector<2x24xbf16>, vector<24x100xbf16>, vector<2x100xf32> -> vector<2x100xf32>
    %752 = vector.extract_strided_slice %703 {offsets = [0, 72], sizes = [2, 48], strides = [1, 1]} : vector<2x120xf32> to vector<2x48xf32>
    %753 = arith.mulf %746, %752 : vector<2x48xf32>
    %754 = arith.truncf %753 : vector<2x48xf32> to vector<2x48xbf16>
    %c800_422 = arith.constant 800 : index
    %c0_423 = arith.constant 0 : index
    %755 = vector.load %arg1[%c800_422, %c0_423] : memref<1312x128xbf16, #tpu.memory_space<vmem>>, vector<48x100xbf16>
    %cst_424 = arith.constant dense<0.000000e+00> : vector<2x100xf32>
    %756 = tpu.matmul %754, %755, %cst_424 {dimension_numbers = #tpu.dot_dimension_numbers<[1], [0], [0], [1], [0, 0, 1, 1], [], []>} : vector<2x48xbf16>, vector<48x100xbf16>, vector<2x100xf32> -> vector<2x100xf32>
    %757 = arith.addf %751, %756 : vector<2x100xf32>
    %c9_425 = arith.constant 9 : index
    %c0_426 = arith.constant 0 : index
    %758 = vector.load %arg2[%c9_425, %c0_426] : memref<24x128xf32, #tpu.memory_space<vmem>>, vector<1x100xf32>
    %759 = vector.broadcast %758 : vector<1x100xf32> to vector<2x100xf32>
    %760 = arith.addf %757, %759 : vector<2x100xf32>
    %761 = arith.truncf %760 : vector<2x100xf32> to vector<2x100xbf16>
    %c848_427 = arith.constant 848 : index
    %c0_428 = arith.constant 0 : index
    %762 = vector.load %arg1[%c848_427, %c0_428] : memref<1312x128xbf16, #tpu.memory_space<vmem>>, vector<100x16xbf16>
    %cst_429 = arith.constant dense<0.000000e+00> : vector<2x16xf32>
    %763 = tpu.matmul %761, %762, %cst_429 {dimension_numbers = #tpu.dot_dimension_numbers<[1], [0], [0], [1], [0, 0, 1, 1], [], []>} : vector<2x100xbf16>, vector<100x16xbf16>, vector<2x16xf32> -> vector<2x16xf32>
    %c10_430 = arith.constant 10 : index
    %c0_431 = arith.constant 0 : index
    %764 = vector.load %arg2[%c10_430, %c0_431] : memref<24x128xf32, #tpu.memory_space<vmem>>, vector<1x16xf32>
    %765 = vector.broadcast %764 : vector<1x16xf32> to vector<2x16xf32>
    %766 = arith.addf %763, %765 : vector<2x16xf32>
    %767 = vector.extract_strided_slice %706 {offsets = [0, 0], sizes = [2, 24], strides = [1, 1]} : vector<2x88xf32> to vector<2x24xf32>
    %768 = arith.mulf %681, %767 : vector<2x24xf32>
    %769 = arith.truncf %768 : vector<2x24xf32> to vector<2x24xbf16>
    %c960_432 = arith.constant 960 : index
    %c0_433 = arith.constant 0 : index
    %770 = vector.load %arg1[%c960_432, %c0_433] : memref<1312x128xbf16, #tpu.memory_space<vmem>>, vector<24x100xbf16>
    %cst_434 = arith.constant dense<0.000000e+00> : vector<2x100xf32>
    %771 = tpu.matmul %769, %770, %cst_434 {dimension_numbers = #tpu.dot_dimension_numbers<[1], [0], [0], [1], [0, 0, 1, 1], [], []>} : vector<2x24xbf16>, vector<24x100xbf16>, vector<2x100xf32> -> vector<2x100xf32>
    %772 = vector.extract_strided_slice %706 {offsets = [0, 24], sizes = [2, 48], strides = [1, 1]} : vector<2x88xf32> to vector<2x48xf32>
    %773 = arith.mulf %746, %772 : vector<2x48xf32>
    %774 = arith.truncf %773 : vector<2x48xf32> to vector<2x48xbf16>
    %c992_435 = arith.constant 992 : index
    %c0_436 = arith.constant 0 : index
    %775 = vector.load %arg1[%c992_435, %c0_436] : memref<1312x128xbf16, #tpu.memory_space<vmem>>, vector<48x100xbf16>
    %cst_437 = arith.constant dense<0.000000e+00> : vector<2x100xf32>
    %776 = tpu.matmul %774, %775, %cst_437 {dimension_numbers = #tpu.dot_dimension_numbers<[1], [0], [0], [1], [0, 0, 1, 1], [], []>} : vector<2x48xbf16>, vector<48x100xbf16>, vector<2x100xf32> -> vector<2x100xf32>
    %777 = arith.addf %771, %776 : vector<2x100xf32>
    %778 = vector.extract_strided_slice %706 {offsets = [0, 72], sizes = [2, 16], strides = [1, 1]} : vector<2x88xf32> to vector<2x16xf32>
    %779 = arith.mulf %766, %778 : vector<2x16xf32>
    %780 = arith.truncf %779 : vector<2x16xf32> to vector<2x16xbf16>
    %c1040_438 = arith.constant 1040 : index
    %c0_439 = arith.constant 0 : index
    %781 = vector.load %arg1[%c1040_438, %c0_439] : memref<1312x128xbf16, #tpu.memory_space<vmem>>, vector<16x100xbf16>
    %cst_440 = arith.constant dense<0.000000e+00> : vector<2x100xf32>
    %782 = tpu.matmul %780, %781, %cst_440 {dimension_numbers = #tpu.dot_dimension_numbers<[1], [0], [0], [1], [0, 0, 1, 1], [], []>} : vector<2x16xbf16>, vector<16x100xbf16>, vector<2x100xf32> -> vector<2x100xf32>
    %783 = arith.addf %777, %782 : vector<2x100xf32>
    %c11_441 = arith.constant 11 : index
    %c0_442 = arith.constant 0 : index
    %784 = vector.load %arg2[%c11_441, %c0_442] : memref<24x128xf32, #tpu.memory_space<vmem>>, vector<1x100xf32>
    %785 = vector.broadcast %784 : vector<1x100xf32> to vector<2x100xf32>
    %786 = arith.addf %783, %785 : vector<2x100xf32>
    %787 = arith.truncf %786 : vector<2x100xf32> to vector<2x100xbf16>
    %c1056_443 = arith.constant 1056 : index
    %c0_444 = arith.constant 0 : index
    %788 = vector.load %arg1[%c1056_443, %c0_444] : memref<1312x128xbf16, #tpu.memory_space<vmem>>, vector<100x16xbf16>
    %cst_445 = arith.constant dense<0.000000e+00> : vector<2x16xf32>
    %789 = tpu.matmul %787, %788, %cst_445 {dimension_numbers = #tpu.dot_dimension_numbers<[1], [0], [0], [1], [0, 0, 1, 1], [], []>} : vector<2x100xbf16>, vector<100x16xbf16>, vector<2x16xf32> -> vector<2x16xf32>
    %c12_446 = arith.constant 12 : index
    %c0_447 = arith.constant 0 : index
    %790 = vector.load %arg2[%c12_446, %c0_447] : memref<24x128xf32, #tpu.memory_space<vmem>>, vector<1x16xf32>
    %791 = vector.broadcast %790 : vector<1x16xf32> to vector<2x16xf32>
    %792 = arith.addf %789, %791 : vector<2x16xf32>
    %793 = arith.truncf %792 : vector<2x16xf32> to vector<2x16xbf16>
    %c1168_448 = arith.constant 1168 : index
    %c0_449 = arith.constant 0 : index
    %794 = vector.load %arg1[%c1168_448, %c0_449] : memref<1312x128xbf16, #tpu.memory_space<vmem>>, vector<16x48xbf16>
    %cst_450 = arith.constant dense<0.000000e+00> : vector<2x48xf32>
    %795 = tpu.matmul %793, %794, %cst_450 {dimension_numbers = #tpu.dot_dimension_numbers<[1], [0], [0], [1], [0, 0, 1, 1], [], []>} : vector<2x16xbf16>, vector<16x48xbf16>, vector<2x48xf32> -> vector<2x48xf32>
    %c13_451 = arith.constant 13 : index
    %c0_452 = arith.constant 0 : index
    %796 = vector.load %arg2[%c13_451, %c0_452] : memref<24x128xf32, #tpu.memory_space<vmem>>, vector<1x48xf32>
    %797 = vector.broadcast %796 : vector<1x48xf32> to vector<2x48xf32>
    %798 = arith.addf %795, %797 : vector<2x48xf32>
    %799 = vector.extract_strided_slice %798 {offsets = [0, 0], sizes = [2, 16], strides = [1, 1]} : vector<2x48xf32> to vector<2x16xf32>
    %cst_453 = arith.constant 0.000000e+00 : f32
    %800 = vector.broadcast %cst_453 : f32 to vector<2x16xf32>
    %801 = arith.maximumf %799, %800 : vector<2x16xf32>
    %802 = arith.truncf %801 : vector<2x16xf32> to vector<2x16xbf16>
    %c1184_454 = arith.constant 1184 : index
    %c0_455 = arith.constant 0 : index
    %803 = vector.load %arg1[%c1184_454, %c0_455] : memref<1312x128xbf16, #tpu.memory_space<vmem>>, vector<16x16xbf16>
    %cst_456 = arith.constant dense<0.000000e+00> : vector<2x16xf32>
    %804 = tpu.matmul %802, %803, %cst_456 {dimension_numbers = #tpu.dot_dimension_numbers<[1], [0], [0], [1], [0, 0, 1, 1], [], []>} : vector<2x16xbf16>, vector<16x16xbf16>, vector<2x16xf32> -> vector<2x16xf32>
    %c14_457 = arith.constant 14 : index
    %c0_458 = arith.constant 0 : index
    %805 = vector.load %arg2[%c14_457, %c0_458] : memref<24x128xf32, #tpu.memory_space<vmem>>, vector<1x16xf32>
    %806 = vector.broadcast %805 : vector<1x16xf32> to vector<2x16xf32>
    %807 = arith.addf %804, %806 : vector<2x16xf32>
    %808 = math.tanh %807 : vector<2x16xf32>
    %809 = vector.extract_strided_slice %798 {offsets = [0, 16], sizes = [2, 32], strides = [1, 1]} : vector<2x48xf32> to vector<2x32xf32>
    %810 = arith.addf %809, %636 : vector<2x32xf32>
    %cst_459 = arith.constant 0.000000e+00 : f32
    %811 = vector.broadcast %cst_459 : f32 to vector<2x32xf32>
    %812 = arith.maximumf %810, %811 : vector<2x32xf32>
    %813 = arith.truncf %812 : vector<2x32xf32> to vector<2x32xbf16>
    %c1216_460 = arith.constant 1216 : index
    %c0_461 = arith.constant 0 : index
    %814 = vector.load %arg1[%c1216_460, %c0_461] : memref<1312x128xbf16, #tpu.memory_space<vmem>>, vector<32x32xbf16>
    %cst_462 = arith.constant dense<0.000000e+00> : vector<2x32xf32>
    %815 = tpu.matmul %813, %814, %cst_462 {dimension_numbers = #tpu.dot_dimension_numbers<[1], [0], [0], [1], [0, 0, 1, 1], [], []>} : vector<2x32xbf16>, vector<32x32xbf16>, vector<2x32xf32> -> vector<2x32xf32>
    %c15_463 = arith.constant 15 : index
    %c0_464 = arith.constant 0 : index
    %816 = vector.load %arg2[%c15_463, %c0_464] : memref<24x128xf32, #tpu.memory_space<vmem>>, vector<1x32xf32>
    %817 = vector.broadcast %816 : vector<1x32xf32> to vector<2x32xf32>
    %818 = arith.addf %815, %817 : vector<2x32xf32>
    %819 = vector.extract_strided_slice %818 {offsets = [0, 0], sizes = [2, 16], strides = [1, 1]} : vector<2x32xf32> to vector<2x16xf32>
    %cst_465 = arith.constant 5.000000e-01 : f32
    %820 = vector.broadcast %cst_465 : f32 to vector<2x16xf32>
    %821 = arith.mulf %820, %819 : vector<2x16xf32>
    %822 = math.tanh %821 : vector<2x16xf32>
    %cst_466 = arith.constant 1.000000e+00 : f32
    %823 = vector.broadcast %cst_466 : f32 to vector<2x16xf32>
    %824 = arith.addf %822, %823 : vector<2x16xf32>
    %cst_467 = arith.constant 5.000000e-01 : f32
    %825 = vector.broadcast %cst_467 : f32 to vector<2x16xf32>
    %826 = arith.mulf %825, %824 : vector<2x16xf32>
    %827 = vector.extract_strided_slice %818 {offsets = [0, 16], sizes = [2, 16], strides = [1, 1]} : vector<2x32xf32> to vector<2x16xf32>
    %cst_468 = arith.constant 5.000000e-01 : f32
    %828 = vector.broadcast %cst_468 : f32 to vector<2x16xf32>
    %829 = arith.mulf %828, %827 : vector<2x16xf32>
    %830 = math.tanh %829 : vector<2x16xf32>
    %cst_469 = arith.constant 1.000000e+00 : f32
    %831 = vector.broadcast %cst_469 : f32 to vector<2x16xf32>
    %832 = arith.addf %830, %831 : vector<2x16xf32>
    %cst_470 = arith.constant 5.000000e-01 : f32
    %833 = vector.broadcast %cst_470 : f32 to vector<2x16xf32>
    %834 = arith.mulf %833, %832 : vector<2x16xf32>
    %835 = arith.mulf %826, %630 : vector<2x16xf32>
    %836 = arith.mulf %834, %808 : vector<2x16xf32>
    %837 = arith.addf %835, %836 : vector<2x16xf32>
    %838 = arith.truncf %672 : vector<2x24xf32> to vector<2x24xbf16>
    %c1248 = arith.constant 1248 : index
    %c0_471 = arith.constant 0 : index
    %839 = vector.load %arg1[%c1248, %c0_471] : memref<1312x128xbf16, #tpu.memory_space<vmem>>, vector<24x16xbf16>
    %cst_472 = arith.constant dense<0.000000e+00> : vector<2x16xf32>
    %840 = tpu.matmul %838, %839, %cst_472 {dimension_numbers = #tpu.dot_dimension_numbers<[1], [0], [0], [1], [0, 0, 1, 1], [], []>} : vector<2x24xbf16>, vector<24x16xbf16>, vector<2x16xf32> -> vector<2x16xf32>
    %841 = arith.truncf %837 : vector<2x16xf32> to vector<2x16xbf16>
    %c1280 = arith.constant 1280 : index
    %c0_473 = arith.constant 0 : index
    %842 = vector.load %arg1[%c1280, %c0_473] : memref<1312x128xbf16, #tpu.memory_space<vmem>>, vector<16x16xbf16>
    %cst_474 = arith.constant dense<0.000000e+00> : vector<2x16xf32>
    %843 = tpu.matmul %841, %842, %cst_474 {dimension_numbers = #tpu.dot_dimension_numbers<[1], [0], [0], [1], [0, 0, 1, 1], [], []>} : vector<2x16xbf16>, vector<16x16xbf16>, vector<2x16xf32> -> vector<2x16xf32>
    %844 = arith.addf %840, %843 : vector<2x16xf32>
    %c16 = arith.constant 16 : index
    %c0_475 = arith.constant 0 : index
    %845 = vector.load %arg2[%c16, %c0_475] : memref<24x128xf32, #tpu.memory_space<vmem>>, vector<1x16xf32>
    %846 = vector.broadcast %845 : vector<1x16xf32> to vector<2x16xf32>
    %847 = arith.addf %844, %846 : vector<2x16xf32>
    %cst_476 = arith.constant 0.000000e+00 : f32
    %848 = vector.broadcast %cst_476 : f32 to vector<2x16xf32>
    %849 = arith.maximumf %847, %848 : vector<2x16xf32>
    %850 = arith.truncf %849 : vector<2x16xf32> to vector<2x16xbf16>
    %c1296 = arith.constant 1296 : index
    %c0_477 = arith.constant 0 : index
    %851 = vector.load %arg1[%c1296, %c0_477] : memref<1312x128xbf16, #tpu.memory_space<vmem>>, vector<16x128xbf16>
    %cst_478 = arith.constant dense<0.000000e+00> : vector<2x128xf32>
    %852 = tpu.matmul %850, %851, %cst_478 {dimension_numbers = #tpu.dot_dimension_numbers<[1], [0], [0], [1], [0, 0, 1, 1], [], []>} : vector<2x16xbf16>, vector<16x128xbf16>, vector<2x128xf32> -> vector<2x128xf32>
    %c17 = arith.constant 17 : index
    %c0_479 = arith.constant 0 : index
    %853 = vector.load %arg2[%c17, %c0_479] : memref<24x128xf32, #tpu.memory_space<vmem>>, vector<1x128xf32>
    %854 = vector.broadcast %853 : vector<1x128xf32> to vector<2x128xf32>
    %855 = arith.addf %852, %854 : vector<2x128xf32>
    %cst_480 = arith.constant 0.000000e+00 : f32
    %856 = vector.broadcast %cst_480 : f32 to vector<6x128xf32>
    %857 = tpu.concatenate %78, %285, %492, %699, %855, %856 in 0 : vector<2x128xf32>, vector<2x128xf32>, vector<2x128xf32>, vector<2x128xf32>, vector<2x128xf32>, vector<6x128xf32> -> vector<16x128xf32>
    %c0_481 = arith.constant 0 : index
    %c0_482 = arith.constant 0 : index
    %858 = vector.load %arg3[%c0_481, %c0_482] : memref<16x128xf32, #tpu.memory_space<vmem>>, vector<16x128xf32>
    tpu.vector_store %arg3[%c0_481, %c0_482], %857 {strides = array<i32>} : memref<16x128xf32, #tpu.memory_space<vmem>>, vector<16x128xf32>,
    return
  }
}

</mosaic_0001>

<bundles_post_ra>
// kernel: tpu_custom_call.1
= control target key start
LH: loop header
LB: loop body
LE: loop exit
PB: predicated region body
PF: predicated region fallthrough
CT: control target
= control target key end

     0   :  { %8 = vsyncpa [#allocation3], 0  ;;  %s9423_s0 = inlined_call_operand.hbm [shape: f32[8,32], index: 0, kind: input, shape index: {}]   ;;  %s9424_s1 = inlined_call_operand.hbm [shape: bf16[1312,128], index: 1, kind: input, shape index: {}]   ;;  %s9425_s2 = inlined_call_operand.hbm [shape: f32[24,128], index: 2, kind: input, shape index: {}]   ;;  %s9426_s3 = inlined_call_operand.hbm [shape: f32[16,128], index: 3, kind: output, shape index: {}]  }
   0x1   :  { %9 = vsyncpa [#allocation6], 0 }
   0x2   :  { %10 = vsyncpa [#allocation4], 0  ;;  %s7849_s12 = smov [#allocation5]  }
   0x3   :  { %s26_s13 = sshll.u32 %s7849_s12, 4  ;;  %s27_s13 = int_to_ptr.vmem [resolvable:$true] %s26_s13 }
   0x4   :  { %s7771_s14 = scalar_lea.vmem %s27_s13, 10496  ;;  %p7776_p1 = scmp.lt.s32.totalorder %s27_s13, %s27_s13 }
   0x5   :  { %p7772_p0 = scmp.ne.s32.totalorder %s27_s13, %s7771_s14  ;;  %p7777_p2 = scmp.lt.s32.totalorder %s7771_s14, %s7771_s14 }
   0x7   :  { %p7778_p3 = por %p7777_p2, %p7776_p1 }
   0x9   :  { %p7779_p4 = pnand %p7778_p3, %p7772_p0 }
   0xb   :  { %7782 = shalt.err (!%p7779_p4)
}
   0xc   :  { %s7850_s15 = smov 64   ;;  %s7851_s16 = smov 4  }
   0xd   :  { %32 = dma.hbm_to_vmem [thread:$0]  %s9424_s1, 10496, %s27_s13, [#allocation6], %s7850_s15, %s7850_s15, %s7851_s16  }
   0xe   :  { %s7852_s19 = smov [#allocation2]   ;;  %s7853_s21 = smov [#allocation7]  }
   0xf   :  { %s17_s20 = sshll.u32 %s7852_s19, 4  ;;  %s38_s22 = sshll.u32 %s7853_s21, 4  ;;  %s18_s20 = int_to_ptr.vmem [resolvable:$true] %s17_s20  ;;  %s39_s22 = int_to_ptr.vmem [resolvable:$true] %s38_s22 }
  0x10   :  { %s7791_s23 = scalar_lea.vmem %s18_s20, 128  ;;  %p7796_p6 = scmp.lt.s32.totalorder %s18_s20, %s18_s20 }
  0x11   :  { %p7792_p5 = scmp.ne.s32.totalorder %s18_s20, %s7791_s23  ;;  %p7797_p7 = scmp.lt.s32.totalorder %s7791_s23, %s7791_s23 }
  0x13   :  { %p7798_p8 = por %p7797_p7, %p7796_p6 }
  0x15   :  { %p7799_p9 = pnand %p7798_p8, %p7792_p5 }
  0x17   :  { %7802 = shalt.err (!%p7799_p9)
}
  0x18   :  { %20 = dma.hbm_to_vmem [thread:$0]  %s9423_s0, 128, %s18_s20, [#allocation3]  }
  0x19   :  { %s7811_s26 = scalar_lea.vmem %s39_s22, 384  ;;  %p7816_p11 = scmp.lt.s32.totalorder %s39_s22, %s39_s22 }
  0x1a   :  { %p7812_p10 = scmp.ne.s32.totalorder %s39_s22, %s7811_s26  ;;  %p7817_p12 = scmp.lt.s32.totalorder %s7811_s26, %s7811_s26 }
  0x1c   :  { %p7818_p13 = por %p7817_p12, %p7816_p11 }
  0x1e   :  { %p7819_p0 = pnand %p7818_p13, %p7812_p10 }
  0x20   :  { %7822 = shalt.err (!%p7819_p0)
}
  0x21   :  { %s7854_s1 = smov 128   ;;  %s7855_s27 = smov 8  }
  0x22   :  { %44 = dma.hbm_to_vmem [thread:$0]  %s9425_s2, 384, %s39_s22, [#allocation6], %s7854_s1, %s7854_s1, %s7855_s27  }
  0x23   :  { %7843 = dma.done.wait [#allocation3], 128  }
  0x24   :  { %7844 = vsyncadd [#allocation3], 4294967168 }
  0x25   :  { %7845 = dma.done.wait [#allocation6], 10880  }
  0x26   :  { %7846 = vsyncadd [#allocation6], 4294956416  ;;  %v9445_v0 = vmov 0.0   ;;  %vm7857_vm0 = vmmov 0   ;;  %v7559_v1 = vld [vmem:[#allocation5 + $0x8] sm:$0xff]   ;;  %v7560_v2 = vld [vmem:[#allocation5 + $0x258] sm:$0xff]  }
  0x27   :  { %6488 = vmatprep.subr.bf16.mxu0 %v9445_v0  ;;  %6496 = vmatprep.subr.bf16.mxu1 %v9445_v0  ;;  %v7561_v3 = vld [vmem:[#allocation5] sm:$0xff]   ;;  %vm192_vm1 = vcmask 1043456   ;;  %v7562_v4 = vld [vmem:[#allocation5 + $0x18] ss:$0 sps:$4 sm:$0xff]   ;;  %vm78_vm2 = vcmask 261120   ;;  %v7563_v8 = vld [vmem:[#allocation5 + $0x10] sm:$0xff]  }
  0x28   :  { %6498 = vmatprep.mubr.msk.bf16.mxu1 %vm7857_vm0, %v9445_v0  ;;  %6492 = vmatprep.mubr.msk.bf16.mxu0 %vm7857_vm0, %v9445_v0  ;;  %v55_v5 = vld [vmem:[#allocation2] sm:$0xff]  ;;  %v7909_v6 = vsel %vm192_vm1, %v7562_v4, 0  ;;  %v7858_v9 = vmov 0   ;;  %v5865_v12 = vld [vmem:[#allocation7] ss:$0 sm:$0xff]  ;;  %s7859_s0 = smov 80  }
  0x29   :  { %6489 = vmatpush3.bf16.msra.mxu0 %v7559_v1  ;;  %6497 = vmatpush3.bf16.msra.mxu1 %v7560_v2  ;;  %v56_v7 = vpack.c.bf16 %v55_v5, %v55_v5  ;;  %s7860_s2 = smov 24   ;;  %v7564_v35 = vld [vmem:[#allocation5 + $0x28] ss:$0 sps:$4 sm:$0xff]   ;;  %v7566_v36 = vld [vmem:[#allocation5 + $0x38] ss:$0 sps:$4 sm:$0xff]   ;;  %v7939_v39 = vld [vmem:[#allocation5 + $0x20] sm:$0xff]  }
  0x2a   :  { %6490 = vmatprep.subr.bf16.mxu0 %v9445_v0  ;;  %6502 = vmatprep.subr.bf16.mxu1 %v9445_v0  ;;  %v7933_v37 = vsel %vm192_vm1, %v7564_v35, 0  ;;  %v7936_v38 = vsel %vm192_vm1, %v7566_v36, 0  ;;  %v7567_v40 = vld [vmem:[#allocation5 + $0x30] sm:$0xff]   ;;  %s7861_s30 = smov 48   ;;  %s7862_s4 = smov 56   ;;  %vm189_vm3 = vcmask 195584  }
  0x2b   :  { %v7568_v50 = vld [vmem:[#allocation5 + $0x48] ss:$0 sps:$4 sm:$0xff]   ;;  %v7569_v52 = vld [vmem:[#allocation5 + $0x40] sm:$0xff]   ;;  %vm506_vm4 = vcmask 1041408   ;;  %v7967_v55 = vld [vmem:[#allocation5 + $0x78] sm:$0xff]   ;;  %vm502_vm5 = vcmask 818176  }
  0x2c   :  { %6499 = vmatmul.mubr.bf16.vlgmr.msra.gmra.mxu1 %v7858_v9  ;;  %v7958_v51 = vsel %vm192_vm1, %v7568_v50, 0  ;;  %v7570_v53 = vld [vmem:[#allocation5 + $0x80] ss:$0 sps:$4 sm:$0x33]   ;;  %v7971_v56 = vld [vmem:[#allocation5 + $0x70] sm:$0xff]   ;;  %v7975_v57 = vld [vmem:[#allocation5 + $0x68] sm:$0xff]  }
  0x2d   :  { %6491 = vmatpush3.bf16.msra.mxu0 %v7561_v3  ;;  %6503 = vmatpush3.bf16.msra.mxu1 %v7909_v6  ;;  %v7964_v54 = vsel %vm506_vm4, %v7570_v53, 0  ;;  %v7979_v58 = vld [vmem:[#allocation5 + $0x60] sm:$0xff]   ;;  %v7983_v59 = vld [vmem:[#allocation5 + $0x58] sm:$0xff]   ;;  %v7988_v61 = vld [vmem:[#allocation7 + $0x1] ss:$0 sm:$0xff]  ;;  %vm133_vm6 = vcmask 130048  }
  0x2e   :  { %6506 = vmatprep.mubr.msk.bf16.mxu1 %vm7857_vm0, %v9445_v0  ;;  %6504 = vmatprep.subr.bf16.mxu1 %v9445_v0  ;;  %v8037_v36 = vld [vmem:[#allocation5 + $0xb0] sm:$0xff]   ;;  %s7863_s5 = smov 96   ;;  %s7864_s6 = smov 112   ;;  %vm1295_vm7 = vcmask 392192   ;;  %vm5842_vm8 = vcmask 1045504  }
  0x2f   :  { %6510 = vmatprep.subr.bf16.mxu0 %v9445_v0  ;;  %s7865_s7 = smov 104   ;;  %s7866_s8 = smov 16  }
  0x30   :  { %6493 = vmatmul.mubr.msk.bf16.vlgmr.msra.gmra.mxu0 %vm78_vm2, %v56_v7  ;;  %v7998_v7 = vld [vmem:[#allocation5 + $0x50] sm:$0xff]   ;;  %s7867_s9 = smov [#allocation8]  }
  0x31   :  { %6514 = vmatprep.mubr.msk.bf16.mxu0 %vm7857_vm0, %v9445_v0  ;;  %6505 = vmatpush3.bf16.msra.mxu1 %v7563_v8  ;;  %v8002_v8 = vld [vmem:[#allocation5 + $0x88] sm:$0xff]   ;;  %s5852_s10 = sshll.u32 %s7867_s9, 4  ;;  %s5853_s10 = int_to_ptr.vmem [resolvable:$true] %s5852_s10 }
  0x32   :  { %6518 = vmatprep.subr.bf16.mxu1 %v9445_v0  ;;  %6511 = vmatpush3.bf16.msra.mxu0 %v7936_v38  ;;  %s7823_s11 = scalar_lea.vmem %s5853_s10, 256  ;;  %p7828_p2 = scmp.lt.s32.totalorder %s5853_s10, %s5853_s10 }
  0x33   :  { %6512 = vmatprep.subr.bf16.mxu0 %v9445_v0  ;;  %p7824_p1 = scmp.ne.s32.totalorder %s5853_s10, %s7823_s11  ;;  %p7829_p3 = scmp.lt.s32.totalorder %s7823_s11, %s7823_s11 }
  0x34   :  { %6507 = vmatmul.mubr.bf16.vlgmr.msra.gmra.mxu1 %v7858_v9 }
  0x35   :  { %6522 = vmatprep.mubr.msk.bf16.mxu1 %vm7857_vm0, %v9445_v0  ;;  %6519 = vmatpush3.bf16.msra.mxu1 %v7933_v37  ;;  %p7830_p4 = por %p7829_p3, %p7828_p2 }
  0x36   :  { %6520 = vmatprep.subr.bf16.mxu1 %v9445_v0  ;;  %6513 = vmatpush3.bf16.msra.mxu0 %v7567_v40  ;;  %v7582_v40 = vld [vmem:[#allocation5 + $0x98] ss:$0 sps:$4 sm:$0xff]  }
  0x37   :  { %6526 = vmatprep.subr.bf16.mxu0 %v9445_v0  ;;  %p7831_p5 = pnand %p7830_p4, %p7824_p1 }
  0x39   :  { %6521 = vmatpush3.bf16.msra.mxu1 %v7939_v39 }
  0x3a   :  { %6534 = vmatprep.subr.bf16.mxu1 %v9445_v0 }
  0x3c   :  { %6523 = vmatmul.mubr.bf16.vlgmr.msra.gmra.mxu1 %v7858_v9  ;;  %v8006_v9 = vld [vmem:[#allocation7 + $0x2] ss:$0 sm:$0xff] }
  0x3d   :  { %6548 = vmatprep.mubr.msk.bf16.mxu1 %vm7857_vm0, %v9445_v0  ;;  %6535 = vmatpush3.bf16.msra.mxu1 %v7964_v54 }
  0x3e   :  { %6536 = vmatprep.subr.bf16.mxu1 %v9445_v0 }
  0x41   :  { %6537 = vmatpush3.bf16.msra.mxu1 %v7967_v55 }
  0x42   :  { %6538 = vmatprep.subr.bf16.mxu1 %v9445_v0 }
  0x45   :  { %6539 = vmatpush3.bf16.msra.mxu1 %v7971_v56 }
  0x46   :  { %6540 = vmatprep.subr.bf16.mxu1 %v9445_v0 }
  0x49   :  { %6541 = vmatpush3.bf16.msra.mxu1 %v7975_v57 }
  0x4a   :  { %6542 = vmatprep.subr.bf16.mxu1 %v9445_v0 }
  0x4d   :  { %6543 = vmatpush3.bf16.msra.mxu1 %v7979_v58 }
  0x4e   :  { %6544 = vmatprep.subr.bf16.mxu1 %v9445_v0 }
  0x51   :  { %6545 = vmatpush3.bf16.msra.mxu1 %v7983_v59 }
  0x52   :  { %6546 = vmatprep.subr.bf16.mxu1 %v9445_v0 }
  0x55   :  { %6547 = vmatpush3.bf16.msra.mxu1 %v7998_v7 }
  0x56   :  { %6582 = vmatprep.subr.bf16.mxu1 %v9445_v0 }
  0xec   :  { %v7922_v10 = vpop.f32.mrf.mxu1 }
  0xee   :  { %v6500_v11 = vpop.f32.mrf.mxu1 }
  0xf0   :  { %v116_v13 = vpop.f32.mrf.mxu0  ;;  %v174_v14 = vpop.f32.mrf.mxu1 }
  0xf1   :  { %v7924_v15 = vadd.f32 %v5865_v12, %v116_v13 }
  0xf2   :  { %v6494_v16 = vpop.f32.mrf.mxu0  ;;  %v6501_v17 = vpop.f32.mrf.mxu1 }
  0xf4   :  { %v119_v18 = vpop.f32.mrf.mxu0  ;;  %v230_v19 = vpop.f32.mrf.mxu1 }
  0xf5   :  { %v236_v20 = vadd.f32 %v230_v19, %v7924_v15  ;;  %v8012_v18 = vld [vmem:[#allocation7 + $0x3] ss:$0 sm:$0xff] }
  0xf6   :  { %v6495_v21 = vpop.f32.mrf.mxu0  ;;  %v6508_v22 = vpop.f32.mrf.mxu1 }
  0xf7   :  { %7641 = vtanh.f32 %v236_v20  ;;  %v237_v26 = vmul.f32 0.5, %v236_v20  ;;  %v8015_v22 = vld [vmem:[#allocation5 + $0xa8] sm:$0xff]  }
  0xf8   :  { %v233_v23 = vpop.f32.mrf.mxu1 }
  0xf9   :  { %7643 = vtanh.f32 %v237_v26  ;;  %v8022_v26 = vld [vmem:[#allocation5 + $0xa0] sm:$0xff]  }
  0xfa   :  { %v6509_v24 = vpop.f32.mrf.mxu1 }
  0xfc   :  { %v367_v45 = vpop.f32.mrf.mxu1 }
  0xfe   :  { %v6524_v46 = vpop.f32.mrf.mxu1 }
 0x100   :  { %v370_v47 = vpop.f32.mrf.mxu1 }
 0x102   :  { %v6525_v48 = vpop.f32.mrf.mxu1 }
 0x104   :  { %v7642_v25 = vpop.eup %7641 }
 0x105   :  { %244 = vrot.lane.b32.xlu0 %v7642_v25, %s7859_s0 }
 0x106   :  { %v7644_v27 = vpop.eup %7643 }
 0x107   :  { %v239_v28 = vadd.f32 1.0, %v7644_v27  ;;  %v8026_v27 = vld [vmem:[#allocation7 + $0x4] ss:$0 sm:$0xff] }
 0x109   :  { %v240_v29 = vmul.f32 0.5, %v239_v28 }
 0x10b   :  { %v242_v32 = vmul.f32 0.0, %v240_v29 }
 0x177   :  { %v245_v30 = vpop.permute.xlu0 %244 }
 0x178   :  { %v247_v31 = vmul.f32 %v245_v30, %v240_v29 }
 0x17a   :  { %249 = vrot.lane.b32.xlu0 %v247_v31, %s7860_s2  ;;  %v8031_v31 = vld [vmem:[#allocation5 + $0xb8] sm:$0xff]  }
 0x1ec   :  { %v250_v33 = vpop.permute.xlu0 %249 }
 0x1ed   :  { %v7929_v34 = vadd.f32 %v250_v33, %v242_v32 }
 0x1ef   :  { %7645 = vtanh.f32 %v7929_v34 }
 0x1fc   :  { %v7646_v41 = vpop.eup %7645 }
 0x1fd   :  { %255 = vrot.lane.b32.xlu1 %v7646_v41, %s7861_s30  ;;  %v8045_v41 = vsel %vm192_vm1, %v7582_v40, 0  ;;  %v8146_v40 = vld [vmem:[#allocation5 + $0x110] sm:$0xff]  }
 0x26f   :  { %v256_v42 = vpop.permute.xlu1 %255 }
 0x270   :  { %v258_v43 = vmul.f32 %v256_v42, %v240_v29  ;;  %v8049_v42 = vld [vmem:[#allocation5 + $0x90] sm:$0xff]  }
 0x272   :  { %v259_v44 = vpack.c.bf16 %v258_v43, %v258_v43  ;;  %v8059_v43 = vld [vmem:[#allocation5 + $0xc0] sm:$0xff]  }
 0x274   :  { %264 = vrot.lane.b32.xlu1 %v259_v44, %s7862_s4  ;;  %v8063_v44 = vld [vmem:[#allocation5 + $0xc8] sm:$0xff]  }
 0x2e6   :  { %v7951_v49 = vpop.permute.xlu1 %264 }
 0x2e7   :  { %6515 = vmatmul.mubr.msk.bf16.vlgmr.msra.gmra.mxu0 %vm189_vm3, %v7951_v49 }
 0x2e8   :  { %6530 = vmatprep.mubr.msk.bf16.mxu0 %vm7857_vm0, %v9445_v0  ;;  %6527 = vmatpush3.bf16.msra.mxu0 %v7958_v51 }
 0x2e9   :  { %6528 = vmatprep.subr.bf16.mxu0 %v9445_v0 }
 0x2ec   :  { %6529 = vmatpush3.bf16.msra.mxu0 %v7569_v52 }
 0x2ed   :  { %6552 = vmatprep.subr.bf16.mxu0 %v9445_v0 }
 0x3a7   :  { %v315_v60 = vpop.f32.mrf.mxu0 }
 0x3a8   :  { %v368_v62 = vadd.f32 %v367_v45, %v315_v60 }
 0x3a9   :  { %v6516_v63 = vpop.f32.mrf.mxu0 }
 0x3aa   :  { %v378_v1 = vadd.f32 %v7988_v61, %v368_v62 }
 0x3ab   :  { %v318_v2 = vpop.f32.mrf.mxu0 }
 0x3ac   :  { %v7991_v3 = vmax.f32 %v378_v1, 0.0 }
 0x3ad   :  { %v6517_v4 = vpop.f32.mrf.mxu0 }
 0x3ae   :  { %v380_v5 = vpack.c.bf16 %v7991_v3, %v7991_v3  ;;  %v8069_v4 = vld [vmem:[#allocation5 + $0xd0] sm:$0xff]  }
 0x3b0   :  { %6531 = vmatmul.mubr.msk.bf16.vlgmr.msra.gmra.mxu0 %vm189_vm3, %v380_v5 }
 0x3b1   :  { %6554 = vmatprep.mubr.msk.bf16.mxu0 %vm7857_vm0, %v9445_v0  ;;  %6553 = vmatpush3.bf16.msra.mxu0 %v8002_v8 }
 0x3b2   :  { %6558 = vmatprep.subr.bf16.mxu0 %v9445_v0 }
 0x470   :  { %v438_v11 = vpop.f32.mrf.mxu0 }
 0x471   :  { %v439_v12 = vadd.f32 %v8006_v9, %v438_v11 }
 0x472   :  { %v6532_v13 = vpop.f32.mrf.mxu0 }
 0x473   :  { %v444_v14 = vpack.c.bf16 %v439_v12, %v439_v12  ;;  %v7587_v12 = vld [vmem:[#allocation5 + $0x108] ss:$0 sps:$4 sm:$0x33]   ;;  %v7594_v13 = vld [vmem:[#allocation5 + $0x140] ss:$0 sps:$4 sm:$0x33]  }
 0x474   :  { %v441_v16 = vpop.f32.mrf.mxu0 }
 0x475   :  { %6549 = vmatmul.mubr.msk.bf16.vlgmr.msra.gmra.mxu1 %vm502_vm5, %v444_v14  ;;  %v8087_v14 = vsel %vm506_vm4, %v7587_v12, 0 }
 0x476   :  { %v6533_v17 = vpop.f32.mrf.mxu0  ;;  %6584 = vmatprep.mubr.msk.bf16.mxu1 %vm7857_vm0, %v9445_v0  ;;  %6583 = vmatpush3.bf16.msra.mxu1 %v8059_v43 }
 0x477   :  { %6594 = vmatprep.subr.bf16.mxu1 %v9445_v0 }
 0x535   :  { %v544_v19 = vpop.f32.mrf.mxu1 }
 0x536   :  { %v545_v20 = vadd.f32 %v8012_v18, %v544_v19  ;;  %v8090_v19 = vsel %vm506_vm4, %v7594_v13, 0 }
 0x537   :  { %v6550_v21 = vpop.f32.mrf.mxu1 }
 0x538   :  { %v550_v23 = vpack.c.bf16 %v545_v20, %v545_v20  ;;  %v8095_v20 = vld [vmem:[#allocation5 + $0x100] sm:$0xff]   ;;  %v8107_v21 = vld [vmem:[#allocation5 + $0xf8] sm:$0xff]  }
 0x539   :  { %v547_v24 = vpop.f32.mrf.mxu1 }
 0x53a   :  { %6555 = vmatmul.mubr.msk.bf16.vlgmr.msra.gmra.mxu0 %vm133_vm6, %v550_v23  ;;  %v8111_v23 = vld [vmem:[#allocation5 + $0x130] sm:$0xff]  }
 0x53b   :  { %v6551_v25 = vpop.f32.mrf.mxu1  ;;  %6559 = vmatpush3.bf16.msra.mxu0 %v8015_v22  ;;  %6562 = vmatprep.mubr.msk.bf16.mxu0 %vm7857_vm0, %v9445_v0  ;;  %v8115_v24 = vld [vmem:[#allocation5 + $0xf0] sm:$0xff]  }
 0x53c   :  { %6560 = vmatprep.subr.bf16.mxu0 %v9445_v0  ;;  %v8119_v25 = vld [vmem:[#allocation5 + $0x128] sm:$0xff]  }
 0x53f   :  { %6561 = vmatpush3.bf16.msra.mxu0 %v8022_v26 }
 0x540   :  { %6566 = vmatprep.subr.bf16.mxu0 %v9445_v0 }
 0x5fa   :  { %v601_v28 = vpop.f32.mrf.mxu0 }
 0x5fb   :  { %v8029_v29 = vadd.f32 %v8026_v27, %v601_v28  ;;  %v8123_v28 = vld [vmem:[#allocation5 + $0xe8] sm:$0xff]  }
 0x5fc   :  { %v6556_v30 = vpop.f32.mrf.mxu0 }
 0x5fd   :  { %9508 = vst [vmem:[#allocation12_spill] sm:$0xff] %v8029_v29  ;;  %v607_v32 = vpack.c.bf16 %v8029_v29, %v8029_v29  ;;  %v8127_v30 = vld [vmem:[#allocation5 + $0x120] sm:$0xff]   ;;  %v8207_v29 = vld [vmem:[#allocation5 + $0x1f8] sm:$0xff]  }
 0x5fe   :  { %v604_v33 = vpop.f32.mrf.mxu0  ;;  %9522 = vst [vmem:[#allocation26_spill] sm:$0xff] %v8207_v29 }
 0x5ff   :  { %6563 = vmatmul.mubr.msk.bf16.vlgmr.msra.gmra.mxu0 %vm78_vm2, %v607_v32  ;;  %v8135_v33 = vld [vmem:[#allocation5 + $0x118] sm:$0xff]  }
 0x600   :  { %v6557_v35 = vpop.f32.mrf.mxu0  ;;  %6567 = vmatpush3.bf16.msra.mxu0 %v8031_v31  ;;  %6570 = vmatprep.mubr.msk.bf16.mxu0 %vm7857_vm0, %v9445_v0 }
 0x601   :  { %6568 = vmatprep.subr.bf16.mxu0 %v9445_v0  ;;  %v8139_v35 = vld [vmem:[#allocation5 + $0xd8] sm:$0xff]  }
 0x604   :  { %6569 = vmatpush3.bf16.msra.mxu0 %v8037_v36 }
 0x605   :  { %6574 = vmatprep.subr.bf16.mxu0 %v9445_v0 }
 0x607   :  { %6571 = vmatmul.mubr.msk.bf16.vlgmr.msra.gmra.mxu0 %vm78_vm2, %v607_v32  ;;  %v8131_v32 = vld [vmem:[#allocation5 + $0xe0] sm:$0xff]  }
 0x608   :  { %6575 = vmatpush3.bf16.msra.mxu0 %v8045_v41  ;;  %6578 = vmatprep.mubr.msk.bf16.mxu0 %vm7857_vm0, %v9445_v0 }
 0x609   :  { %6576 = vmatprep.subr.bf16.mxu0 %v9445_v0 }
 0x60c   :  { %6577 = vmatpush3.bf16.msra.mxu0 %v8049_v42 }
 0x60d   :  { %6588 = vmatprep.subr.bf16.mxu0 %v9445_v0 }
 0x60f   :  { %6579 = vmatmul.mubr.msk.bf16.vlgmr.msra.gmra.mxu0 %vm189_vm3, %v380_v5 }
 0x610   :  { %6590 = vmatprep.mubr.msk.bf16.mxu0 %vm7857_vm0, %v9445_v0  ;;  %6589 = vmatpush3.bf16.msra.mxu0 %v8063_v44 }
 0x611   :  { %6600 = vmatprep.subr.bf16.mxu0 %v9445_v0 }
 0x6bf   :  { %v661_v45 = vpop.f32.mrf.mxu0 }
 0x6c1   :  { %v6564_v46 = vpop.f32.mrf.mxu0 }
 0x6c3   :  { %v664_v47 = vpop.f32.mrf.mxu0 }
 0x6c5   :  { %v6565_v48 = vpop.f32.mrf.mxu0 }
 0x6c7   :  { %v8067_v50 = vpop.f32.mrf.mxu0 }
 0x6c9   :  { %v6572_v52 = vpop.f32.mrf.mxu0 }
 0x6cb   :  { %v720_v53 = vpop.f32.mrf.mxu0 }
 0x6cd   :  { %v6573_v60 = vpop.f32.mrf.mxu0 }
 0x6cf   :  { %v772_v62 = vpop.f32.mrf.mxu0 }
 0x6d0   :  { %v778_v63 = vmul.f32 %v772_v62, %v661_v45  ;;  %v8156_v62 = vld [vmem:[#allocation7 + $0x6] ss:$0 sm:$0xff] }
 0x6d1   :  { %v6580_v1 = vpop.f32.mrf.mxu0  ;;  %9510 = vst [vmem:[#allocation14_spill] sm:$0xff] %v8156_v62 }
 0x6d2   :  { %v779_v2 = vpack.c.bf16 %v778_v63, %v778_v63  ;;  %v7601_v63 = vld [vmem:[#allocation5 + $0x178] ss:$0 sps:$4 sm:$0x33]  }
 0x6d3   :  { %v775_v5 = vpop.f32.mrf.mxu0 }
 0x6d4   :  { %902 = vrot.lane.b32.xlu1 %v779_v2, %s7863_s5  ;;  %844 = vrot.lane.b32.xlu0 %v779_v2, %s7864_s6 }
 0x6d5   :  { %6585 = vmatmul.mubr.msk.bf16.vlgmr.msra.gmra.mxu1 %vm133_vm6, %v779_v2  ;;  %v6581_v11 = vpop.f32.mrf.mxu0 }
 0x6d6   :  { %6595 = vmatpush3.bf16.msra.mxu1 %v8069_v4  ;;  %6596 = vmatprep.mubr.msk.bf16.mxu1 %vm7857_vm0, %v9445_v0 }
 0x6d7   :  { %6618 = vmatprep.subr.bf16.mxu1 %v9445_v0 }
 0x6d8   :  { %1258 = vrot.lane.b32.xlu1 %v661_v45, %s7859_s0  ;;  %1266 = vrot.lane.b32.xlu0 %v661_v45, %s7862_s4  ;;  %v8150_v45 = vld [vmem:[#allocation7 + $0x5] ss:$0 sm:$0xff] }
 0x6d9   :  { %9509 = vst [vmem:[#allocation13_spill] sm:$0xff] %v8150_v45 }
 0x6dc   :  { %1637 = vrot.lane.b32.xlu1 %v8067_v50, %s7862_s4  ;;  %1510 = vrot.lane.b32.xlu0 %v8067_v50, %s7865_s7 }
 0x6e0   :  { %1921 = vrot.lane.b32.xlu0 %v7922_v10, %s7866_s8  ;;  %v8101_v10 = vld [vmem:[#allocation5 + $0x138] sm:$0xff]  }
 0x746   :  { %v903_v16 = vpop.permute.xlu1 %902  ;;  %v845_v17 = vpop.permute.xlu0 %844 }
 0x747   :  { %6591 = vmatmul.mubr.msk.bf16.vlgmr.msra.gmra.mxu0 %vm133_vm6, %v845_v17  ;;  %6597 = vmatmul.mubr.msk.bf16.vlgmr.msra.gmra.mxu1 %vm133_vm6, %v903_v16  ;;  %v8160_v16 = vsel %vm506_vm4, %v7601_v63, 0  ;;  %v8178_v63 = vld [vmem:[#allocation5 + $0x158] sm:$0xff]  }
 0x748   :  { %6619 = vmatpush3.bf16.msra.mxu1 %v8087_v14  ;;  %6632 = vmatprep.mubr.msk.bf16.mxu1 %vm7857_vm0, %v9445_v0  ;;  %9511 = vst [vmem:[#allocation15_spill] sm:$0xff] %v8160_v16  ;;  %9515 = vst [vmem:[#allocation19_spill] sm:$0xff] %v8178_v63 }
 0x749   :  { %6620 = vmatprep.subr.bf16.mxu1 %v9445_v0  ;;  %6601 = vmatpush3.bf16.msra.mxu0 %v8090_v19 }
 0x74a   :  { %6602 = vmatprep.subr.bf16.mxu0 %v9445_v0  ;;  %6614 = vmatprep.mubr.msk.bf16.mxu0 %vm7857_vm0, %v9445_v0 }
 0x74c   :  { %6621 = vmatpush3.bf16.msra.mxu1 %v8095_v20 }
 0x74d   :  { %6622 = vmatprep.subr.bf16.mxu1 %v9445_v0  ;;  %6603 = vmatpush3.bf16.msra.mxu0 %v8101_v10 }
 0x74e   :  { %6604 = vmatprep.subr.bf16.mxu0 %v9445_v0 }
 0x750   :  { %6623 = vmatpush3.bf16.msra.mxu1 %v8107_v21 }
 0x751   :  { %6624 = vmatprep.subr.bf16.mxu1 %v9445_v0  ;;  %6605 = vmatpush3.bf16.msra.mxu0 %v8111_v23 }
 0x752   :  { %6606 = vmatprep.subr.bf16.mxu0 %v9445_v0 }
 0x754   :  { %6625 = vmatpush3.bf16.msra.mxu1 %v8115_v24 }
 0x755   :  { %6626 = vmatprep.subr.bf16.mxu1 %v9445_v0  ;;  %6607 = vmatpush3.bf16.msra.mxu0 %v8119_v25 }
 0x756   :  { %6608 = vmatprep.subr.bf16.mxu0 %v9445_v0 }
 0x758   :  { %6627 = vmatpush3.bf16.msra.mxu1 %v8123_v28 }
 0x759   :  { %6628 = vmatprep.subr.bf16.mxu1 %v9445_v0  ;;  %6609 = vmatpush3.bf16.msra.mxu0 %v8127_v30 }
 0x75a   :  { %6610 = vmatprep.subr.bf16.mxu0 %v9445_v0 }
 0x75c   :  { %6629 = vmatpush3.bf16.msra.mxu1 %v8131_v32 }
 0x75d   :  { %6630 = vmatprep.subr.bf16.mxu1 %v9445_v0  ;;  %6611 = vmatpush3.bf16.msra.mxu0 %v8135_v33 }
 0x75e   :  { %6612 = vmatprep.subr.bf16.mxu0 %v9445_v0 }
 0x760   :  { %6631 = vmatpush3.bf16.msra.mxu1 %v8139_v35 }
 0x761   :  { %6654 = vmatprep.subr.bf16.mxu1 %v9445_v0  ;;  %6613 = vmatpush3.bf16.msra.mxu0 %v8146_v40 }
 0x762   :  { %6636 = vmatprep.subr.bf16.mxu0 %v9445_v0 }
 0x795   :  { %v830_v46 = vpop.f32.mrf.mxu1 }
 0x796   :  { %v831_v47 = vadd.f32 %v8150_v45, %v830_v46 }
 0x797   :  { %v6586_v48 = vpop.f32.mrf.mxu1 }
 0x798   :  { %v953_v52 = vpack.c.bf16 %v831_v47, %v831_v47 }
 0x799   :  { %v833_v53 = vpop.f32.mrf.mxu1 }
 0x79a   :  { %6633 = vmatmul.mubr.msk.bf16.vlgmr.msra.gmra.mxu1 %vm502_vm5, %v953_v52  ;;  %v8164_v52 = vld [vmem:[#allocation5 + $0x170] sm:$0xff]   ;;  %v8170_v53 = vld [vmem:[#allocation5 + $0x168] sm:$0xff]  }
 0x79b   :  { %v6587_v60 = vpop.f32.mrf.mxu1  ;;  %6660 = vmatprep.mubr.msk.bf16.mxu1 %vm7857_vm0, %v9445_v0  ;;  %9512 = vst [vmem:[#allocation16_spill] sm:$0xff] %v8164_v52  ;;  %9513 = vst [vmem:[#allocation17_spill] sm:$0xff] %v8170_v53 }
 0x79c   :  { %v8174_v60 = vld [vmem:[#allocation5 + $0x160] sm:$0xff]  }
 0x79d   :  { %9514 = vst [vmem:[#allocation18_spill] sm:$0xff] %v8174_v60 }
 0x807   :  { %v889_v1 = vpop.f32.mrf.mxu0  ;;  %v947_v2 = vpop.f32.mrf.mxu1 }
 0x808   :  { %v890_v5 = vadd.f32 %v8156_v62, %v889_v1  ;;  %v8182_v1 = vld [vmem:[#allocation5 + $0x150] sm:$0xff]   ;;  %v7614_v62 = vld [vmem:[#allocation5 + $0x188] ss:$0 sps:$4 sm:$0xff]  }
 0x809   :  { %v6592_v11 = vpop.f32.mrf.mxu0  ;;  %v6598_v12 = vpop.f32.mrf.mxu1  ;;  %9516 = vst [vmem:[#allocation20_spill] sm:$0xff] %v8182_v1 }
 0x80a   :  { %v967_v13 = vpack.c.bf16 %v890_v5, %v890_v5  ;;  %v8185_v5 = vld [vmem:[#allocation7 + $0x7] ss:$0 sm:$0xff]  ;;  %v8188_v11 = vld [vmem:[#allocation5 + $0x148] sm:$0xff]  }
 0x80b   :  { %v892_v17 = vpop.f32.mrf.mxu0  ;;  %v950_v46 = vpop.f32.mrf.mxu1  ;;  %9517 = vst [vmem:[#allocation21_spill] sm:$0xff] %v8185_v5  ;;  %9518 = vst [vmem:[#allocation22_spill] sm:$0xff] %v8188_v11  ;;  %v948_v12 = vadd.f32 %v8185_v5, %v947_v2 }
 0x80c   :  { %6615 = vmatmul.mubr.msk.bf16.vlgmr.msra.gmra.mxu0 %vm502_vm5, %v967_v13  ;;  %v8197_v17 = vld [vmem:[#allocation5 + $0x1a0] sm:$0xff]   ;;  %v1267_v5 = vpop.permute.xlu0 %1266 }
 0x80d   :  { %6637 = vmatpush3.bf16.msra.mxu0 %v8160_v16  ;;  %v6593_v47 = vpop.f32.mrf.mxu0  ;;  %v6599_v48 = vpop.f32.mrf.mxu1  ;;  %6650 = vmatprep.mubr.msk.bf16.mxu0 %vm7857_vm0, %v9445_v0  ;;  %v1151_v13 = vpack.c.bf16 %v948_v12, %v948_v12  ;;  %9519 = vst [vmem:[#allocation23_spill] sm:$0xff] %v8197_v17  ;;  %v8199_v46 = vld [vmem:[#allocation5 + $0x200] sm:$0xff]  }
 0x80e   :  { %6638 = vmatprep.subr.bf16.mxu0 %v9445_v0  ;;  %9520 = vst [vmem:[#allocation24_spill] sm:$0xff] %v8199_v46  ;;  %6655 = vmatpush3.bf16.msra.mxu1 %v8197_v17 }
 0x80f   :  { %6656 = vmatprep.subr.bf16.mxu1 %v9445_v0 }
 0x811   :  { %6639 = vmatpush3.bf16.msra.mxu0 %v8164_v52 }
 0x812   :  { %6640 = vmatprep.subr.bf16.mxu0 %v9445_v0 }
 0x815   :  { %6641 = vmatpush3.bf16.msra.mxu0 %v8170_v53 }
 0x816   :  { %6642 = vmatprep.subr.bf16.mxu0 %v9445_v0 }
 0x819   :  { %6643 = vmatpush3.bf16.msra.mxu0 %v8174_v60  ;;  %v8221_v60 = vld [vmem:[#allocation7 + $0x8] ss:$0 sm:$0xff] }
 0x81a   :  { %6644 = vmatprep.subr.bf16.mxu0 %v9445_v0  ;;  %9525 = vst [vmem:[#allocation29_spill] sm:$0xff] %v8221_v60 }
 0x81d   :  { %6645 = vmatpush3.bf16.msra.mxu0 %v8178_v63 }
 0x81e   :  { %6646 = vmatprep.subr.bf16.mxu0 %v9445_v0 }
 0x821   :  { %6647 = vmatpush3.bf16.msra.mxu0 %v8182_v1 }
 0x822   :  { %6648 = vmatprep.subr.bf16.mxu0 %v9445_v0 }
 0x825   :  { %6649 = vmatpush3.bf16.msra.mxu0 %v8188_v11  ;;  %v8215_v11 = vld [vmem:[#allocation5 + $0x1f0] sm:$0xff]  }
 0x826   :  { %6690 = vmatprep.subr.bf16.mxu0 %v9445_v0  ;;  %9524 = vst [vmem:[#allocation28_spill] sm:$0xff] %v8215_v11 }
 0x828   :  { %6651 = vmatmul.mubr.msk.bf16.vlgmr.msra.gmra.mxu0 %vm502_vm5, %v1151_v13  ;;  %v8205_v13 = vld [vmem:[#allocation5 + $0x198] sm:$0xff]  }
 0x829   :  { %6696 = vmatprep.mubr.msk.bf16.mxu0 %vm7857_vm0, %v9445_v0  ;;  %6691 = vmatpush3.bf16.msra.mxu0 %v8199_v46  ;;  %9521 = vst [vmem:[#allocation25_spill] sm:$0xff] %v8205_v13  ;;  %v8213_v46 = vld [vmem:[#allocation5 + $0x190] sm:$0xff]  }
 0x82a   :  { %6692 = vmatprep.subr.bf16.mxu0 %v9445_v0  ;;  %6657 = vmatpush3.bf16.msra.mxu1 %v8205_v13  ;;  %9523 = vst [vmem:[#allocation27_spill] sm:$0xff] %v8213_v46 }
 0x82b   :  { %6658 = vmatprep.subr.bf16.mxu1 %v9445_v0 }
 0x82d   :  { %6693 = vmatpush3.bf16.msra.mxu0 %v8207_v29 }
 0x82e   :  { %6694 = vmatprep.subr.bf16.mxu0 %v9445_v0  ;;  %6659 = vmatpush3.bf16.msra.mxu1 %v8213_v46  ;;  %v7615_v46 = vld [vmem:[#allocation5 + $0x1e8] ss:$0 sps:$4 sm:$0xff]  }
 0x82f   :  { %6664 = vmatprep.subr.bf16.mxu1 %v9445_v0 }
 0x831   :  { %6695 = vmatpush3.bf16.msra.mxu0 %v8215_v11  ;;  %v1511_v11 = vpop.permute.xlu0 %1510 }
 0x832   :  { %6700 = vmatprep.subr.bf16.mxu0 %v9445_v0 }
 0x85a   :  { %v1145_v2 = vpop.f32.mrf.mxu1 }
 0x85c   :  { %v6634_v47 = vpop.f32.mrf.mxu1 }
 0x85e   :  { %v1148_v48 = vpop.f32.mrf.mxu1 }
 0x860   :  { %v6635_v12 = vpop.f32.mrf.mxu1 }
 0x8cc   :  { %v1060_v47 = vpop.f32.mrf.mxu0 }
 0x8cd   :  { %v1146_v1 = vadd.f32 %v1145_v2, %v1060_v47  ;;  %v8228_v2 = vsel %vm192_vm1, %v7615_v46, 0  ;;  %v8274_v46 = vld [vmem:[#allocation5 + $0x1b8] sm:$0xff]   ;;  %v8282_v47 = vld [vmem:[#allocation5 + $0x1a8] sm:$0xff]  }
 0x8ce   :  { %v6616_v48 = vpop.f32.mrf.mxu0  ;;  %9527 = vst [vmem:[#allocation31_spill] sm:$0xff] %v8228_v2  ;;  %9535 = vst [vmem:[#allocation38_spill] sm:$0xff] %v8274_v46 }
 0x8cf   :  { %9537 = vst [vmem:[#allocation40_spill] sm:$0xff] %v8282_v47 }
 0x8d0   :  { %v1063_v12 = vpop.f32.mrf.mxu0 }
 0x8d2   :  { %v6617_v29 = vpop.f32.mrf.mxu0 }
 0x8d3   :  { %v8225_v29 = vsel %vm192_vm1, %v7614_v62, 0 }
 0x8d4   :  { %9526 = vst [vmem:[#allocation30_spill] sm:$0xff] %v8225_v29 }
 0x8e8   :  { %v1244_v63 = vpop.f32.mrf.mxu0 }
 0x8e9   :  { %v1250_v53 = vadd.f32 %v1244_v63, %v1146_v1  ;;  %v1259_v63 = vpop.permute.xlu1 %1258 }
 0x8ea   :  { %v6652_v52 = vpop.f32.mrf.mxu0  ;;  %v1261_v62 = vmul.f32 %v1259_v63, %v7991_v3 }
 0x8eb   :  { %v1256_v16 = vadd.f32 %v8221_v60, %v1250_v53  ;;  %v9530_v52 = vmov 0.0   ;;  %v7618_v53 = vld [vmem:[#allocation5 + $0x1d8] ss:$0 sps:$4 sm:$0x33]  }
 0x8ec   :  { %v1247_v13 = vpop.f32.mrf.mxu0 }
 0x8ed   :  { %v1269_v17 = vmul.f32 %v1267_v5, %v1256_v16  ;;  %v1513_v45 = vmul.f32 %v1511_v11, %v1256_v16  ;;  %v8234_v16 = vld [vmem:[#allocation5 + $0x180] sm:$0xff]   ;;  %v1262_v5 = vpack.c.bf16 %v1261_v62, %v1261_v62  ;;  %v8265_v11 = vld [vmem:[#allocation5 + $0x1c8] sm:$0xff]   ;;  %v8278_v13 = vld [vmem:[#allocation5 + $0x1b0] sm:$0xff]  }
 0x8ee   :  { %v6653_v0 = vpop.f32.mrf.mxu0  ;;  %9528 = vst [vmem:[#allocation32_spill] sm:$0xff] %v8234_v16  ;;  %9533 = vst [vmem:[#allocation36_spill] sm:$0xff] %v8265_v11 }
 0x8ef   :  { %v1270_v48 = vpack.c.bf16 %v1269_v17, %v1269_v17  ;;  %v1514_v12 = vpack.c.bf16 %v1513_v45, %v1513_v45  ;;  %v8236_v0 = vld [vmem:[#allocation5 + $0x1e0] sm:$0xff]   ;;  %v1504_v45 = vmul.f32 %v8067_v50, %v7991_v3  ;;  %v8251_v3 = vsel %vm506_vm4, %v7618_v53, 0  ;;  %v8257_v50 = vld [vmem:[#allocation5 + $0x1d0] sm:$0xff]   ;;  %9536 = vst [vmem:[#allocation39_spill] sm:$0xff] %v8278_v13 }
 0x8f0   :  { %9529 = vst [vmem:[#allocation33_spill] sm:$0xff] %v8236_v0  ;;  %9531 = vst [vmem:[#allocation34_spill] sm:$0xff] %v8251_v3  ;;  %v8270_v17 = vld [vmem:[#allocation5 + $0x1c0] sm:$0xff]  }
 0x8f1   :  { %6661 = vmatmul.mubr.msk.bf16.vlgmr.msra.gmra.mxu1 %vm1295_vm7, %v1270_v48  ;;  %6697 = vmatmul.mubr.msk.bf16.vlgmr.msra.gmra.mxu0 %vm1295_vm7, %v1514_v12  ;;  %v1505_v1 = vpack.c.bf16 %v1504_v45, %v1504_v45  ;;  %9532 = vst [vmem:[#allocation35_spill] sm:$0xff] %v8257_v50  ;;  %9534 = vst [vmem:[#allocation37_spill] sm:$0xff] %v8270_v17 }
 0x8f2   :  { %6665 = vmatpush3.bf16.msra.mxu1 %v8225_v29  ;;  %6701 = vmatpush3.bf16.msra.mxu0 %v8228_v2 }
 0x8f3   :  { %6666 = vmatprep.subr.bf16.mxu1 %v9530_v52  ;;  %6702 = vmatprep.subr.bf16.mxu0 %v9530_v52 }
 0x8f4   :  { %6668 = vmatprep.mubr.msk.bf16.mxu1 %vm7857_vm0, %v9530_v52  ;;  %6704 = vmatprep.mubr.msk.bf16.mxu0 %vm7857_vm0, %v9530_v52 }
 0x8f6   :  { %6667 = vmatpush3.bf16.msra.mxu1 %v8234_v16  ;;  %6703 = vmatpush3.bf16.msra.mxu0 %v8236_v0 }
 0x8f7   :  { %6672 = vmatprep.subr.bf16.mxu1 %v9530_v52  ;;  %6708 = vmatprep.subr.bf16.mxu0 %v9530_v52 }
 0x8f9   :  { %6669 = vmatmul.mubr.msk.bf16.vlgmr.msra.gmra.mxu1 %vm189_vm3, %v1262_v5  ;;  %6705 = vmatmul.mubr.msk.bf16.vlgmr.msra.gmra.mxu0 %vm189_vm3, %v1505_v1 }
 0x8fa   :  { %6673 = vmatpush3.bf16.msra.mxu1 %v8251_v3  ;;  %6686 = vmatprep.mubr.msk.bf16.mxu1 %vm7857_vm0, %v9530_v52 }
 0x8fb   :  { %6674 = vmatprep.subr.bf16.mxu1 %v9530_v52  ;;  %6710 = vmatprep.mubr.msk.bf16.mxu0 %vm7857_vm0, %v9530_v52 }
 0x8fe   :  { %6675 = vmatpush3.bf16.msra.mxu1 %v8257_v50 }
 0x8ff   :  { %6676 = vmatprep.subr.bf16.mxu1 %v9530_v52 }
 0x902   :  { %6677 = vmatpush3.bf16.msra.mxu1 %v8265_v11 }
 0x903   :  { %6678 = vmatprep.subr.bf16.mxu1 %v9530_v52 }
 0x906   :  { %6679 = vmatpush3.bf16.msra.mxu1 %v8270_v17  ;;  %v8286_v17 = vld [vmem:[#allocation7 + $0x9] ss:$0 sm:$0xff] }
 0x907   :  { %6680 = vmatprep.subr.bf16.mxu1 %v9530_v52 }
 0x90a   :  { %6681 = vmatpush3.bf16.msra.mxu1 %v8274_v46 }
 0x90b   :  { %6682 = vmatprep.subr.bf16.mxu1 %v9530_v52 }
 0x90e   :  { %6683 = vmatpush3.bf16.msra.mxu1 %v8278_v13 }
 0x90f   :  { %6684 = vmatprep.subr.bf16.mxu1 %v9530_v52 }
 0x912   :  { %6685 = vmatpush3.bf16.msra.mxu1 %v8282_v47 }
 0x913   :  { %6714 = vmatprep.subr.bf16.mxu1 %v9530_v52 }
 0x9b1   :  { %v1333_v48 = vpop.f32.mrf.mxu1  ;;  %v1576_v12 = vpop.f32.mrf.mxu0 }
 0x9b3   :  { %v6662_v63 = vpop.f32.mrf.mxu1  ;;  %v6698_v45 = vpop.f32.mrf.mxu0 }
 0x9b4   :  { %v8292_v45 = vld [vmem:[#allocation5 + $0x208] sm:$0xff]  }
 0x9b5   :  { %v1336_v62 = vpop.f32.mrf.mxu1  ;;  %v1579_v53 = vpop.f32.mrf.mxu0  ;;  %6709 = vmatpush3.bf16.msra.mxu0 %v8292_v45 }
 0x9b6   :  { %6732 = vmatprep.subr.bf16.mxu0 %v9530_v52 }
 0x9b7   :  { %v6663_v1 = vpop.f32.mrf.mxu1  ;;  %v6699_v5 = vpop.f32.mrf.mxu0 }
 0x9b8   :  { %v8323_v5 = vld [vmem:[#allocation5 + $0x218] sm:$0xff]  }
 0x9b9   :  { %v1388_v46 = vpop.f32.mrf.mxu1  ;;  %v1631_v13 = vpop.f32.mrf.mxu0  ;;  %9540 = vst [vmem:[#allocation43_spill] sm:$0xff] %v8323_v5 }
 0x9ba   :  { %v1389_v11 = vadd.f32 %v1388_v46, %v1333_v48  ;;  %v1632_v50 = vadd.f32 %v1631_v13, %v1576_v12 }
 0x9bb   :  { %v6670_v3 = vpop.f32.mrf.mxu1  ;;  %v6706_v0 = vpop.f32.mrf.mxu0 }
 0x9bc   :  { %v1399_v47 = vadd.f32 %v8286_v17, %v1389_v11  ;;  %v7626_v3 = vld [vmem:[#allocation5 + $0x240] ss:$0 sps:$4 sm:$0x33]   ;;  %v8317_v11 = vld [vmem:[#allocation7 + $0xa] ss:$0 sm:$0xff] }
 0x9bd   :  { %v1391_v16 = vpop.f32.mrf.mxu1  ;;  %v1634_v2 = vpop.f32.mrf.mxu0  ;;  %v8297_v0 = vsel %vm506_vm4, %v7626_v3, 0  ;;  %9539 = vst [vmem:[#allocation42_spill] sm:$0xff] %v8317_v11  ;;  %v8331_v3 = vld [vmem:[#allocation5 + $0x248] sm:$0xff]  }
 0x9be   :  { %v1400_v29 = vpack.c.bf16 %v1399_v47, %v1399_v47  ;;  %v8300_v2 = vld [vmem:[#allocation5 + $0x238] sm:$0xff]   ;;  %v8312_v16 = vld [vmem:[#allocation5 + $0x220] sm:$0xff]   ;;  %v1638_v47 = vpop.permute.xlu1 %1637  ;;  %9542 = vst [vmem:[#allocation45_spill] sm:$0xff] %v8331_v3 }
 0x9bf   :  { %v6671_v60 = vpop.f32.mrf.mxu1  ;;  %v6707_v63 = vpop.f32.mrf.mxu0  ;;  %9538 = vst [vmem:[#allocation41_spill] sm:$0xff] %v8312_v16 }
 0x9c0   :  { %6687 = vmatmul.mubr.msk.bf16.vlgmr.msra.gmra.mxu1 %vm502_vm5, %v1400_v29  ;;  %v8304_v60 = vld [vmem:[#allocation5 + $0x230] sm:$0xff]   ;;  %v8308_v29 = vld [vmem:[#allocation5 + $0x228] sm:$0xff]  }
 0x9c1   :  { %6728 = vmatprep.mubr.msk.bf16.mxu1 %vm7857_vm0, %v9530_v52  ;;  %6715 = vmatpush3.bf16.msra.mxu1 %v8297_v0  ;;  %v8327_v63 = vld [vmem:[#allocation5 + $0x210] sm:$0xff]  }
 0x9c2   :  { %6716 = vmatprep.subr.bf16.mxu1 %v9530_v52  ;;  %9541 = vst [vmem:[#allocation44_spill] sm:$0xff] %v8327_v63 }
 0x9c5   :  { %6717 = vmatpush3.bf16.msra.mxu1 %v8300_v2 }
 0x9c6   :  { %6718 = vmatprep.subr.bf16.mxu1 %v9530_v52 }
 0x9c9   :  { %6719 = vmatpush3.bf16.msra.mxu1 %v8304_v60 }
 0x9ca   :  { %6720 = vmatprep.subr.bf16.mxu1 %v9530_v52 }
 0x9cd   :  { %6721 = vmatpush3.bf16.msra.mxu1 %v8308_v29 }
 0x9ce   :  { %6722 = vmatprep.subr.bf16.mxu1 %v9530_v52 }
 0x9d1   :  { %6723 = vmatpush3.bf16.msra.mxu1 %v8312_v16 }
 0x9d2   :  { %6724 = vmatprep.subr.bf16.mxu1 %v9530_v52 }
 0x9d5   :  { %6725 = vmatpush3.bf16.msra.mxu1 %v8323_v5 }
 0x9d6   :  { %6726 = vmatprep.subr.bf16.mxu1 %v9530_v52 }
 0x9d9   :  { %6727 = vmatpush3.bf16.msra.mxu1 %v8327_v63 }
 0x9da   :  { %6752 = vmatprep.subr.bf16.mxu1 %v9530_v52 }
 0xa80   :  { %v1498_v46 = vpop.f32.mrf.mxu1 }
 0xa81   :  { %v1499_v13 = vadd.f32 %v8317_v11, %v1498_v46  ;;  %v8339_v11 = vld [vmem:[#allocation5 + $0x258] sm:$0xff]  }
 0xa82   :  { %v6688_v48 = vpop.f32.mrf.mxu1  ;;  %9544 = vst [vmem:[#allocation47_spill] sm:$0xff] %v8339_v11 }
 0xa83   :  { %v1640_v12 = vmul.f32 %v1638_v47, %v1499_v13  ;;  %v8335_v13 = vld [vmem:[#allocation7 + $0xb] ss:$0 sm:$0xff] }
 0xa84   :  { %v1501_v62 = vpop.f32.mrf.mxu1  ;;  %9543 = vst [vmem:[#allocation46_spill] sm:$0xff] %v8335_v13 }
 0xa85   :  { %v1641_v53 = vpack.c.bf16 %v1640_v12, %v1640_v12 }
 0xa86   :  { %v6689_v1 = vpop.f32.mrf.mxu1 }
 0xa87   :  { %6711 = vmatmul.mubr.msk.bf16.vlgmr.msra.gmra.mxu0 %vm133_vm6, %v1641_v53 }
 0xa88   :  { %6734 = vmatprep.mubr.msk.bf16.mxu0 %vm7857_vm0, %v9530_v52  ;;  %6733 = vmatpush3.bf16.msra.mxu0 %v8331_v3  ;;  %v8345_v3 = vld [vmem:[#allocation7 + $0xc] ss:$0 sm:$0xff] }
 0xa89   :  { %6738 = vmatprep.subr.bf16.mxu0 %v9530_v52  ;;  %9545 = vst [vmem:[#allocation48_spill] sm:$0xff] %v8345_v3 }
 0xb47   :  { %v1687_v46 = vpop.f32.mrf.mxu0 }
 0xb48   :  { %v1693_v47 = vadd.f32 %v1687_v46, %v1632_v50 }
 0xb49   :  { %v6712_v48 = vpop.f32.mrf.mxu0 }
 0xb4a   :  { %v1699_v12 = vadd.f32 %v8335_v13, %v1693_v47 }
 0xb4b   :  { %v1690_v62 = vpop.f32.mrf.mxu0 }
 0xb4c   :  { %v1700_v53 = vpack.c.bf16 %v1699_v12, %v1699_v12 }
 0xb4d   :  { %v6713_v1 = vpop.f32.mrf.mxu0 }
 0xb4e   :  { %6729 = vmatmul.mubr.msk.bf16.vlgmr.msra.gmra.mxu1 %vm502_vm5, %v1700_v53  ;;  %v8351_v53 = vld [vmem:[#allocation5 + $0x250] sm:$0xff]   ;;  %v8355_v1 = vld [vmem:[#allocation7 + $0xd] ss:$0 sm:$0xff] }
 0xb4f   :  { %6753 = vmatpush3.bf16.msra.mxu1 %v8339_v11  ;;  %6754 = vmatprep.mubr.msk.bf16.mxu1 %vm7857_vm0, %v9530_v52  ;;  %9546 = vst [vmem:[#allocation49_spill] sm:$0xff] %v8351_v53 }
 0xb50   :  { %6766 = vmatprep.subr.bf16.mxu1 %v9530_v52 }
 0xc0e   :  { %v1798_v50 = vpop.f32.mrf.mxu1 }
 0xc0f   :  { %v1799_v46 = vadd.f32 %v8345_v3, %v1798_v50 }
 0xc10   :  { %v6730_v47 = vpop.f32.mrf.mxu1 }
 0xc11   :  { %v1804_v48 = vpack.c.bf16 %v1799_v46, %v1799_v46  ;;  %v1922_v47 = vpop.permute.xlu0 %1921 }
 0xc12   :  { %v1801_v12 = vpop.f32.mrf.mxu1 }
 0xc13   :  { %6735 = vmatmul.mubr.msk.bf16.vlgmr.msra.gmra.mxu0 %vm133_vm6, %v1804_v48 }
 0xc14   :  { %v6731_v62 = vpop.f32.mrf.mxu1  ;;  %6740 = vmatprep.mubr.msk.bf16.mxu0 %vm7857_vm0, %v9530_v52  ;;  %6739 = vmatpush3.bf16.msra.mxu0 %v8351_v53  ;;  %v8362_v53 = vld [vmem:[#allocation5 + $0x260] sm:$0xff]  }
 0xc15   :  { %6744 = vmatprep.subr.bf16.mxu0 %v9530_v52  ;;  %v8358_v62 = vld [vmem:[#allocation5 + $0x268] sm:$0xff]  }
 0xcd3   :  { %v1855_v11 = vpop.f32.mrf.mxu0 }
 0xcd4   :  { %v1856_v50 = vadd.f32 %v8355_v1, %v1855_v11 }
 0xcd5   :  { %v6736_v46 = vpop.f32.mrf.mxu0 }
 0xcd6   :  { %v1861_v12 = vmax.f32 %v1856_v50, 0.0  ;;  %v1924_v3 = vadd.f32 %v1922_v47, %v1856_v50  ;;  %v8405_v50 = vld [vmem:[#allocation7 + $0xe] ss:$0 sm:$0xff] }
 0xcd7   :  { %v1858_v48 = vpop.f32.mrf.mxu0 }
 0xcd8   :  { %v1862_v13 = vpack.c.bf16 %v1861_v12, %v1861_v12  ;;  %v1925_v63 = vmax.f32 %v1924_v3, 0.0 }
 0xcd9   :  { %v6737_v5 = vpop.f32.mrf.mxu0 }
 0xcda   :  { %v1926_v16 = vpack.c.bf16 %v1925_v63, %v1925_v63  ;;  %6741 = vmatmul.mubr.msk.bf16.vlgmr.msra.gmra.mxu0 %vm133_vm6, %v1862_v13  ;;  %v8375_v5 = vld [vmem:[#allocation5 + $0x10] sm:$0xff]  }
 0xcdb   :  { %6745 = vmatpush3.bf16.msra.mxu0 %v8358_v62  ;;  %6748 = vmatprep.mubr.msk.bf16.mxu0 %vm7857_vm0, %v9530_v52 }
 0xcdc   :  { %1937 = vrot.lane.b32.xlu1 %v1926_v16, %s7864_s6  ;;  %6746 = vmatprep.subr.bf16.mxu0 %v9530_v52 }
 0xcdf   :  { %6747 = vmatpush3.bf16.msra.mxu0 %v8362_v53 }
 0xce0   :  { %6758 = vmatprep.subr.bf16.mxu0 %v9530_v52 }
 0xd4e   :  { %v1938_v11 = vpop.permute.xlu1 %1937 }
 0xd4f   :  { %6749 = vmatmul.mubr.msk.bf16.vlgmr.msra.gmra.mxu0 %vm78_vm2, %v1938_v11 }
 0xd50   :  { %6759 = vmatpush3.bf16.msra.mxu0 %v7909_v6  ;;  %6762 = vmatprep.mubr.msk.bf16.mxu0 %vm7857_vm0, %v9530_v52 }
 0xd51   :  { %6760 = vmatprep.subr.bf16.mxu0 %v9530_v52 }
 0xd54   :  { %6761 = vmatpush3.bf16.msra.mxu0 %v8375_v5 }
 0xd55   :  { %6774 = vmatprep.subr.bf16.mxu0 %v9530_v52 }
 0xd57   :  { %6763 = vmatmul.mubr.msk.bf16.vlgmr.msra.gmra.mxu0 %vm189_vm3, %v7951_v49 }
 0xd58   :  { %6775 = vmatpush3.bf16.msra.mxu0 %v7933_v37  ;;  %6778 = vmatprep.mubr.msk.bf16.mxu0 %vm7857_vm0, %v9530_v52 }
 0xd59   :  { %6776 = vmatprep.subr.bf16.mxu0 %v9530_v52 }
 0xd5c   :  { %6777 = vmatpush3.bf16.msra.mxu0 %v7939_v39 }
 0xd5d   :  { %6790 = vmatprep.subr.bf16.mxu0 %v9530_v52 }
 0xd5f   :  { %6779 = vmatmul.mubr.msk.bf16.vlgmr.msra.gmra.mxu0 %vm189_vm3, %v7951_v49 }
 0xd60   :  { %6791 = vmatpush3.bf16.msra.mxu0 %v7964_v54  ;;  %6804 = vmatprep.mubr.msk.bf16.mxu0 %vm7857_vm0, %v9530_v52 }
 0xd61   :  { %6792 = vmatprep.subr.bf16.mxu0 %v9530_v52 }
 0xd64   :  { %6793 = vmatpush3.bf16.msra.mxu0 %v7967_v55 }
 0xd65   :  { %6794 = vmatprep.subr.bf16.mxu0 %v9530_v52 }
 0xd68   :  { %6795 = vmatpush3.bf16.msra.mxu0 %v7971_v56 }
 0xd69   :  { %6796 = vmatprep.subr.bf16.mxu0 %v9530_v52 }
 0xd6c   :  { %6797 = vmatpush3.bf16.msra.mxu0 %v7975_v57 }
 0xd6d   :  { %6798 = vmatprep.subr.bf16.mxu0 %v9530_v52 }
 0xd70   :  { %6799 = vmatpush3.bf16.msra.mxu0 %v7979_v58 }
 0xd71   :  { %6800 = vmatprep.subr.bf16.mxu0 %v9530_v52 }
 0xd74   :  { %6801 = vmatpush3.bf16.msra.mxu0 %v7983_v59 }
 0xd75   :  { %6802 = vmatprep.subr.bf16.mxu0 %v9530_v52 }
 0xd78   :  { %6803 = vmatpush3.bf16.msra.mxu0 %v7998_v7 }
 0xd79   :  { %6830 = vmatprep.subr.bf16.mxu0 %v9530_v52 }
 0xd9a   :  { %v1913_v39 = vpop.f32.mrf.mxu0 }
 0xd9b   :  { %v1914_v7 = vadd.f32 %v8405_v50, %v1913_v39 }
 0xd9c   :  { %v6742_v49 = vpop.f32.mrf.mxu0 }
 0xd9e   :  { %v1916_v55 = vpop.f32.mrf.mxu0 }
 0xda0   :  { %v6743_v56 = vpop.f32.mrf.mxu0 }
 0xe0f   :  { %v1988_v16 = vpop.f32.mrf.mxu0 }
 0xe11   :  { %v6750_v57 = vpop.f32.mrf.mxu0 }
 0xe13   :  { %v1991_v63 = vpop.f32.mrf.mxu0 }
 0xe14   :  { %v8413_v63 = vld [vmem:[#allocation7 + $0xf] ss:$0 sm:$0xff] }
 0xe15   :  { %v6751_v3 = vpop.f32.mrf.mxu0 }
 0xe16   :  { %v1989_v3 = vadd.f32 %v8413_v63, %v1988_v16  ;;  %v2103_v16 = vrot.slane %v7929_v34, 6  ;;  %v8431_v34 = vld [vmem:[#allocation5 + $0x30] sm:$0xff]  }
 0xe17   :  { %v2087_v13 = vpop.f32.mrf.mxu0 }
 0xe18   :  { %v2094_v58 = vrot.slane %v2087_v13, 6  ;;  %v1994_v39 = vmul.f32 0.5, %v1989_v3 }
 0xe19   :  { %v6764_v47 = vpop.f32.mrf.mxu0 }
 0xe1a   :  { %v2096_v59 = vadd.f32 %v2094_v58, %v7924_v15 }
 0xe1b   :  { %v2090_v46 = vpop.f32.mrf.mxu0 }
 0xe1c   :  { %7647 = vtanh.f32 %v2096_v59  ;;  %v2097_v13 = vmul.f32 0.5, %v2096_v59 }
 0xe1d   :  { %v6765_v12 = vpop.f32.mrf.mxu0  ;;  %7649 = vtanh.f32 %v1914_v7 }
 0xe1e   :  { %7651 = vtanh.f32 %v2097_v13 }
 0xe1f   :  { %v8409_v48 = vpop.f32.mrf.mxu0  ;;  %7653 = vtanh.f32 %v1994_v39 }
 0xe21   :  { %v6780_v11 = vpop.f32.mrf.mxu0 }
 0xe23   :  { %v2207_v49 = vpop.f32.mrf.mxu0 }
 0xe25   :  { %v6781_v55 = vpop.f32.mrf.mxu0 }
 0xe29   :  { %v7648_v56 = vpop.eup %7647 }
 0xe2a   :  { %2107 = vrot.lane.b32.xlu0 %v7648_v56, %s7859_s0  ;;  %v7650_v57 = vpop.eup %7649 }
 0xe2b   :  { %v7652_v58 = vpop.eup %7651 }
 0xe2c   :  { %v2099_v47 = vadd.f32 1.0, %v7652_v58  ;;  %v7654_v46 = vpop.eup %7653 }
 0xe2d   :  { %v1996_v12 = vadd.f32 1.0, %v7654_v46 }
 0xe2e   :  { %2000 = vrot.lane.b32.xlu0 %v7650_v57, %s7866_s8  ;;  %v2100_v7 = vmul.f32 0.5, %v2099_v47 }
 0xe2f   :  { %v1997_v55 = vmul.f32 0.5, %v1996_v12 }
 0xe30   :  { %v2105_v59 = vmul.f32 %v2103_v16, %v2100_v7 }
 0xe31   :  { %v1998_v39 = vmul.f32 0.0, %v1997_v55 }
 0xe9c   :  { %v2108_v11 = vpop.permute.xlu0 %2107 }
 0xe9d   :  { %v2110_v49 = vmul.f32 %v2108_v11, %v2100_v7 }
 0xe9f   :  { %2112 = vrot.lane.b32.xlu1 %v2110_v49, %s7860_s2 }
 0xea0   :  { %v2001_v56 = vpop.permute.xlu0 %2000 }
 0xea1   :  { %v2003_v57 = vmul.f32 %v2001_v56, %v1997_v55 }
 0xea3   :  { %2005 = vrot.lane.b32.xlu0 %v2003_v57, %s7864_s6 }
 0xf11   :  { %v2113_v3 = vpop.permute.xlu1 %2112 }
 0xf12   :  { %v8419_v13 = vadd.f32 %v2113_v3, %v2105_v59 }
 0xf14   :  { %7655 = vtanh.f32 %v8419_v13 }
 0xf15   :  { %v2006_v58 = vpop.permute.xlu0 %2005 }
 0xf16   :  { %v8422_v47 = vadd.f32 %v2006_v58, %v1998_v39 }
 0xf18   :  { %v2009_v46 = vpack.c.bf16 %v8422_v47, %v8422_v47 }
 0xf1a   :  { %6755 = vmatmul.mubr.msk.bf16.vlgmr.msra.gmra.mxu1 %vm133_vm6, %v2009_v46 }
 0xf1b   :  { %6767 = vmatpush3.bf16.msra.mxu1 %v7936_v38  ;;  %6770 = vmatprep.mubr.msk.bf16.mxu1 %vm7857_vm0, %v9530_v52 }
 0xf1c   :  { %6768 = vmatprep.subr.bf16.mxu1 %v9530_v52 }
 0xf1f   :  { %6769 = vmatpush3.bf16.msra.mxu1 %v8431_v34 }
 0xf20   :  { %6782 = vmatprep.subr.bf16.mxu1 %v9530_v52 }
 0xf21   :  { %v7656_v12 = vpop.eup %7655 }
 0xf22   :  { %2118 = vrot.lane.b32.xlu1 %v7656_v12, %s7861_s30 }
 0xf94   :  { %v2119_v11 = vpop.permute.xlu1 %2118 }
 0xf95   :  { %v2121_v49 = vmul.f32 %v2119_v11, %v2100_v7  ;;  %v8447_v7 = vld [vmem:[#allocation5 + $0x40] sm:$0xff]  }
 0xf97   :  { %v2122_v55 = vpack.c.bf16 %v2121_v49, %v2121_v49 }
 0xf99   :  { %v2124_v56 = vrot.slane %v2122_v55, 1 }
 0xf9b   :  { %2125 = vrot.lane.b32.xlu1 %v2124_v56, %s7862_s4 }
 0xfda   :  { %v8437_v57 = vpop.f32.mrf.mxu1 }
 0xfdc   :  { %v6756_v16 = vpop.f32.mrf.mxu1 }
 0xfde   :  { %v2050_v59 = vpop.f32.mrf.mxu1 }
 0xfe0   :  { %v6757_v3 = vpop.f32.mrf.mxu1 }
0x100d   :  { %v8439_v39 = vpop.permute.xlu1 %2125 }
0x100e   :  { %6771 = vmatmul.mubr.msk.bf16.vlgmr.msra.gmra.mxu1 %vm189_vm3, %v8439_v39 }
0x100f   :  { %6783 = vmatpush3.bf16.msra.mxu1 %v7958_v51  ;;  %6786 = vmatprep.mubr.msk.bf16.mxu1 %vm7857_vm0, %v9530_v52 }
0x1010   :  { %6784 = vmatprep.subr.bf16.mxu1 %v9530_v52 }
0x1013   :  { %6785 = vmatpush3.bf16.msra.mxu1 %v8447_v7 }
0x1014   :  { %6808 = vmatprep.subr.bf16.mxu1 %v9530_v52 }
0x10ce   :  { %v2164_v58 = vpop.f32.mrf.mxu1 }
0x10cf   :  { %v2205_v46 = vadd.f32 %v8409_v48, %v2164_v58 }
0x10d0   :  { %v6772_v12 = vpop.f32.mrf.mxu1 }
0x10d1   :  { %v2210_v11 = vadd.f32 %v7988_v61, %v2205_v46 }
0x10d2   :  { %v2167_v49 = vpop.f32.mrf.mxu1 }
0x10d3   :  { %v8453_v55 = vmax.f32 %v2210_v11, 0.0 }
0x10d4   :  { %v6773_v56 = vpop.f32.mrf.mxu1 }
0x10d5   :  { %v2212_v16 = vpack.c.bf16 %v8453_v55, %v8453_v55 }
0x10d7   :  { %6787 = vmatmul.mubr.msk.bf16.vlgmr.msra.gmra.mxu1 %vm189_vm3, %v2212_v16 }
0x10d8   :  { %6809 = vmatpush3.bf16.msra.mxu1 %v8002_v8  ;;  %6810 = vmatprep.mubr.msk.bf16.mxu1 %vm7857_vm0, %v9530_v52 }
0x10d9   :  { %6814 = vmatprep.subr.bf16.mxu1 %v9530_v52 }
0x1197   :  { %v2250_v48 = vpop.f32.mrf.mxu1 }
0x1198   :  { %v2251_v59 = vadd.f32 %v8006_v9, %v2250_v48 }
0x1199   :  { %v6788_v61 = vpop.f32.mrf.mxu1 }
0x119a   :  { %v2256_v3 = vpack.c.bf16 %v2251_v59, %v2251_v59 }
0x119b   :  { %v2253_v58 = vpop.f32.mrf.mxu1 }
0x119c   :  { %6805 = vmatmul.mubr.msk.bf16.vlgmr.msra.gmra.mxu0 %vm502_vm5, %v2256_v3 }
0x119d   :  { %v6789_v46 = vpop.f32.mrf.mxu1  ;;  %6831 = vmatpush3.bf16.msra.mxu0 %v8045_v41  ;;  %6834 = vmatprep.mubr.msk.bf16.mxu0 %vm7857_vm0, %v9530_v52 }
0x119e   :  { %6832 = vmatprep.subr.bf16.mxu0 %v9530_v52 }
0x11a1   :  { %6833 = vmatpush3.bf16.msra.mxu0 %v8049_v42 }
0x11a2   :  { %6844 = vmatprep.subr.bf16.mxu0 %v9530_v52 }
0x11a4   :  { %6835 = vmatmul.mubr.msk.bf16.vlgmr.msra.gmra.mxu0 %vm189_vm3, %v2212_v16 }
0x11a5   :  { %6845 = vmatpush3.bf16.msra.mxu0 %v8063_v44  ;;  %6846 = vmatprep.mubr.msk.bf16.mxu0 %vm7857_vm0, %v9530_v52 }
0x11a6   :  { %6856 = vmatprep.subr.bf16.mxu0 %v9530_v52 }
0x125c   :  { %v2294_v8 = vpop.f32.mrf.mxu0 }
0x125d   :  { %v2295_v9 = vadd.f32 %v8012_v18, %v2294_v8 }
0x125e   :  { %v6806_v12 = vpop.f32.mrf.mxu0 }
0x125f   :  { %v2300_v11 = vpack.c.bf16 %v2295_v9, %v2295_v9 }
0x1260   :  { %v2297_v49 = vpop.f32.mrf.mxu0 }
0x1261   :  { %6811 = vmatmul.mubr.msk.bf16.vlgmr.msra.gmra.mxu1 %vm133_vm6, %v2300_v11 }
0x1262   :  { %v6807_v42 = vpop.f32.mrf.mxu0  ;;  %6815 = vmatpush3.bf16.msra.mxu1 %v8015_v22  ;;  %6818 = vmatprep.mubr.msk.bf16.mxu1 %vm7857_vm0, %v9530_v52 }
0x1263   :  { %6816 = vmatprep.subr.bf16.mxu1 %v9530_v52 }
0x1264   :  { %v2462_v44 = vpop.f32.mrf.mxu0 }
0x1266   :  { %v6836_v56 = vpop.f32.mrf.mxu0  ;;  %6817 = vmatpush3.bf16.msra.mxu1 %v8022_v26 }
0x1267   :  { %6822 = vmatprep.subr.bf16.mxu1 %v9530_v52 }
0x1268   :  { %v2465_v18 = vpop.f32.mrf.mxu0 }
0x126a   :  { %v6837_v16 = vpop.f32.mrf.mxu0 }
0x1321   :  { %v2338_v48 = vpop.f32.mrf.mxu1 }
0x1322   :  { %v8484_v59 = vadd.f32 %v8026_v27, %v2338_v48 }
0x1323   :  { %v6812_v61 = vpop.f32.mrf.mxu1 }
0x1324   :  { %v2344_v22 = vpack.c.bf16 %v8484_v59, %v8484_v59  ;;  %v9552_v61 = vld [vmem:[#allocation15_spill] sm:$0xff] }
0x1325   :  { %v2341_v3 = vpop.f32.mrf.mxu1 }
0x1326   :  { %6819 = vmatmul.mubr.msk.bf16.vlgmr.msra.gmra.mxu1 %vm78_vm2, %v2344_v22 }
0x1327   :  { %v6813_v58 = vpop.f32.mrf.mxu1  ;;  %6823 = vmatpush3.bf16.msra.mxu1 %v8031_v31  ;;  %6826 = vmatprep.mubr.msk.bf16.mxu1 %vm7857_vm0, %v9530_v52 }
0x1328   :  { %6824 = vmatprep.subr.bf16.mxu1 %v9530_v52  ;;  %v9553_v58 = vld [vmem:[#allocation16_spill] sm:$0xff] }
0x132b   :  { %6825 = vmatpush3.bf16.msra.mxu1 %v8037_v36 }
0x132c   :  { %6838 = vmatprep.subr.bf16.mxu1 %v9530_v52 }
0x132e   :  { %6827 = vmatmul.mubr.msk.bf16.vlgmr.msra.gmra.mxu1 %vm78_vm2, %v2344_v22 }
0x132f   :  { %6839 = vmatpush3.bf16.msra.mxu1 %v8059_v43  ;;  %6840 = vmatprep.mubr.msk.bf16.mxu1 %vm7857_vm0, %v9530_v52 }
0x1330   :  { %6850 = vmatprep.subr.bf16.mxu1 %v9530_v52 }
0x13e6   :  { %v2382_v26 = vpop.f32.mrf.mxu1 }
0x13e7   :  { %v2468_v27 = vmul.f32 %v2462_v44, %v2382_v26 }
0x13e8   :  { %v6820_v31 = vpop.f32.mrf.mxu1 }
0x13e9   :  { %v2469_v46 = vpack.c.bf16 %v2468_v27, %v2468_v27  ;;  %v9555_v27 = vld [vmem:[#allocation18_spill] sm:$0xff]  ;;  %v9556_v31 = vld [vmem:[#allocation19_spill] sm:$0xff] }
0x13ea   :  { %v2385_v8 = vpop.f32.mrf.mxu1 }
0x13eb   :  { %2559 = vrot.lane.b32.xlu1 %v2469_v46, %s7863_s5  ;;  %2514 = vrot.lane.b32.xlu0 %v2469_v46, %s7864_s6  ;;  %v9558_v8 = vld [vmem:[#allocation21_spill] sm:$0xff] }
0x13ec   :  { %6841 = vmatmul.mubr.msk.bf16.vlgmr.msra.gmra.mxu1 %vm133_vm6, %v2469_v46  ;;  %v6821_v36 = vpop.f32.mrf.mxu1  ;;  %v9557_v46 = vld [vmem:[#allocation20_spill] sm:$0xff] }
0x13ed   :  { %6851 = vmatpush3.bf16.msra.mxu1 %v8069_v4  ;;  %6852 = vmatprep.mubr.msk.bf16.mxu1 %vm7857_vm0, %v9530_v52 }
0x13ee   :  { %v8506_v43 = vpop.f32.mrf.mxu1  ;;  %6874 = vmatprep.subr.bf16.mxu1 %v9530_v52 }
0x13ef   :  { %2739 = vrot.lane.b32.xlu1 %v2382_v26, %s7859_s0  ;;  %2744 = vrot.lane.b32.xlu0 %v2382_v26, %s7862_s4  ;;  %v9554_v26 = vld [vmem:[#allocation17_spill] sm:$0xff] }
0x13f0   :  { %v6828_v9 = vpop.f32.mrf.mxu1 }
0x13f1   :  { %v9559_v9 = vld [vmem:[#allocation22_spill] sm:$0xff] }
0x13f2   :  { %v2425_v12 = vpop.f32.mrf.mxu1 }
0x13f3   :  { %2974 = vrot.lane.b32.xlu1 %v8506_v43, %s7862_s4  ;;  %2883 = vrot.lane.b32.xlu0 %v8506_v43, %s7865_s7 }
0x13f4   :  { %v6829_v4 = vpop.f32.mrf.mxu1 }
0x13f5   :  { %v9560_v4 = vld [vmem:[#allocation24_spill] sm:$0xff] }
0x13f7   :  { %3159 = vrot.lane.b32.xlu0 %v8437_v57, %s7866_s8  ;;  %v9551_v57 = vld [vmem:[#allocation14_spill] sm:$0xff] }
0x145d   :  { %v2560_v11 = vpop.permute.xlu1 %2559  ;;  %v2515_v49 = vpop.permute.xlu0 %2514 }
0x145e   :  { %6847 = vmatmul.mubr.msk.bf16.vlgmr.msra.gmra.mxu0 %vm133_vm6, %v2515_v49  ;;  %6853 = vmatmul.mubr.msk.bf16.vlgmr.msra.gmra.mxu1 %vm133_vm6, %v2560_v11  ;;  %v9561_v11 = vld [vmem:[#allocation26_spill] sm:$0xff]  ;;  %v9562_v49 = vld [vmem:[#allocation28_spill] sm:$0xff] }
0x145f   :  { %6875 = vmatpush3.bf16.msra.mxu1 %v8087_v14  ;;  %6888 = vmatprep.mubr.msk.bf16.mxu1 %vm7857_vm0, %v9530_v52 }
0x1460   :  { %6876 = vmatprep.subr.bf16.mxu1 %v9530_v52  ;;  %6857 = vmatpush3.bf16.msra.mxu0 %v8090_v19 }
0x1461   :  { %6858 = vmatprep.subr.bf16.mxu0 %v9530_v52  ;;  %6870 = vmatprep.mubr.msk.bf16.mxu0 %vm7857_vm0, %v9530_v52 }
0x1463   :  { %6877 = vmatpush3.bf16.msra.mxu1 %v8095_v20 }
0x1464   :  { %6878 = vmatprep.subr.bf16.mxu1 %v9530_v52  ;;  %6859 = vmatpush3.bf16.msra.mxu0 %v8101_v10  ;;  %v9547_v10 = vld [vmem:[#allocation13_spill] sm:$0xff] }
0x1465   :  { %6860 = vmatprep.subr.bf16.mxu0 %v9530_v52 }
0x1467   :  { %6879 = vmatpush3.bf16.msra.mxu1 %v8107_v21 }
0x1468   :  { %6880 = vmatprep.subr.bf16.mxu1 %v9530_v52  ;;  %6861 = vmatpush3.bf16.msra.mxu0 %v8111_v23 }
0x1469   :  { %6862 = vmatprep.subr.bf16.mxu0 %v9530_v52 }
0x146b   :  { %6881 = vmatpush3.bf16.msra.mxu1 %v8115_v24 }
0x146c   :  { %6882 = vmatprep.subr.bf16.mxu1 %v9530_v52  ;;  %6863 = vmatpush3.bf16.msra.mxu0 %v8119_v25 }
0x146d   :  { %6864 = vmatprep.subr.bf16.mxu0 %v9530_v52 }
0x146f   :  { %6883 = vmatpush3.bf16.msra.mxu1 %v8123_v28 }
0x1470   :  { %6884 = vmatprep.subr.bf16.mxu1 %v9530_v52  ;;  %6865 = vmatpush3.bf16.msra.mxu0 %v8127_v30  ;;  %v9548_v30 = vld [vmem:[#allocation23_spill] sm:$0xff] }
0x1471   :  { %6866 = vmatprep.subr.bf16.mxu0 %v9530_v52 }
0x1473   :  { %6885 = vmatpush3.bf16.msra.mxu1 %v8131_v32  ;;  %v9549_v32 = vld [vmem:[#allocation25_spill] sm:$0xff] }
0x1474   :  { %6886 = vmatprep.subr.bf16.mxu1 %v9530_v52  ;;  %6867 = vmatpush3.bf16.msra.mxu0 %v8135_v33  ;;  %v9550_v33 = vld [vmem:[#allocation27_spill] sm:$0xff] }
0x1475   :  { %6868 = vmatprep.subr.bf16.mxu0 %v9530_v52 }
0x1477   :  { %6887 = vmatpush3.bf16.msra.mxu1 %v8139_v35 }
0x1478   :  { %6869 = vmatpush3.bf16.msra.mxu0 %v8146_v40  ;;  %6910 = vmatprep.subr.bf16.mxu1 %v9530_v52 }
0x1479   :  { %6892 = vmatprep.subr.bf16.mxu0 %v9530_v52 }
0x14ac   :  { %v2507_v20 = vpop.f32.mrf.mxu1 }
0x14ad   :  { %v2508_v21 = vadd.f32 %v9547_v10, %v2507_v20 }
0x14ae   :  { %v6842_v23 = vpop.f32.mrf.mxu1 }
0x14af   :  { %v2604_v24 = vpack.c.bf16 %v2508_v21, %v2508_v21 }
0x14b0   :  { %v2510_v25 = vpop.f32.mrf.mxu1 }
0x14b1   :  { %6889 = vmatmul.mubr.msk.bf16.vlgmr.msra.gmra.mxu1 %vm502_vm5, %v2604_v24 }
0x14b2   :  { %v6843_v28 = vpop.f32.mrf.mxu1  ;;  %6911 = vmatpush3.bf16.msra.mxu1 %v9548_v30  ;;  %6916 = vmatprep.mubr.msk.bf16.mxu1 %vm7857_vm0, %v9530_v52 }
0x14b3   :  { %6912 = vmatprep.subr.bf16.mxu1 %v9530_v52 }
0x14b6   :  { %6913 = vmatpush3.bf16.msra.mxu1 %v9549_v32  ;;  %v2745_v32 = vpop.permute.xlu0 %2744 }
0x14b7   :  { %6914 = vmatprep.subr.bf16.mxu1 %v9530_v52 }
0x14ba   :  { %6915 = vmatpush3.bf16.msra.mxu1 %v9550_v33 }
0x14bb   :  { %6920 = vmatprep.subr.bf16.mxu1 %v9530_v52 }
0x151e   :  { %v2553_v35 = vpop.f32.mrf.mxu0  ;;  %v2598_v40 = vpop.f32.mrf.mxu1 }
0x151f   :  { %v2554_v42 = vadd.f32 %v9551_v57, %v2553_v35  ;;  %v2599_v36 = vadd.f32 %v9558_v8, %v2598_v40 }
0x1520   :  { %v6848_v44 = vpop.f32.mrf.mxu0  ;;  %v6854_v56 = vpop.f32.mrf.mxu1 }
0x1521   :  { %v2605_v18 = vpack.c.bf16 %v2554_v42, %v2554_v42  ;;  %v2692_v12 = vpack.c.bf16 %v2599_v36, %v2599_v36  ;;  %v9563_v42 = vld [vmem:[#allocation29_spill] sm:$0xff]  ;;  %v2884_v56 = vpop.permute.xlu0 %2883  ;;  %v9566_v36 = vld [vmem:[#allocation32_spill] sm:$0xff] }
0x1522   :  { %v2556_v16 = vpop.f32.mrf.mxu0  ;;  %v2601_v48 = vpop.f32.mrf.mxu1 }
0x1523   :  { %6871 = vmatmul.mubr.msk.bf16.vlgmr.msra.gmra.mxu0 %vm502_vm5, %v2605_v18 }
0x1524   :  { %6893 = vmatpush3.bf16.msra.mxu0 %v9552_v61  ;;  %v6849_v22 = vpop.f32.mrf.mxu0  ;;  %v6855_v3 = vpop.f32.mrf.mxu1  ;;  %6906 = vmatprep.mubr.msk.bf16.mxu0 %vm7857_vm0, %v9530_v52 }
0x1525   :  { %6894 = vmatprep.subr.bf16.mxu0 %v9530_v52 }
0x1528   :  { %6895 = vmatpush3.bf16.msra.mxu0 %v9553_v58 }
0x1529   :  { %6896 = vmatprep.subr.bf16.mxu0 %v9530_v52 }
0x152c   :  { %6897 = vmatpush3.bf16.msra.mxu0 %v9554_v26  ;;  %v2740_v26 = vpop.permute.xlu1 %2739 }
0x152d   :  { %6898 = vmatprep.subr.bf16.mxu0 %v9530_v52  ;;  %v2742_v8 = vmul.f32 %v2740_v26, %v8453_v55  ;;  %v9576_v26 = vld [vmem:[#allocation43_spill] sm:$0xff] }
0x1530   :  { %6899 = vmatpush3.bf16.msra.mxu0 %v9555_v27  ;;  %v9564_v27 = vld [vmem:[#allocation30_spill] sm:$0xff] }
0x1531   :  { %6900 = vmatprep.subr.bf16.mxu0 %v9530_v52 }
0x1534   :  { %6901 = vmatpush3.bf16.msra.mxu0 %v9556_v31  ;;  %v9565_v31 = vld [vmem:[#allocation31_spill] sm:$0xff] }
0x1535   :  { %6902 = vmatprep.subr.bf16.mxu0 %v9530_v52 }
0x1538   :  { %6903 = vmatpush3.bf16.msra.mxu0 %v9557_v46  ;;  %v2880_v46 = vmul.f32 %v8506_v43, %v8453_v55  ;;  %v9568_v55 = vld [vmem:[#allocation34_spill] sm:$0xff]  ;;  %v9569_v43 = vld [vmem:[#allocation35_spill] sm:$0xff] }
0x1539   :  { %6904 = vmatprep.subr.bf16.mxu0 %v9530_v52 }
0x153c   :  { %6905 = vmatpush3.bf16.msra.mxu0 %v9559_v9  ;;  %v9567_v9 = vld [vmem:[#allocation33_spill] sm:$0xff] }
0x153d   :  { %6946 = vmatprep.subr.bf16.mxu0 %v9530_v52 }
0x153f   :  { %6907 = vmatmul.mubr.msk.bf16.vlgmr.msra.gmra.mxu0 %vm502_vm5, %v2692_v12  ;;  %v2881_v12 = vpack.c.bf16 %v2880_v46, %v2880_v46  ;;  %v9577_v46 = vld [vmem:[#allocation44_spill] sm:$0xff] }
0x1540   :  { %6947 = vmatpush3.bf16.msra.mxu0 %v9560_v4  ;;  %6952 = vmatprep.mubr.msk.bf16.mxu0 %vm7857_vm0, %v9530_v52  ;;  %v2743_v4 = vpack.c.bf16 %v2742_v8, %v2742_v8 }
0x1541   :  { %6948 = vmatprep.subr.bf16.mxu0 %v9530_v52 }
0x1544   :  { %6949 = vmatpush3.bf16.msra.mxu0 %v9561_v11  ;;  %v9570_v11 = vld [vmem:[#allocation36_spill] sm:$0xff] }
0x1545   :  { %6950 = vmatprep.subr.bf16.mxu0 %v9530_v52 }
0x1548   :  { %6951 = vmatpush3.bf16.msra.mxu0 %v9562_v49  ;;  %v9571_v49 = vld [vmem:[#allocation37_spill] sm:$0xff] }
0x1549   :  { %6956 = vmatprep.subr.bf16.mxu0 %v9530_v52 }
0x1571   :  { %v2686_v20 = vpop.f32.mrf.mxu1 }
0x1573   :  { %v6890_v10 = vpop.f32.mrf.mxu1 }
0x1574   :  { %v9574_v10 = vld [vmem:[#allocation40_spill] sm:$0xff] }
0x1575   :  { %v2689_v21 = vpop.f32.mrf.mxu1 }
0x1577   :  { %v6891_v23 = vpop.f32.mrf.mxu1 }
0x15e3   :  { %v2643_v24 = vpop.f32.mrf.mxu0 }
0x15e4   :  { %v2687_v33 = vadd.f32 %v2686_v20, %v2643_v24  ;;  %v9572_v20 = vld [vmem:[#allocation38_spill] sm:$0xff] }
0x15e5   :  { %v6872_v25 = vpop.f32.mrf.mxu0 }
0x15e7   :  { %v2646_v28 = vpop.f32.mrf.mxu0 }
0x15e9   :  { %v6873_v30 = vpop.f32.mrf.mxu0 }
0x15ff   :  { %v2730_v35 = vpop.f32.mrf.mxu0 }
0x1600   :  { %v2736_v40 = vadd.f32 %v2730_v35, %v2687_v33 }
0x1601   :  { %v6908_v57 = vpop.f32.mrf.mxu0 }
0x1602   :  { %v2737_v44 = vadd.f32 %v9563_v42, %v2736_v40 }
0x1603   :  { %v2733_v18 = vpop.f32.mrf.mxu0 }
0x1604   :  { %v2747_v16 = vmul.f32 %v2745_v32, %v2737_v44  ;;  %v2886_v48 = vmul.f32 %v2884_v56, %v2737_v44 }
0x1605   :  { %v6909_v22 = vpop.f32.mrf.mxu0 }
0x1606   :  { %v2748_v3 = vpack.c.bf16 %v2747_v16, %v2747_v16  ;;  %v2887_v58 = vpack.c.bf16 %v2886_v48, %v2886_v48 }
0x1608   :  { %6917 = vmatmul.mubr.msk.bf16.vlgmr.msra.gmra.mxu1 %vm1295_vm7, %v2748_v3  ;;  %6953 = vmatmul.mubr.msk.bf16.vlgmr.msra.gmra.mxu0 %vm1295_vm7, %v2887_v58 }
0x1609   :  { %6921 = vmatpush3.bf16.msra.mxu1 %v9564_v27  ;;  %6957 = vmatpush3.bf16.msra.mxu0 %v9565_v31 }
0x160a   :  { %6922 = vmatprep.subr.bf16.mxu1 %v9530_v52  ;;  %6958 = vmatprep.subr.bf16.mxu0 %v9530_v52 }
0x160b   :  { %6924 = vmatprep.mubr.msk.bf16.mxu1 %vm7857_vm0, %v9530_v52  ;;  %6960 = vmatprep.mubr.msk.bf16.mxu0 %vm7857_vm0, %v9530_v52 }
0x160d   :  { %6923 = vmatpush3.bf16.msra.mxu1 %v9566_v36  ;;  %6959 = vmatpush3.bf16.msra.mxu0 %v9567_v9  ;;  %v2975_v36 = vpop.permute.xlu1 %2974 }
0x160e   :  { %6928 = vmatprep.subr.bf16.mxu1 %v9530_v52  ;;  %6964 = vmatprep.subr.bf16.mxu0 %v9530_v52 }
0x1610   :  { %6925 = vmatmul.mubr.msk.bf16.vlgmr.msra.gmra.mxu1 %vm189_vm3, %v2743_v4  ;;  %6961 = vmatmul.mubr.msk.bf16.vlgmr.msra.gmra.mxu0 %vm189_vm3, %v2881_v12 }
0x1611   :  { %6929 = vmatpush3.bf16.msra.mxu1 %v9568_v55  ;;  %6942 = vmatprep.mubr.msk.bf16.mxu1 %vm7857_vm0, %v9530_v52 }
0x1612   :  { %6930 = vmatprep.subr.bf16.mxu1 %v9530_v52  ;;  %6965 = vmatpush3.bf16.msra.mxu0 %v8292_v45  ;;  %v9573_v45 = vld [vmem:[#allocation39_spill] sm:$0xff] }
0x1613   :  { %6966 = vmatprep.mubr.msk.bf16.mxu0 %vm7857_vm0, %v9530_v52  ;;  %6988 = vmatprep.subr.bf16.mxu0 %v9530_v52 }
0x1615   :  { %6931 = vmatpush3.bf16.msra.mxu1 %v9569_v43 }
0x1616   :  { %6932 = vmatprep.subr.bf16.mxu1 %v9530_v52 }
0x1619   :  { %6933 = vmatpush3.bf16.msra.mxu1 %v9570_v11  ;;  %v9579_v11 = vld [vmem:[#allocation45_spill] sm:$0xff] }
0x161a   :  { %6934 = vmatprep.subr.bf16.mxu1 %v9530_v52 }
0x161d   :  { %6935 = vmatpush3.bf16.msra.mxu1 %v9571_v49 }
0x161e   :  { %6936 = vmatprep.subr.bf16.mxu1 %v9530_v52 }
0x1621   :  { %6937 = vmatpush3.bf16.msra.mxu1 %v9572_v20 }
0x1622   :  { %6938 = vmatprep.subr.bf16.mxu1 %v9530_v52 }
0x1625   :  { %6939 = vmatpush3.bf16.msra.mxu1 %v9573_v45 }
0x1626   :  { %6940 = vmatprep.subr.bf16.mxu1 %v9530_v52 }
0x1629   :  { %6941 = vmatpush3.bf16.msra.mxu1 %v9574_v10  ;;  %v9580_v10 = vld [vmem:[#allocation46_spill] sm:$0xff] }
0x162a   :  { %6970 = vmatprep.subr.bf16.mxu1 %v9530_v52 }
0x16c8   :  { %v2786_v21 = vpop.f32.mrf.mxu1  ;;  %v2925_v23 = vpop.f32.mrf.mxu0 }
0x16ca   :  { %v6918_v24 = vpop.f32.mrf.mxu1  ;;  %v6954_v25 = vpop.f32.mrf.mxu0 }
0x16cc   :  { %v2789_v28 = vpop.f32.mrf.mxu1  ;;  %v2928_v30 = vpop.f32.mrf.mxu0 }
0x16cd   :  { %v9581_v28 = vld [vmem:[#allocation47_spill] sm:$0xff] }
0x16ce   :  { %v6919_v32 = vpop.f32.mrf.mxu1  ;;  %v6955_v33 = vpop.f32.mrf.mxu0 }
0x16cf   :  { %v9582_v32 = vld [vmem:[#allocation48_spill] sm:$0xff] }
0x16d0   :  { %v2829_v35 = vpop.f32.mrf.mxu1  ;;  %v2968_v40 = vpop.f32.mrf.mxu0 }
0x16d1   :  { %v2830_v57 = vadd.f32 %v2829_v35, %v2786_v21  ;;  %v2969_v42 = vadd.f32 %v2968_v40, %v2925_v23 }
0x16d2   :  { %v6926_v44 = vpop.f32.mrf.mxu1  ;;  %v6962_v56 = vpop.f32.mrf.mxu0 }
0x16d3   :  { %v2835_v18 = vadd.f32 %v8286_v17, %v2830_v57  ;;  %v9575_v17 = vld [vmem:[#allocation41_spill] sm:$0xff] }
0x16d4   :  { %v2832_v16 = vpop.f32.mrf.mxu1  ;;  %v2971_v48 = vpop.f32.mrf.mxu0  ;;  %v9583_v44 = vld [vmem:[#allocation49_spill] sm:$0xff] }
0x16d5   :  { %v2836_v22 = vpack.c.bf16 %v2835_v18, %v2835_v18  ;;  %v3160_v16 = vpop.permute.xlu0 %3159 }
0x16d6   :  { %v6927_v3 = vpop.f32.mrf.mxu1  ;;  %v6963_v58 = vpop.f32.mrf.mxu0 }
0x16d7   :  { %6943 = vmatmul.mubr.msk.bf16.vlgmr.msra.gmra.mxu1 %vm502_vm5, %v2836_v22 }
0x16d8   :  { %6971 = vmatpush3.bf16.msra.mxu1 %v8297_v0  ;;  %6984 = vmatprep.mubr.msk.bf16.mxu1 %vm7857_vm0, %v9530_v52 }
0x16d9   :  { %6972 = vmatprep.subr.bf16.mxu1 %v9530_v52 }
0x16dc   :  { %6973 = vmatpush3.bf16.msra.mxu1 %v8300_v2 }
0x16dd   :  { %6974 = vmatprep.subr.bf16.mxu1 %v9530_v52 }
0x16e0   :  { %6975 = vmatpush3.bf16.msra.mxu1 %v8304_v60  ;;  %v9578_v60 = vld [vmem:[#allocation42_spill] sm:$0xff] }
0x16e1   :  { %6976 = vmatprep.subr.bf16.mxu1 %v9530_v52 }
0x16e4   :  { %6977 = vmatpush3.bf16.msra.mxu1 %v8308_v29 }
0x16e5   :  { %6978 = vmatprep.subr.bf16.mxu1 %v9530_v52 }
0x16e8   :  { %6979 = vmatpush3.bf16.msra.mxu1 %v9575_v17 }
0x16e9   :  { %6980 = vmatprep.subr.bf16.mxu1 %v9530_v52 }
0x16ec   :  { %6981 = vmatpush3.bf16.msra.mxu1 %v9576_v26 }
0x16ed   :  { %6982 = vmatprep.subr.bf16.mxu1 %v9530_v52 }
0x16f0   :  { %6983 = vmatpush3.bf16.msra.mxu1 %v9577_v46 }
0x16f1   :  { %7008 = vmatprep.subr.bf16.mxu1 %v9530_v52 }
0x1797   :  { %v2874_v2 = vpop.f32.mrf.mxu1 }
0x1798   :  { %v2875_v8 = vadd.f32 %v9578_v60, %v2874_v2  ;;  %v8709_v60 = vld [vmem:[#allocation5 + $0x60] sm:$0xff]  }
0x1799   :  { %v6944_v9 = vpop.f32.mrf.mxu1 }
0x179a   :  { %v2977_v29 = vmul.f32 %v2975_v36, %v2875_v8  ;;  %v8713_v8 = vld [vmem:[#allocation5 + $0x58] sm:$0xff]   ;;  %v8717_v36 = vld [vmem:[#allocation5 + $0x50] sm:$0xff]  }
0x179b   :  { %v2877_v12 = vpop.f32.mrf.mxu1 }
0x179c   :  { %v2978_v4 = vpack.c.bf16 %v2977_v29, %v2977_v29 }
0x179d   :  { %v6945_v43 = vpop.f32.mrf.mxu1 }
0x179e   :  { %6967 = vmatmul.mubr.msk.bf16.vlgmr.msra.gmra.mxu0 %vm133_vm6, %v2978_v4 }
0x179f   :  { %6989 = vmatpush3.bf16.msra.mxu0 %v9579_v11  ;;  %6990 = vmatprep.mubr.msk.bf16.mxu0 %vm7857_vm0, %v9530_v52 }
0x17a0   :  { %6994 = vmatprep.subr.bf16.mxu0 %v9530_v52 }
0x185e   :  { %v3016_v49 = vpop.f32.mrf.mxu0 }
0x185f   :  { %v3022_v20 = vadd.f32 %v3016_v49, %v2969_v42 }
0x1860   :  { %v6968_v45 = vpop.f32.mrf.mxu0 }
0x1861   :  { %v3023_v21 = vadd.f32 %v9580_v10, %v3022_v20 }
0x1862   :  { %v3019_v23 = vpop.f32.mrf.mxu0 }
0x1863   :  { %v3024_v24 = vpack.c.bf16 %v3023_v21, %v3023_v21 }
0x1864   :  { %v6969_v25 = vpop.f32.mrf.mxu0 }
0x1865   :  { %6985 = vmatmul.mubr.msk.bf16.vlgmr.msra.gmra.mxu1 %vm502_vm5, %v3024_v24 }
0x1866   :  { %7009 = vmatpush3.bf16.msra.mxu1 %v9581_v28  ;;  %7010 = vmatprep.mubr.msk.bf16.mxu1 %vm7857_vm0, %v9530_v52 }
0x1867   :  { %7022 = vmatprep.subr.bf16.mxu1 %v9530_v52 }
0x1925   :  { %v3062_v30 = vpop.f32.mrf.mxu1 }
0x1926   :  { %v3063_v33 = vadd.f32 %v9582_v32, %v3062_v30 }
0x1927   :  { %v6986_v35 = vpop.f32.mrf.mxu1 }
0x1928   :  { %v3068_v40 = vpack.c.bf16 %v3063_v33, %v3063_v33 }
0x1929   :  { %v3065_v57 = vpop.f32.mrf.mxu1 }
0x192a   :  { %6991 = vmatmul.mubr.msk.bf16.vlgmr.msra.gmra.mxu0 %vm133_vm6, %v3068_v40 }
0x192b   :  { %v6987_v42 = vpop.f32.mrf.mxu1  ;;  %6995 = vmatpush3.bf16.msra.mxu0 %v9583_v44  ;;  %6996 = vmatprep.mubr.msk.bf16.mxu0 %vm7857_vm0, %v9530_v52 }
0x192c   :  { %7000 = vmatprep.subr.bf16.mxu0 %v9530_v52 }
0x19ea   :  { %v3106_v56 = vpop.f32.mrf.mxu0 }
0x19eb   :  { %v3107_v18 = vadd.f32 %v8355_v1, %v3106_v56 }
0x19ec   :  { %v6992_v48 = vpop.f32.mrf.mxu0 }
0x19ed   :  { %v3112_v22 = vmax.f32 %v3107_v18, 0.0  ;;  %v3162_v3 = vadd.f32 %v3160_v16, %v3107_v18 }
0x19ee   :  { %v3109_v58 = vpop.f32.mrf.mxu0 }
0x19ef   :  { %v3113_v17 = vpack.c.bf16 %v3112_v22, %v3112_v22  ;;  %v3163_v26 = vmax.f32 %v3162_v3, 0.0 }
0x19f0   :  { %v6993_v46 = vpop.f32.mrf.mxu0 }
0x19f1   :  { %v3164_v2 = vpack.c.bf16 %v3163_v26, %v3163_v26  ;;  %6997 = vmatmul.mubr.msk.bf16.vlgmr.msra.gmra.mxu0 %vm133_vm6, %v3113_v17 }
0x19f2   :  { %7001 = vmatpush3.bf16.msra.mxu0 %v8358_v62  ;;  %7004 = vmatprep.mubr.msk.bf16.mxu0 %vm7857_vm0, %v9530_v52  ;;  %v8697_v62 = vld [vmem:[#allocation5 + $0x78] sm:$0xff]  }
0x19f3   :  { %3166 = vrot.lane.b32.xlu1 %v3164_v2, %s7864_s6  ;;  %7002 = vmatprep.subr.bf16.mxu0 %v9530_v52 }
0x19f6   :  { %7003 = vmatpush3.bf16.msra.mxu0 %v8362_v53  ;;  %v8687_v53 = vld [vmem:[#allocation5 + $0x20] sm:$0xff]  }
0x19f7   :  { %7014 = vmatprep.subr.bf16.mxu0 %v9530_v52 }
0x1a65   :  { %v3167_v1 = vpop.permute.xlu1 %3166 }
0x1a66   :  { %7005 = vmatmul.mubr.msk.bf16.vlgmr.msra.gmra.mxu0 %vm78_vm2, %v3167_v1 }
0x1a67   :  { %7015 = vmatpush3.bf16.msra.mxu0 %v7909_v6  ;;  %7018 = vmatprep.mubr.msk.bf16.mxu0 %vm7857_vm0, %v9530_v52 }
0x1a68   :  { %7016 = vmatprep.subr.bf16.mxu0 %v9530_v52 }
0x1a6b   :  { %7017 = vmatpush3.bf16.msra.mxu0 %v8375_v5  ;;  %v8701_v5 = vld [vmem:[#allocation5 + $0x70] sm:$0xff]  }
0x1a6c   :  { %7030 = vmatprep.subr.bf16.mxu0 %v9530_v52 }
0x1a6e   :  { %7019 = vmatmul.mubr.msk.bf16.vlgmr.msra.gmra.mxu0 %vm189_vm3, %v8439_v39 }
0x1a6f   :  { %7031 = vmatpush3.bf16.msra.mxu0 %v7933_v37  ;;  %7034 = vmatprep.mubr.msk.bf16.mxu0 %vm7857_vm0, %v9530_v52 }
0x1a70   :  { %7032 = vmatprep.subr.bf16.mxu0 %v9530_v52 }
0x1a73   :  { %7033 = vmatpush3.bf16.msra.mxu0 %v8687_v53 }
0x1a74   :  { %7046 = vmatprep.subr.bf16.mxu0 %v9530_v52 }
0x1a76   :  { %7035 = vmatmul.mubr.msk.bf16.vlgmr.msra.gmra.mxu0 %vm189_vm3, %v8439_v39  ;;  %v8705_v39 = vld [vmem:[#allocation5 + $0x68] sm:$0xff]  }
0x1a77   :  { %7047 = vmatpush3.bf16.msra.mxu0 %v7964_v54  ;;  %7060 = vmatprep.mubr.msk.bf16.mxu0 %vm7857_vm0, %v9530_v52 }
0x1a78   :  { %7048 = vmatprep.subr.bf16.mxu0 %v9530_v52 }
0x1a7b   :  { %7049 = vmatpush3.bf16.msra.mxu0 %v8697_v62 }
0x1a7c   :  { %7050 = vmatprep.subr.bf16.mxu0 %v9530_v52 }
0x1a7f   :  { %7051 = vmatpush3.bf16.msra.mxu0 %v8701_v5 }
0x1a80   :  { %7052 = vmatprep.subr.bf16.mxu0 %v9530_v52 }
0x1a83   :  { %7053 = vmatpush3.bf16.msra.mxu0 %v8705_v39 }
0x1a84   :  { %7054 = vmatprep.subr.bf16.mxu0 %v9530_v52 }
0x1a87   :  { %7055 = vmatpush3.bf16.msra.mxu0 %v8709_v60 }
0x1a88   :  { %7056 = vmatprep.subr.bf16.mxu0 %v9530_v52 }
0x1a8b   :  { %7057 = vmatpush3.bf16.msra.mxu0 %v8713_v8 }
0x1a8c   :  { %7058 = vmatprep.subr.bf16.mxu0 %v9530_v52 }
0x1a8f   :  { %7059 = vmatpush3.bf16.msra.mxu0 %v8717_v36 }
0x1a90   :  { %7086 = vmatprep.subr.bf16.mxu0 %v9530_v52 }
0x1ab1   :  { %v3151_v9 = vpop.f32.mrf.mxu0 }
0x1ab2   :  { %v3152_v25 = vadd.f32 %v8405_v50, %v3151_v9 }
0x1ab3   :  { %v6998_v29 = vpop.f32.mrf.mxu0 }
0x1ab5   :  { %v3154_v12 = vpop.f32.mrf.mxu0 }
0x1ab7   :  { %v6999_v4 = vpop.f32.mrf.mxu0 }
0x1b26   :  { %v3205_v43 = vpop.f32.mrf.mxu0 }
0x1b27   :  { %v3206_v42 = vadd.f32 %v8413_v63, %v3205_v43  ;;  %v3320_v63 = vrot.slane %v8419_v13, 6 }
0x1b28   :  { %v7006_v11 = vpop.f32.mrf.mxu0 }
0x1b29   :  { %v3211_v56 = vmul.f32 0.5, %v3206_v42 }
0x1b2a   :  { %v3208_v49 = vpop.f32.mrf.mxu0 }
0x1b2c   :  { %v7007_v20 = vpop.f32.mrf.mxu0 }
0x1b2e   :  { %v3304_v45 = vpop.f32.mrf.mxu0 }
0x1b2f   :  { %v3311_v10 = vrot.slane %v3304_v45, 4 }
0x1b30   :  { %v7020_v21 = vpop.f32.mrf.mxu0 }
0x1b31   :  { %v3313_v23 = vadd.f32 %v3311_v10, %v7924_v15 }
0x1b32   :  { %v3307_v24 = vpop.f32.mrf.mxu0 }
0x1b33   :  { %7657 = vtanh.f32 %v3313_v23  ;;  %v3314_v44 = vmul.f32 0.5, %v3313_v23 }
0x1b34   :  { %v7021_v28 = vpop.f32.mrf.mxu0  ;;  %7659 = vtanh.f32 %v3152_v25 }
0x1b35   :  { %7661 = vtanh.f32 %v3314_v44  ;;  %v8766_v44 = vld [vmem:[#allocation5 + $0x88] sm:$0xff]  }
0x1b36   :  { %v3421_v30 = vpop.f32.mrf.mxu0  ;;  %7663 = vtanh.f32 %v3211_v56 }
0x1b38   :  { %v7036_v32 = vpop.f32.mrf.mxu0 }
0x1b39   :  { %v8758_v32 = vld [vmem:[#allocation7 + $0x1] ss:$0 sm:$0xff] }
0x1b3a   :  { %v3424_v33 = vpop.f32.mrf.mxu0 }
0x1b3c   :  { %v7037_v35 = vpop.f32.mrf.mxu0 }
0x1b40   :  { %v7658_v40 = vpop.eup %7657 }
0x1b41   :  { %3324 = vrot.lane.b32.xlu0 %v7658_v40, %s7859_s0  ;;  %v7660_v57 = vpop.eup %7659 }
0x1b42   :  { %v7662_v50 = vpop.eup %7661 }
0x1b43   :  { %v3316_v18 = vadd.f32 1.0, %v7662_v50  ;;  %v7664_v16 = vpop.eup %7663 }
0x1b44   :  { %v3213_v22 = vadd.f32 1.0, %v7664_v16 }
0x1b45   :  { %3217 = vrot.lane.b32.xlu0 %v7660_v57, %s7866_s8  ;;  %v3317_v48 = vmul.f32 0.5, %v3316_v18 }
0x1b46   :  { %v3214_v17 = vmul.f32 0.5, %v3213_v22  ;;  %v8780_v22 = vld [vmem:[#allocation5 + $0x90] sm:$0xff]  }
0x1b47   :  { %v3322_v2 = vmul.f32 %v3320_v63, %v3317_v48 }
0x1b48   :  { %v3215_v29 = vmul.f32 %v3214_v17, %v8422_v47 }
0x1bb3   :  { %v3325_v3 = vpop.permute.xlu0 %3324 }
0x1bb4   :  { %v3327_v58 = vmul.f32 %v3325_v3, %v3317_v48  ;;  %v8785_v3 = vld [vmem:[#allocation5 + $0xc8] sm:$0xff]  }
0x1bb6   :  { %3329 = vrot.lane.b32.xlu1 %v3327_v58, %s7860_s2 }
0x1bb7   :  { %v3218_v26 = vpop.permute.xlu0 %3217 }
0x1bb8   :  { %v3220_v46 = vmul.f32 %v3218_v26, %v3214_v17  ;;  %v8791_v17 = vld [vmem:[#allocation7 + $0x3] ss:$0 sm:$0xff] }
0x1bba   :  { %3222 = vrot.lane.b32.xlu0 %v3220_v46, %s7864_s6 }
0x1c28   :  { %v3330_v1 = vpop.permute.xlu1 %3329 }
0x1c29   :  { %v8729_v9 = vadd.f32 %v3330_v1, %v3322_v2 }
0x1c2b   :  { %7665 = vtanh.f32 %v8729_v9 }
0x1c2c   :  { %v3223_v12 = vpop.permute.xlu0 %3222 }
0x1c2d   :  { %v8733_v4 = vadd.f32 %v3223_v12, %v3215_v29  ;;  %v8795_v29 = vld [vmem:[#allocation5 + $0xa8] sm:$0xff]  }
0x1c2f   :  { %v3226_v43 = vpack.c.bf16 %v8733_v4, %v8733_v4 }
0x1c31   :  { %7011 = vmatmul.mubr.msk.bf16.vlgmr.msra.gmra.mxu1 %vm133_vm6, %v3226_v43 }
0x1c32   :  { %7023 = vmatpush3.bf16.msra.mxu1 %v7936_v38  ;;  %7026 = vmatprep.mubr.msk.bf16.mxu1 %vm7857_vm0, %v9530_v52 }
0x1c33   :  { %7024 = vmatprep.subr.bf16.mxu1 %v9530_v52 }
0x1c36   :  { %7025 = vmatpush3.bf16.msra.mxu1 %v8431_v34 }
0x1c37   :  { %7038 = vmatprep.subr.bf16.mxu1 %v9530_v52 }
0x1c38   :  { %v7666_v13 = vpop.eup %7665 }
0x1c39   :  { %3335 = vrot.lane.b32.xlu1 %v7666_v13, %s7861_s30  ;;  %v8801_v13 = vld [vmem:[#allocation5 + $0xa0] sm:$0xff]  }
0x1cab   :  { %v3336_v47 = vpop.permute.xlu1 %3335 }
0x1cac   :  { %v3338_v11 = vmul.f32 %v3336_v47, %v3317_v48 }
0x1cae   :  { %v3339_v49 = vpack.c.bf16 %v3338_v11, %v3338_v11 }
0x1cb0   :  { %v3341_v20 = vrot.slane %v3339_v49, 2  ;;  %v5832_v49 = vrot.slane %v8484_v59, 6  ;;  %v8821_v59 = vld [vmem:[#allocation5 + $0xb0] sm:$0xff]  }
0x1cb2   :  { %3342 = vrot.lane.b32.xlu1 %v3341_v20, %s7862_s4 }
0x1cf1   :  { %v8746_v45 = vpop.f32.mrf.mxu1 }
0x1cf3   :  { %v7012_v10 = vpop.f32.mrf.mxu1 }
0x1cf4   :  { %v8806_v10 = vld [vmem:[#allocation7 + $0x4] ss:$0 sm:$0xff] }
0x1cf5   :  { %v3267_v21 = vpop.f32.mrf.mxu1 }
0x1cf7   :  { %v7013_v23 = vpop.f32.mrf.mxu1 }
0x1d24   :  { %v8748_v24 = vpop.permute.xlu1 %3342 }
0x1d25   :  { %7027 = vmatmul.mubr.msk.bf16.vlgmr.msra.gmra.mxu1 %vm189_vm3, %v8748_v24 }
0x1d26   :  { %7039 = vmatpush3.bf16.msra.mxu1 %v7958_v51  ;;  %7042 = vmatprep.mubr.msk.bf16.mxu1 %vm7857_vm0, %v9530_v52 }
0x1d27   :  { %7040 = vmatprep.subr.bf16.mxu1 %v9530_v52 }
0x1d2a   :  { %7041 = vmatpush3.bf16.msra.mxu1 %v8447_v7 }
0x1d2b   :  { %7064 = vmatprep.subr.bf16.mxu1 %v9530_v52 }
0x1de5   :  { %v3381_v34 = vpop.f32.mrf.mxu1 }
0x1de6   :  { %v3422_v25 = vadd.f32 %v3421_v30, %v3381_v34  ;;  %v8772_v30 = vld [vmem:[#allocation7 + $0x2] ss:$0 sm:$0xff] }
0x1de7   :  { %v7028_v28 = vpop.f32.mrf.mxu1 }
0x1de8   :  { %v3427_v33 = vadd.f32 %v8758_v32, %v3422_v25  ;;  %v9584_v28 = vld [vmem:[#allocation12_spill] sm:$0xff] }
0x1de9   :  { %v3384_v35 = vpop.f32.mrf.mxu1 }
0x1dea   :  { %v8761_v40 = vmax.f32 %v3427_v33, 0.0  ;;  %v5840_v33 = vsel %vm506_vm4, %v9584_v28, %v5832_v49  ;;  %v8869_v49 = vld [vmem:[#allocation5 + $0xf8] sm:$0xff]   ;;  %v8893_v28 = vld [vmem:[#allocation5 + $0xe0] sm:$0xff]  }
0x1deb   :  { %v7029_v57 = vpop.f32.mrf.mxu1  ;;  %9589 = vst [vmem:[#allocation14_spill] sm:$0xff] %v8893_v28 }
0x1dec   :  { %v3429_v42 = vpack.c.bf16 %v8761_v40, %v8761_v40 }
0x1dee   :  { %7043 = vmatmul.mubr.msk.bf16.vlgmr.msra.gmra.mxu1 %vm189_vm3, %v3429_v42 }
0x1def   :  { %7065 = vmatpush3.bf16.msra.mxu1 %v8766_v44  ;;  %7066 = vmatprep.mubr.msk.bf16.mxu1 %vm7857_vm0, %v9530_v52 }
0x1df0   :  { %7070 = vmatprep.subr.bf16.mxu1 %v9530_v52 }
0x1eae   :  { %v3467_v7 = vpop.f32.mrf.mxu1 }
0x1eaf   :  { %v3468_v56 = vadd.f32 %v8772_v30, %v3467_v7  ;;  %v8815_v7 = vld [vmem:[#allocation5 + $0xb8] sm:$0xff]  }
0x1eb0   :  { %v7044_v50 = vpop.f32.mrf.mxu1 }
0x1eb1   :  { %v3473_v18 = vpack.c.bf16 %v3468_v56, %v3468_v56  ;;  %v8826_v56 = vld [vmem:[#allocation5 + $0xc0] sm:$0xff]  }
0x1eb2   :  { %v3470_v16 = vpop.f32.mrf.mxu1 }
0x1eb3   :  { %7061 = vmatmul.mubr.msk.bf16.vlgmr.msra.gmra.mxu0 %vm502_vm5, %v3473_v18 }
0x1eb4   :  { %v7045_v48 = vpop.f32.mrf.mxu1  ;;  %7087 = vmatpush3.bf16.msra.mxu0 %v8045_v41  ;;  %7090 = vmatprep.mubr.msk.bf16.mxu0 %vm7857_vm0, %v9530_v52 }
0x1eb5   :  { %7088 = vmatprep.subr.bf16.mxu0 %v9530_v52 }
0x1eb8   :  { %7089 = vmatpush3.bf16.msra.mxu0 %v8780_v22 }
0x1eb9   :  { %7100 = vmatprep.subr.bf16.mxu0 %v9530_v52 }
0x1ebb   :  { %7091 = vmatmul.mubr.msk.bf16.vlgmr.msra.gmra.mxu0 %vm189_vm3, %v3429_v42 }
0x1ebc   :  { %7101 = vmatpush3.bf16.msra.mxu0 %v8785_v3  ;;  %7102 = vmatprep.mubr.msk.bf16.mxu0 %vm7857_vm0, %v9530_v52 }
0x1ebd   :  { %7112 = vmatprep.subr.bf16.mxu0 %v9530_v52 }
0x1f73   :  { %v3511_v58 = vpop.f32.mrf.mxu0 }
0x1f74   :  { %v3512_v26 = vadd.f32 %v8791_v17, %v3511_v58 }
0x1f75   :  { %v7062_v46 = vpop.f32.mrf.mxu0 }
0x1f76   :  { %v3517_v63 = vpack.c.bf16 %v3512_v26, %v3512_v26  ;;  %v8835_v46 = vld [vmem:[#allocation5 + $0xd0] sm:$0xff]  }
0x1f77   :  { %v3514_v2 = vpop.f32.mrf.mxu0 }
0x1f78   :  { %7067 = vmatmul.mubr.msk.bf16.vlgmr.msra.gmra.mxu1 %vm133_vm6, %v3517_v63 }
0x1f79   :  { %v7063_v1 = vpop.f32.mrf.mxu0  ;;  %7071 = vmatpush3.bf16.msra.mxu1 %v8795_v29  ;;  %7074 = vmatprep.mubr.msk.bf16.mxu1 %vm7857_vm0, %v9530_v52 }
0x1f7a   :  { %7072 = vmatprep.subr.bf16.mxu1 %v9530_v52 }
0x1f7b   :  { %v3679_v12 = vpop.f32.mrf.mxu0 }
0x1f7d   :  { %v7092_v43 = vpop.f32.mrf.mxu0  ;;  %7073 = vmatpush3.bf16.msra.mxu1 %v8801_v13 }
0x1f7e   :  { %7078 = vmatprep.subr.bf16.mxu1 %v9530_v52 }
0x1f7f   :  { %v3682_v47 = vpop.f32.mrf.mxu0 }
0x1f81   :  { %v7093_v11 = vpop.f32.mrf.mxu0 }
0x1f82   :  { %v8865_v11 = vld [vmem:[#allocation5 + $0x138] sm:$0xff]  }
0x2038   :  { %v3555_v20 = vpop.f32.mrf.mxu1 }
0x2039   :  { %v3556_v21 = vadd.f32 %v8806_v10, %v3555_v20  ;;  %v8873_v20 = vld [vmem:[#allocation5 + $0x130] sm:$0xff]  }
0x203a   :  { %v7068_v23 = vpop.f32.mrf.mxu1 }
0x203b   :  { %v3561_v34 = vpack.c.bf16 %v3556_v21, %v3556_v21  ;;  %v5835_v25 = vrot.slane %v3556_v21, 4  ;;  %v8877_v21 = vld [vmem:[#allocation5 + $0xf0] sm:$0xff]   ;;  %v8881_v23 = vld [vmem:[#allocation5 + $0x128] sm:$0xff]  }
0x203c   :  { %v3558_v35 = vpop.f32.mrf.mxu1  ;;  %9585 = vst [vmem:[#allocation13_spill] sm:$0xff] %v8877_v21  ;;  %9586 = vst [vmem:[#allocation23_spill] sm:$0xff] %v8881_v23 }
0x203d   :  { %7075 = vmatmul.mubr.msk.bf16.vlgmr.msra.gmra.mxu1 %vm78_vm2, %v3561_v34  ;;  %v8813_v57 = vsel %vm192_vm1, %v5840_v33, %v5835_v25  ;;  %v8889_v25 = vld [vmem:[#allocation5 + $0x120] sm:$0xff]   ;;  %v8897_v33 = vld [vmem:[#allocation5 + $0x118] sm:$0xff]  }
0x203e   :  { %v7069_v42 = vpop.f32.mrf.mxu1  ;;  %7079 = vmatpush3.bf16.msra.mxu1 %v8815_v7  ;;  %7082 = vmatprep.mubr.msk.bf16.mxu1 %vm7857_vm0, %v9530_v52  ;;  %9588 = vst [vmem:[#allocation27_spill] sm:$0xff] %v8889_v25  ;;  %9590 = vst [vmem:[#allocation16_spill] sm:$0xff] %v8897_v33  ;;  %v8901_v35 = vld [vmem:[#allocation5 + $0xd8] sm:$0xff]  }
0x203f   :  { %7080 = vmatprep.subr.bf16.mxu1 %v9530_v52  ;;  %9591 = vst [vmem:[#allocation17_spill] sm:$0xff] %v8901_v35  ;;  %v8904_v42 = vld [vmem:[#allocation5 + $0x110] sm:$0xff]  }
0x2040   :  { %9592 = vst [vmem:[#allocation18_spill] sm:$0xff] %v8904_v42 }
0x2042   :  { %7081 = vmatpush3.bf16.msra.mxu1 %v8821_v59 }
0x2043   :  { %7094 = vmatprep.subr.bf16.mxu1 %v9530_v52 }
0x2045   :  { %7083 = vmatmul.mubr.msk.bf16.vlgmr.msra.gmra.mxu1 %vm78_vm2, %v3561_v34  ;;  %v8885_v34 = vld [vmem:[#allocation5 + $0xe8] sm:$0xff]  }
0x2046   :  { %7095 = vmatpush3.bf16.msra.mxu1 %v8826_v56  ;;  %7096 = vmatprep.mubr.msk.bf16.mxu1 %vm7857_vm0, %v9530_v52  ;;  %9587 = vst [vmem:[#allocation25_spill] sm:$0xff] %v8885_v34 }
0x2047   :  { %7106 = vmatprep.subr.bf16.mxu1 %v9530_v52 }
0x20fd   :  { %v3599_v50 = vpop.f32.mrf.mxu1 }
0x20fe   :  { %v3685_v18 = vmul.f32 %v3679_v12, %v3599_v50 }
0x20ff   :  { %v7076_v16 = vpop.f32.mrf.mxu1 }
0x2100   :  { %v3686_v48 = vpack.c.bf16 %v3685_v18, %v3685_v18  ;;  %v8909_v18 = vld [vmem:[#allocation7 + $0x5] ss:$0 sm:$0xff] }
0x2101   :  { %v3602_v58 = vpop.f32.mrf.mxu1  ;;  %9593 = vst [vmem:[#allocation19_spill] sm:$0xff] %v8909_v18 }
0x2102   :  { %3776 = vrot.lane.b32.xlu1 %v3686_v48, %s7863_s5  ;;  %3731 = vrot.lane.b32.xlu0 %v3686_v48, %s7864_s6 }
0x2103   :  { %7097 = vmatmul.mubr.msk.bf16.vlgmr.msra.gmra.mxu1 %vm133_vm6, %v3686_v48  ;;  %v7077_v26 = vpop.f32.mrf.mxu1 }
0x2104   :  { %7107 = vmatpush3.bf16.msra.mxu1 %v8835_v46  ;;  %7108 = vmatprep.mubr.msk.bf16.mxu1 %vm7857_vm0, %v9530_v52 }
0x2105   :  { %v8840_v63 = vpop.f32.mrf.mxu1  ;;  %7130 = vmatprep.subr.bf16.mxu1 %v9530_v52 }
0x2106   :  { %3956 = vrot.lane.b32.xlu1 %v3599_v50, %s7859_s0  ;;  %3961 = vrot.lane.b32.xlu0 %v3599_v50, %s7862_s4 }
0x2107   :  { %v7084_v2 = vpop.f32.mrf.mxu1 }
0x2109   :  { %v3642_v1 = vpop.f32.mrf.mxu1 }
0x210a   :  { %4191 = vrot.lane.b32.xlu1 %v8840_v63, %s7862_s4  ;;  %4100 = vrot.lane.b32.xlu0 %v8840_v63, %s7865_s7  ;;  %v8913_v1 = vld [vmem:[#allocation5 + $0x1a0] sm:$0xff]  }
0x210b   :  { %v7085_v12 = vpop.f32.mrf.mxu1  ;;  %9594 = vst [vmem:[#allocation20_spill] sm:$0xff] %v8913_v1 }
0x210c   :  { %v8919_v12 = vld [vmem:[#allocation5 + $0x198] sm:$0xff]  }
0x210d   :  { %9595 = vst [vmem:[#allocation21_spill] sm:$0xff] %v8919_v12 }
0x210e   :  { %4376 = vrot.lane.b32.xlu0 %v8746_v45, %s7866_s8  ;;  %v8861_v45 = vld [vmem:[#allocation5 + $0x100] sm:$0xff]  }
0x2174   :  { %v3777_v43 = vpop.permute.xlu1 %3776  ;;  %v3732_v47 = vpop.permute.xlu0 %3731 }
0x2175   :  { %7103 = vmatmul.mubr.msk.bf16.vlgmr.msra.gmra.mxu0 %vm133_vm6, %v3732_v47  ;;  %7109 = vmatmul.mubr.msk.bf16.vlgmr.msra.gmra.mxu1 %vm133_vm6, %v3777_v43  ;;  %v8923_v43 = vld [vmem:[#allocation5 + $0x190] sm:$0xff]  }
0x2176   :  { %7131 = vmatpush3.bf16.msra.mxu1 %v8087_v14  ;;  %7144 = vmatprep.mubr.msk.bf16.mxu1 %vm7857_vm0, %v9530_v52  ;;  %9596 = vst [vmem:[#allocation22_spill] sm:$0xff] %v8923_v43 }
0x2177   :  { %7132 = vmatprep.subr.bf16.mxu1 %v9530_v52  ;;  %7113 = vmatpush3.bf16.msra.mxu0 %v8090_v19 }
0x2178   :  { %7114 = vmatprep.subr.bf16.mxu0 %v9530_v52  ;;  %7126 = vmatprep.mubr.msk.bf16.mxu0 %vm7857_vm0, %v9530_v52 }
0x217a   :  { %7133 = vmatpush3.bf16.msra.mxu1 %v8861_v45 }
0x217b   :  { %7134 = vmatprep.subr.bf16.mxu1 %v9530_v52  ;;  %7115 = vmatpush3.bf16.msra.mxu0 %v8865_v11 }
0x217c   :  { %7116 = vmatprep.subr.bf16.mxu0 %v9530_v52 }
0x217e   :  { %7135 = vmatpush3.bf16.msra.mxu1 %v8869_v49 }
0x217f   :  { %7136 = vmatprep.subr.bf16.mxu1 %v9530_v52  ;;  %7117 = vmatpush3.bf16.msra.mxu0 %v8873_v20 }
0x2180   :  { %7118 = vmatprep.subr.bf16.mxu0 %v9530_v52 }
0x2182   :  { %7137 = vmatpush3.bf16.msra.mxu1 %v8877_v21  ;;  %v3957_v21 = vpop.permute.xlu1 %3956 }
0x2183   :  { %7138 = vmatprep.subr.bf16.mxu1 %v9530_v52  ;;  %7119 = vmatpush3.bf16.msra.mxu0 %v8881_v23 }
0x2184   :  { %7120 = vmatprep.subr.bf16.mxu0 %v9530_v52 }
0x2186   :  { %7139 = vmatpush3.bf16.msra.mxu1 %v8885_v34 }
0x2187   :  { %7140 = vmatprep.subr.bf16.mxu1 %v9530_v52  ;;  %7121 = vmatpush3.bf16.msra.mxu0 %v8889_v25 }
0x2188   :  { %7122 = vmatprep.subr.bf16.mxu0 %v9530_v52 }
0x218a   :  { %7141 = vmatpush3.bf16.msra.mxu1 %v8893_v28 }
0x218b   :  { %7142 = vmatprep.subr.bf16.mxu1 %v9530_v52  ;;  %7123 = vmatpush3.bf16.msra.mxu0 %v8897_v33  ;;  %v8977_v33 = vld [vmem:[#allocation7 + $0x8] ss:$0 sm:$0xff] }
0x218c   :  { %7124 = vmatprep.subr.bf16.mxu0 %v9530_v52 }
0x218e   :  { %7143 = vmatpush3.bf16.msra.mxu1 %v8901_v35 }
0x218f   :  { %7125 = vmatpush3.bf16.msra.mxu0 %v8904_v42  ;;  %7166 = vmatprep.subr.bf16.mxu1 %v9530_v52 }
0x2190   :  { %7148 = vmatprep.subr.bf16.mxu0 %v9530_v52 }
0x21c3   :  { %v3724_v50 = vpop.f32.mrf.mxu1 }
0x21c4   :  { %v3725_v16 = vadd.f32 %v8909_v18, %v3724_v50 }
0x21c5   :  { %v7098_v48 = vpop.f32.mrf.mxu1 }
0x21c6   :  { %v3821_v58 = vpack.c.bf16 %v3725_v16, %v3725_v16  ;;  %v8927_v16 = vld [vmem:[#allocation7 + $0x6] ss:$0 sm:$0xff] }
0x21c7   :  { %v3727_v26 = vpop.f32.mrf.mxu1  ;;  %9597 = vst [vmem:[#allocation24_spill] sm:$0xff] %v8927_v16 }
0x21c8   :  { %7145 = vmatmul.mubr.msk.bf16.vlgmr.msra.gmra.mxu1 %vm502_vm5, %v3821_v58 }
0x21c9   :  { %v7099_v2 = vpop.f32.mrf.mxu1  ;;  %7167 = vmatpush3.bf16.msra.mxu1 %v8913_v1  ;;  %7172 = vmatprep.mubr.msk.bf16.mxu1 %vm7857_vm0, %v9530_v52 }
0x21ca   :  { %7168 = vmatprep.subr.bf16.mxu1 %v9530_v52 }
0x21cd   :  { %7169 = vmatpush3.bf16.msra.mxu1 %v8919_v12 }
0x21ce   :  { %7170 = vmatprep.subr.bf16.mxu1 %v9530_v52 }
0x21d1   :  { %7171 = vmatpush3.bf16.msra.mxu1 %v8923_v43  ;;  %v8935_v43 = vld [vmem:[#allocation5 + $0x170] sm:$0xff]  }
0x21d2   :  { %7176 = vmatprep.subr.bf16.mxu1 %v9530_v52  ;;  %9598 = vst [vmem:[#allocation26_spill] sm:$0xff] %v8935_v43 }
0x2235   :  { %v3770_v47 = vpop.f32.mrf.mxu0  ;;  %v3815_v50 = vpop.f32.mrf.mxu1 }
0x2236   :  { %v3771_v48 = vadd.f32 %v8927_v16, %v3770_v47  ;;  %v8939_v47 = vld [vmem:[#allocation5 + $0x168] sm:$0xff]  }
0x2237   :  { %v7104_v58 = vpop.f32.mrf.mxu0  ;;  %v7110_v26 = vpop.f32.mrf.mxu1  ;;  %9599 = vst [vmem:[#allocation28_spill] sm:$0xff] %v8939_v47 }
0x2238   :  { %v3822_v2 = vpack.c.bf16 %v3771_v48, %v3771_v48  ;;  %v8958_v58 = vld [vmem:[#allocation5 + $0x148] sm:$0xff]  }
0x2239   :  { %v3773_v1 = vpop.f32.mrf.mxu0  ;;  %v3818_v18 = vpop.f32.mrf.mxu1  ;;  %9604 = vst [vmem:[#allocation33_spill] sm:$0xff] %v8958_v58 }
0x223a   :  { %7127 = vmatmul.mubr.msk.bf16.vlgmr.msra.gmra.mxu0 %vm502_vm5, %v3822_v2  ;;  %v8943_v18 = vld [vmem:[#allocation5 + $0x160] sm:$0xff]   ;;  %v8951_v1 = vld [vmem:[#allocation5 + $0x150] sm:$0xff]  }
0x223b   :  { %7149 = vmatpush3.bf16.msra.mxu0 %v9552_v61  ;;  %v7105_v12 = vpop.f32.mrf.mxu0  ;;  %v7111_v42 = vpop.f32.mrf.mxu1  ;;  %7162 = vmatprep.mubr.msk.bf16.mxu0 %vm7857_vm0, %v9530_v52  ;;  %9600 = vst [vmem:[#allocation29_spill] sm:$0xff] %v8943_v18  ;;  %9602 = vst [vmem:[#allocation31_spill] sm:$0xff] %v8951_v1  ;;  %v8963_v2 = vld [vmem:[#allocation5 + $0x200] sm:$0xff]  }
0x223c   :  { %7150 = vmatprep.subr.bf16.mxu0 %v9530_v52  ;;  %v8947_v42 = vld [vmem:[#allocation5 + $0x158] sm:$0xff]   ;;  %v8954_v12 = vld [vmem:[#allocation7 + $0x7] ss:$0 sm:$0xff]  ;;  %9605 = vst [vmem:[#allocation35_spill] sm:$0xff] %v8963_v2 }
0x223d   :  { %9601 = vst [vmem:[#allocation30_spill] sm:$0xff] %v8947_v42  ;;  %9603 = vst [vmem:[#allocation32_spill] sm:$0xff] %v8954_v12  ;;  %v3816_v48 = vadd.f32 %v8954_v12, %v3815_v50  ;;  %v8969_v50 = vld [vmem:[#allocation5 + $0x1f8] sm:$0xff]  }
0x223e   :  { %9606 = vst [vmem:[#allocation36_spill] sm:$0xff] %v8969_v50 }
0x223f   :  { %7151 = vmatpush3.bf16.msra.mxu0 %v8935_v43  ;;  %v3909_v26 = vpack.c.bf16 %v3816_v48, %v3816_v48  ;;  %v8973_v48 = vld [vmem:[#allocation5 + $0x1f0] sm:$0xff]   ;;  %v3962_v43 = vpop.permute.xlu0 %3961 }
0x2240   :  { %7152 = vmatprep.subr.bf16.mxu0 %v9530_v52  ;;  %9607 = vst [vmem:[#allocation37_spill] sm:$0xff] %v8973_v48 }
0x2243   :  { %7153 = vmatpush3.bf16.msra.mxu0 %v8939_v47 }
0x2244   :  { %7154 = vmatprep.subr.bf16.mxu0 %v9530_v52 }
0x2247   :  { %7155 = vmatpush3.bf16.msra.mxu0 %v8943_v18 }
0x2248   :  { %7156 = vmatprep.subr.bf16.mxu0 %v9530_v52 }
0x224b   :  { %7157 = vmatpush3.bf16.msra.mxu0 %v8947_v42 }
0x224c   :  { %7158 = vmatprep.subr.bf16.mxu0 %v9530_v52 }
0x224f   :  { %7159 = vmatpush3.bf16.msra.mxu0 %v8951_v1 }
0x2250   :  { %7160 = vmatprep.subr.bf16.mxu0 %v9530_v52 }
0x2253   :  { %7161 = vmatpush3.bf16.msra.mxu0 %v8958_v58 }
0x2254   :  { %7202 = vmatprep.subr.bf16.mxu0 %v9530_v52 }
0x2256   :  { %7163 = vmatmul.mubr.msk.bf16.vlgmr.msra.gmra.mxu0 %vm502_vm5, %v3909_v26 }
0x2257   :  { %7203 = vmatpush3.bf16.msra.mxu0 %v8963_v2  ;;  %7208 = vmatprep.mubr.msk.bf16.mxu0 %vm7857_vm0, %v9530_v52 }
0x2258   :  { %7204 = vmatprep.subr.bf16.mxu0 %v9530_v52 }
0x225b   :  { %7205 = vmatpush3.bf16.msra.mxu0 %v8969_v50 }
0x225c   :  { %7206 = vmatprep.subr.bf16.mxu0 %v9530_v52 }
0x225f   :  { %7207 = vmatpush3.bf16.msra.mxu0 %v8973_v48  ;;  %v4101_v48 = vpop.permute.xlu0 %4100 }
0x2260   :  { %7212 = vmatprep.subr.bf16.mxu0 %v9530_v52 }
0x2288   :  { %v3903_v26 = vpop.f32.mrf.mxu1 }
0x228a   :  { %v7146_v58 = vpop.f32.mrf.mxu1 }
0x228c   :  { %v3906_v2 = vpop.f32.mrf.mxu1 }
0x228e   :  { %v7147_v12 = vpop.f32.mrf.mxu1 }
0x22fa   :  { %v3860_v1 = vpop.f32.mrf.mxu0 }
0x22fb   :  { %v3904_v61 = vadd.f32 %v3903_v26, %v3860_v1 }
0x22fc   :  { %v7128_v42 = vpop.f32.mrf.mxu0 }
0x22fe   :  { %v3863_v18 = vpop.f32.mrf.mxu0 }
0x22ff   :  { %v9033_v18 = vld [vmem:[#allocation5 + $0x1a8] sm:$0xff]  }
0x2300   :  { %v7129_v47 = vpop.f32.mrf.mxu0  ;;  %9614 = vst [vmem:[#allocation42_spill] sm:$0xff] %v9033_v18 }
0x2301   :  { %v9029_v47 = vld [vmem:[#allocation5 + $0x1b0] sm:$0xff]  }
0x2302   :  { %9613 = vst [vmem:[#allocation44_spill] sm:$0xff] %v9029_v47 }
0x2316   :  { %v3947_v16 = vpop.f32.mrf.mxu0 }
0x2317   :  { %v3953_v50 = vadd.f32 %v3947_v16, %v3904_v61  ;;  %v4097_v61 = vmul.f32 %v8840_v63, %v8761_v40  ;;  %v9025_v16 = vld [vmem:[#allocation5 + $0x1b8] sm:$0xff]  }
0x2318   :  { %v7164_v35 = vpop.f32.mrf.mxu0  ;;  %9612 = vst [vmem:[#allocation43_spill] sm:$0xff] %v9025_v16 }
0x2319   :  { %v3954_v28 = vadd.f32 %v8977_v33, %v3953_v50  ;;  %v3959_v35 = vmul.f32 %v3957_v21, %v8761_v40  ;;  %v4098_v63 = vpack.c.bf16 %v4097_v61, %v4097_v61  ;;  %v9007_v21 = vld [vmem:[#allocation5 + $0x208] sm:$0xff]  }
0x231a   :  { %v3950_v25 = vpop.f32.mrf.mxu0  ;;  %9608 = vst [vmem:[#allocation38_spill] sm:$0xff] %v9007_v21 }
0x231b   :  { %v3964_v34 = vmul.f32 %v3962_v43, %v3954_v28  ;;  %v4103_v23 = vmul.f32 %v4101_v48, %v3954_v28  ;;  %v3960_v40 = vpack.c.bf16 %v3959_v35, %v3959_v35  ;;  %v9013_v25 = vld [vmem:[#allocation5 + $0x1d0] sm:$0xff]   ;;  %v9017_v28 = vld [vmem:[#allocation5 + $0x1c8] sm:$0xff]   ;;  %v9021_v43 = vld [vmem:[#allocation5 + $0x1c0] sm:$0xff]  }
0x231c   :  { %v7165_v58 = vpop.f32.mrf.mxu0  ;;  %9609 = vst [vmem:[#allocation39_spill] sm:$0xff] %v9013_v25  ;;  %9610 = vst [vmem:[#allocation40_spill] sm:$0xff] %v9017_v28 }
0x231d   :  { %v3965_v2 = vpack.c.bf16 %v3964_v34, %v3964_v34  ;;  %v4104_v12 = vpack.c.bf16 %v4103_v23, %v4103_v23  ;;  %v8993_v23 = vld [vmem:[#allocation5 + $0x180] sm:$0xff]   ;;  %9611 = vst [vmem:[#allocation41_spill] sm:$0xff] %v9021_v43 }
0x231e   :  { %v8996_v34 = vld [vmem:[#allocation5 + $0x1e0] sm:$0xff]  }
0x231f   :  { %7173 = vmatmul.mubr.msk.bf16.vlgmr.msra.gmra.mxu1 %vm1295_vm7, %v3965_v2  ;;  %7209 = vmatmul.mubr.msk.bf16.vlgmr.msra.gmra.mxu0 %vm1295_vm7, %v4104_v12 }
0x2320   :  { %7177 = vmatpush3.bf16.msra.mxu1 %v9564_v27  ;;  %7213 = vmatpush3.bf16.msra.mxu0 %v9565_v31 }
0x2321   :  { %7178 = vmatprep.subr.bf16.mxu1 %v9530_v52  ;;  %7214 = vmatprep.subr.bf16.mxu0 %v9530_v52 }
0x2322   :  { %7180 = vmatprep.mubr.msk.bf16.mxu1 %vm7857_vm0, %v9530_v52  ;;  %7216 = vmatprep.mubr.msk.bf16.mxu0 %vm7857_vm0, %v9530_v52 }
0x2324   :  { %7179 = vmatpush3.bf16.msra.mxu1 %v8993_v23  ;;  %7215 = vmatpush3.bf16.msra.mxu0 %v8996_v34 }
0x2325   :  { %7184 = vmatprep.subr.bf16.mxu1 %v9530_v52  ;;  %7220 = vmatprep.subr.bf16.mxu0 %v9530_v52 }
0x2327   :  { %7181 = vmatmul.mubr.msk.bf16.vlgmr.msra.gmra.mxu1 %vm189_vm3, %v3960_v40  ;;  %7217 = vmatmul.mubr.msk.bf16.vlgmr.msra.gmra.mxu0 %vm189_vm3, %v4098_v63 }
0x2328   :  { %7185 = vmatpush3.bf16.msra.mxu1 %v9568_v55  ;;  %7198 = vmatprep.mubr.msk.bf16.mxu1 %vm7857_vm0, %v9530_v52 }
0x2329   :  { %7186 = vmatprep.subr.bf16.mxu1 %v9530_v52  ;;  %7221 = vmatpush3.bf16.msra.mxu0 %v9007_v21 }
0x232a   :  { %7222 = vmatprep.mubr.msk.bf16.mxu0 %vm7857_vm0, %v9530_v52  ;;  %7244 = vmatprep.subr.bf16.mxu0 %v9530_v52 }
0x232c   :  { %7187 = vmatpush3.bf16.msra.mxu1 %v9013_v25 }
0x232d   :  { %7188 = vmatprep.subr.bf16.mxu1 %v9530_v52 }
0x2330   :  { %7189 = vmatpush3.bf16.msra.mxu1 %v9017_v28 }
0x2331   :  { %7190 = vmatprep.subr.bf16.mxu1 %v9530_v52 }
0x2334   :  { %7191 = vmatpush3.bf16.msra.mxu1 %v9021_v43  ;;  %v9037_v43 = vld [vmem:[#allocation7 + $0x9] ss:$0 sm:$0xff] }
0x2335   :  { %7192 = vmatprep.subr.bf16.mxu1 %v9530_v52 }
0x2338   :  { %7193 = vmatpush3.bf16.msra.mxu1 %v9025_v16 }
0x2339   :  { %7194 = vmatprep.subr.bf16.mxu1 %v9530_v52 }
0x233c   :  { %7195 = vmatpush3.bf16.msra.mxu1 %v9029_v47 }
0x233d   :  { %7196 = vmatprep.subr.bf16.mxu1 %v9530_v52 }
0x2340   :  { %7197 = vmatpush3.bf16.msra.mxu1 %v9033_v18 }
0x2341   :  { %7226 = vmatprep.subr.bf16.mxu1 %v9530_v52 }
0x23df   :  { %v4003_v42 = vpop.f32.mrf.mxu1  ;;  %v4142_v1 = vpop.f32.mrf.mxu0 }
0x23e1   :  { %v7174_v50 = vpop.f32.mrf.mxu1  ;;  %v7210_v48 = vpop.f32.mrf.mxu0 }
0x23e2   :  { %v4192_v48 = vpop.permute.xlu1 %4191 }
0x23e3   :  { %v4006_v26 = vpop.f32.mrf.mxu1  ;;  %v4145_v58 = vpop.f32.mrf.mxu0 }
0x23e5   :  { %v7175_v2 = vpop.f32.mrf.mxu1  ;;  %v7211_v12 = vpop.f32.mrf.mxu0 }
0x23e7   :  { %v4046_v61 = vpop.f32.mrf.mxu1  ;;  %v4185_v35 = vpop.f32.mrf.mxu0 }
0x23e8   :  { %v4047_v63 = vadd.f32 %v4046_v61, %v4003_v42  ;;  %v4186_v40 = vadd.f32 %v4185_v35, %v4142_v1  ;;  %v9069_v42 = vld [vmem:[#allocation7 + $0xa] ss:$0 sm:$0xff]  ;;  %v9073_v35 = vld [vmem:[#allocation5 + $0x248] sm:$0xff]  }
0x23e9   :  { %v7182_v47 = vpop.f32.mrf.mxu1  ;;  %v7218_v16 = vpop.f32.mrf.mxu0  ;;  %9615 = vst [vmem:[#allocation45_spill] sm:$0xff] %v9069_v42  ;;  %9616 = vst [vmem:[#allocation46_spill] sm:$0xff] %v9073_v35 }
0x23ea   :  { %v4052_v18 = vadd.f32 %v9037_v43, %v4047_v63  ;;  %v9045_v47 = vld [vmem:[#allocation5 + $0x238] sm:$0xff]   ;;  %v9065_v16 = vld [vmem:[#allocation5 + $0x210] sm:$0xff]  }
0x23eb   :  { %v4049_v28 = vpop.f32.mrf.mxu1  ;;  %v4188_v25 = vpop.f32.mrf.mxu0 }
0x23ec   :  { %v4053_v21 = vpack.c.bf16 %v4052_v18, %v4052_v18  ;;  %v9049_v28 = vld [vmem:[#allocation5 + $0x230] sm:$0xff]   ;;  %v9061_v25 = vld [vmem:[#allocation5 + $0x218] sm:$0xff]  }
0x23ed   :  { %v7183_v55 = vpop.f32.mrf.mxu1  ;;  %v7219_v50 = vpop.f32.mrf.mxu0 }
0x23ee   :  { %7199 = vmatmul.mubr.msk.bf16.vlgmr.msra.gmra.mxu1 %vm502_vm5, %v4053_v21  ;;  %v9053_v55 = vld [vmem:[#allocation5 + $0x228] sm:$0xff]   ;;  %v9057_v21 = vld [vmem:[#allocation5 + $0x220] sm:$0xff]  }
0x23ef   :  { %7227 = vmatpush3.bf16.msra.mxu1 %v8297_v0  ;;  %7240 = vmatprep.mubr.msk.bf16.mxu1 %vm7857_vm0, %v9530_v52 }
0x23f0   :  { %7228 = vmatprep.subr.bf16.mxu1 %v9530_v52 }
0x23f3   :  { %7229 = vmatpush3.bf16.msra.mxu1 %v9045_v47 }
0x23f4   :  { %7230 = vmatprep.subr.bf16.mxu1 %v9530_v52 }
0x23f7   :  { %7231 = vmatpush3.bf16.msra.mxu1 %v9049_v28 }
0x23f8   :  { %7232 = vmatprep.subr.bf16.mxu1 %v9530_v52 }
0x23fb   :  { %7233 = vmatpush3.bf16.msra.mxu1 %v9053_v55 }
0x23fc   :  { %7234 = vmatprep.subr.bf16.mxu1 %v9530_v52 }
0x23ff   :  { %7235 = vmatpush3.bf16.msra.mxu1 %v9057_v21 }
0x2400   :  { %7236 = vmatprep.subr.bf16.mxu1 %v9530_v52 }
0x2403   :  { %7237 = vmatpush3.bf16.msra.mxu1 %v9061_v25 }
0x2404   :  { %7238 = vmatprep.subr.bf16.mxu1 %v9530_v52 }
0x2407   :  { %7239 = vmatpush3.bf16.msra.mxu1 %v9065_v16 }
0x2408   :  { %7264 = vmatprep.subr.bf16.mxu1 %v9530_v52 }
0x24ae   :  { %v4091_v18 = vpop.f32.mrf.mxu1 }
0x24af   :  { %v4092_v1 = vadd.f32 %v9069_v42, %v4091_v18  ;;  %v9079_v42 = vld [vmem:[#allocation7 + $0xb] ss:$0 sm:$0xff] }
0x24b0   :  { %v7200_v26 = vpop.f32.mrf.mxu1  ;;  %9617 = vst [vmem:[#allocation47_spill] sm:$0xff] %v9079_v42 }
0x24b1   :  { %v4194_v58 = vmul.f32 %v4192_v48, %v4092_v1 }
0x24b2   :  { %v4094_v2 = vpop.f32.mrf.mxu1 }
0x24b3   :  { %v4195_v12 = vpack.c.bf16 %v4194_v58, %v4194_v58  ;;  %v7752_v2 = vld [vmem:[#allocation5 + $0x258] sm:$0xff]  }
0x24b4   :  { %v7201_v61 = vpop.f32.mrf.mxu1 }
0x24b5   :  { %7223 = vmatmul.mubr.msk.bf16.vlgmr.msra.gmra.mxu0 %vm133_vm6, %v4195_v12  ;;  %v9086_v61 = vld [vmem:[#allocation7 + $0xc] ss:$0 sm:$0xff] }
0x24b6   :  { %7245 = vmatpush3.bf16.msra.mxu0 %v9073_v35  ;;  %7246 = vmatprep.mubr.msk.bf16.mxu0 %vm7857_vm0, %v9530_v52  ;;  %9618 = vst [vmem:[#allocation48_spill] sm:$0xff] %v9086_v61 }
0x24b7   :  { %7250 = vmatprep.subr.bf16.mxu0 %v9530_v52 }
0x2575   :  { %v4233_v63 = vpop.f32.mrf.mxu0 }
0x2576   :  { %v4239_v50 = vadd.f32 %v4233_v63, %v4186_v40 }
0x2577   :  { %v7224_v18 = vpop.f32.mrf.mxu0 }
0x2578   :  { %v4240_v1 = vadd.f32 %v9079_v42, %v4239_v50 }
0x2579   :  { %v4236_v48 = vpop.f32.mrf.mxu0 }
0x257a   :  { %v4241_v26 = vpack.c.bf16 %v4240_v1, %v4240_v1  ;;  %v9090_v48 = vld [vmem:[#allocation5 + $0x250] sm:$0xff]  }
0x257b   :  { %v7225_v58 = vpop.f32.mrf.mxu0  ;;  %9619 = vst [vmem:[#allocation49_spill] sm:$0xff] %v9090_v48 }
0x257c   :  { %7241 = vmatmul.mubr.msk.bf16.vlgmr.msra.gmra.mxu1 %vm502_vm5, %v4241_v26  ;;  %v9096_v58 = vld [vmem:[#allocation7 + $0xd] ss:$0 sm:$0xff] }
0x257d   :  { %7265 = vmatpush3.bf16.msra.mxu1 %v7752_v2  ;;  %7266 = vmatprep.mubr.msk.bf16.mxu1 %vm7857_vm0, %v9530_v52 }
0x257e   :  { %7278 = vmatprep.subr.bf16.mxu1 %v9530_v52 }
0x263c   :  { %v4279_v12 = vpop.f32.mrf.mxu1 }
0x263d   :  { %v4280_v40 = vadd.f32 %v9086_v61, %v4279_v12  ;;  %v4377_v12 = vpop.permute.xlu0 %4376 }
0x263e   :  { %v7242_v63 = vpop.f32.mrf.mxu1 }
0x263f   :  { %v4285_v18 = vpack.c.bf16 %v4280_v40, %v4280_v40 }
0x2640   :  { %v4282_v50 = vpop.f32.mrf.mxu1 }
0x2641   :  { %7247 = vmatmul.mubr.msk.bf16.vlgmr.msra.gmra.mxu0 %vm133_vm6, %v4285_v18 }
0x2642   :  { %v7243_v1 = vpop.f32.mrf.mxu1  ;;  %7251 = vmatpush3.bf16.msra.mxu0 %v9090_v48  ;;  %7252 = vmatprep.mubr.msk.bf16.mxu0 %vm7857_vm0, %v9530_v52  ;;  %v9100_v48 = vld [vmem:[#allocation5 + $0x268] sm:$0xff]  }
0x2643   :  { %7256 = vmatprep.subr.bf16.mxu0 %v9530_v52 }
0x2701   :  { %v4323_v26 = vpop.f32.mrf.mxu0 }
0x2702   :  { %v4324_v2 = vadd.f32 %v9096_v58, %v4323_v26  ;;  %v9107_v26 = vld [vmem:[#allocation5 + $0x260] sm:$0xff]  }
0x2703   :  { %v7248_v40 = vpop.f32.mrf.mxu0 }
0x2704   :  { %v4329_v63 = vmax.f32 %v4324_v2, 0.0  ;;  %v4379_v50 = vadd.f32 %v4377_v12, %v4324_v2  ;;  %v9144_v40 = vld [vmem:[#allocation7 + $0xe] ss:$0 sm:$0xff] }
0x2705   :  { %v4326_v18 = vpop.f32.mrf.mxu0 }
0x2706   :  { %v4330_v1 = vpack.c.bf16 %v4329_v63, %v4329_v63  ;;  %v4380_v61 = vmax.f32 %v4379_v50, 0.0 }
0x2707   :  { %v7249_v42 = vpop.f32.mrf.mxu0 }
0x2708   :  { %v4381_v35 = vpack.c.bf16 %v4380_v61, %v4380_v61  ;;  %7253 = vmatmul.mubr.msk.bf16.vlgmr.msra.gmra.mxu0 %vm133_vm6, %v4330_v1  ;;  %v7758_v61 = vld [vmem:[#allocation5 + $0x10] sm:$0xff]  }
0x2709   :  { %7257 = vmatpush3.bf16.msra.mxu0 %v9100_v48  ;;  %7260 = vmatprep.mubr.msk.bf16.mxu0 %vm7857_vm0, %v9530_v52 }
0x270a   :  { %4383 = vrot.lane.b32.xlu1 %v4381_v35, %s7864_s6  ;;  %7258 = vmatprep.subr.bf16.mxu0 %v9530_v52 }
0x270d   :  { %7259 = vmatpush3.bf16.msra.mxu0 %v9107_v26 }
0x270e   :  { %7270 = vmatprep.subr.bf16.mxu0 %v9530_v52 }
0x277c   :  { %v4384_v42 = vpop.permute.xlu1 %4383 }
0x277d   :  { %7261 = vmatmul.mubr.msk.bf16.vlgmr.msra.gmra.mxu0 %vm78_vm2, %v4384_v42 }
0x277e   :  { %7271 = vmatpush3.bf16.msra.mxu0 %v7909_v6  ;;  %7274 = vmatprep.mubr.msk.bf16.mxu0 %vm7857_vm0, %v9530_v52 }
0x277f   :  { %7272 = vmatprep.subr.bf16.mxu0 %v9530_v52 }
0x2782   :  { %7273 = vmatpush3.bf16.msra.mxu0 %v7758_v61 }
0x2783   :  { %7286 = vmatprep.subr.bf16.mxu0 %v9530_v52 }
0x2785   :  { %7275 = vmatmul.mubr.msk.bf16.vlgmr.msra.gmra.mxu0 %vm189_vm3, %v8748_v24 }
0x2786   :  { %7287 = vmatpush3.bf16.msra.mxu0 %v7933_v37  ;;  %7290 = vmatprep.mubr.msk.bf16.mxu0 %vm7857_vm0, %v9530_v52 }
0x2787   :  { %7288 = vmatprep.subr.bf16.mxu0 %v9530_v52 }
0x278a   :  { %7289 = vmatpush3.bf16.msra.mxu0 %v8687_v53 }
0x278b   :  { %7302 = vmatprep.subr.bf16.mxu0 %v9530_v52 }
0x278d   :  { %7291 = vmatmul.mubr.msk.bf16.vlgmr.msra.gmra.mxu0 %vm189_vm3, %v8748_v24 }
0x278e   :  { %7303 = vmatpush3.bf16.msra.mxu0 %v7964_v54  ;;  %7316 = vmatprep.mubr.msk.bf16.mxu0 %vm7857_vm0, %v9530_v52 }
0x278f   :  { %7304 = vmatprep.subr.bf16.mxu0 %v9530_v52 }
0x2792   :  { %7305 = vmatpush3.bf16.msra.mxu0 %v8697_v62 }
0x2793   :  { %7306 = vmatprep.subr.bf16.mxu0 %v9530_v52 }
0x2796   :  { %7307 = vmatpush3.bf16.msra.mxu0 %v8701_v5 }
0x2797   :  { %7308 = vmatprep.subr.bf16.mxu0 %v9530_v52 }
0x279a   :  { %7309 = vmatpush3.bf16.msra.mxu0 %v8705_v39 }
0x279b   :  { %7310 = vmatprep.subr.bf16.mxu0 %v9530_v52 }
0x279e   :  { %7311 = vmatpush3.bf16.msra.mxu0 %v8709_v60 }
0x279f   :  { %7312 = vmatprep.subr.bf16.mxu0 %v9530_v52 }
0x27a2   :  { %7313 = vmatpush3.bf16.msra.mxu0 %v8713_v8 }
0x27a3   :  { %7314 = vmatprep.subr.bf16.mxu0 %v9530_v52 }
0x27a6   :  { %7315 = vmatpush3.bf16.msra.mxu0 %v8717_v36 }
0x27a7   :  { %7342 = vmatprep.subr.bf16.mxu0 %v9530_v52 }
0x27c8   :  { %v4368_v6 = vpop.f32.mrf.mxu0 }
0x27c9   :  { %v4369_v36 = vadd.f32 %v9144_v40, %v4368_v6 }
0x27ca   :  { %v7254_v37 = vpop.f32.mrf.mxu0 }
0x27cc   :  { %v4371_v54 = vpop.f32.mrf.mxu0 }
0x27ce   :  { %v7255_v53 = vpop.f32.mrf.mxu0 }
0x283d   :  { %v4422_v62 = vpop.f32.mrf.mxu0 }
0x283f   :  { %v7262_v5 = vpop.f32.mrf.mxu0 }
0x2841   :  { %v4425_v39 = vpop.f32.mrf.mxu0 }
0x2843   :  { %v7263_v24 = vpop.f32.mrf.mxu0 }
0x2845   :  { %v4521_v35 = vpop.f32.mrf.mxu0 }
0x2846   :  { %v4528_v60 = vrot.slane %v4521_v35, 2 }
0x2847   :  { %v7276_v2 = vpop.f32.mrf.mxu0 }
0x2848   :  { %v4530_v12 = vadd.f32 %v4528_v60, %v7924_v15  ;;  %v9151_v15 = vld [vmem:[#allocation7 + $0xf] ss:$0 sm:$0xff] }
0x2849   :  { %v4524_v8 = vpop.f32.mrf.mxu0  ;;  %v4423_v54 = vadd.f32 %v9151_v15, %v4422_v62  ;;  %v4537_v62 = vrot.slane %v8729_v9, 6  ;;  %v7761_v9 = vld [vmem:[#allocation5 + $0x30] sm:$0xff]  }
0x284a   :  { %7667 = vtanh.f32 %v4530_v12  ;;  %v4531_v53 = vmul.f32 0.5, %v4530_v12 }
0x284b   :  { %v7277_v63 = vpop.f32.mrf.mxu0  ;;  %7669 = vtanh.f32 %v4369_v36  ;;  %v4428_v6 = vmul.f32 0.5, %v4423_v54 }
0x284c   :  { %7671 = vtanh.f32 %v4531_v53 }
0x284d   :  { %v9147_v50 = vpop.f32.mrf.mxu0  ;;  %7673 = vtanh.f32 %v4428_v6 }
0x284f   :  { %v7292_v18 = vpop.f32.mrf.mxu0 }
0x2851   :  { %v4641_v1 = vpop.f32.mrf.mxu0 }
0x2853   :  { %v7293_v42 = vpop.f32.mrf.mxu0 }
0x2857   :  { %v7668_v61 = vpop.eup %7667 }
0x2858   :  { %4541 = vrot.lane.b32.xlu0 %v7668_v61, %s7859_s0  ;;  %v7670_v37 = vpop.eup %7669 }
0x2859   :  { %v7672_v5 = vpop.eup %7671 }
0x285a   :  { %v4533_v39 = vadd.f32 1.0, %v7672_v5  ;;  %v7674_v24 = vpop.eup %7673 }
0x285b   :  { %v4430_v60 = vadd.f32 1.0, %v7674_v24 }
0x285c   :  { %4434 = vrot.lane.b32.xlu0 %v7670_v37, %s7866_s8  ;;  %v4534_v35 = vmul.f32 0.5, %v4533_v39 }
0x285d   :  { %v4431_v36 = vmul.f32 0.5, %v4430_v60 }
0x285e   :  { %v4539_v12 = vmul.f32 %v4537_v62, %v4534_v35 }
0x285f   :  { %v4432_v61 = vmul.f32 %v4431_v36, %v8733_v4 }
0x28ca   :  { %v4542_v2 = vpop.permute.xlu0 %4541 }
0x28cb   :  { %v4544_v8 = vmul.f32 %v4542_v2, %v4534_v35 }
0x28cd   :  { %4546 = vrot.lane.b32.xlu1 %v4544_v8, %s7860_s2 }
0x28ce   :  { %v4435_v63 = vpop.permute.xlu0 %4434 }
0x28cf   :  { %v4437_v18 = vmul.f32 %v4435_v63, %v4431_v36 }
0x28d1   :  { %4439 = vrot.lane.b32.xlu0 %v4437_v18, %s7864_s6 }
0x293f   :  { %v4547_v1 = vpop.permute.xlu1 %4546 }
0x2940   :  { %v4549_v42 = vadd.f32 %v4547_v1, %v4539_v12 }
0x2942   :  { %7675 = vtanh.f32 %v4549_v42 }
0x2943   :  { %v4440_v37 = vpop.permute.xlu0 %4439 }
0x2944   :  { %v9158_v54 = vadd.f32 %v4440_v37, %v4432_v61 }
0x2946   :  { %v4443_v53 = vpack.c.bf16 %v9158_v54, %v9158_v54 }
0x2948   :  { %7267 = vmatmul.mubr.msk.bf16.vlgmr.msra.gmra.mxu1 %vm133_vm6, %v4443_v53 }
0x2949   :  { %7279 = vmatpush3.bf16.msra.mxu1 %v7936_v38  ;;  %7282 = vmatprep.mubr.msk.bf16.mxu1 %vm7857_vm0, %v9530_v52 }
0x294a   :  { %7280 = vmatprep.subr.bf16.mxu1 %v9530_v52 }
0x294d   :  { %7281 = vmatpush3.bf16.msra.mxu1 %v7761_v9 }
0x294e   :  { %7294 = vmatprep.subr.bf16.mxu1 %v9530_v52 }
0x294f   :  { %v7676_v4 = vpop.eup %7675 }
0x2950   :  { %4552 = vrot.lane.b32.xlu1 %v7676_v4, %s7861_s30 }
0x29c2   :  { %v4553_v6 = vpop.permute.xlu1 %4552 }
0x29c3   :  { %v4555_v5 = vmul.f32 %v4553_v6, %v4534_v35  ;;  %v7762_v35 = vld [vmem:[#allocation5 + $0x40] sm:$0xff]  }
0x29c5   :  { %v4556_v39 = vpack.c.bf16 %v4555_v5, %v4555_v5 }
0x29c7   :  { %v4558_v24 = vrot.slane %v4556_v39, 3 }
0x29c9   :  { %4559 = vrot.lane.b32.xlu1 %v4558_v24, %s7862_s4 }
0x2a08   :  { %v9170_v60 = vpop.f32.mrf.mxu1 }
0x2a0a   :  { %v7268_v38 = vpop.f32.mrf.mxu1 }
0x2a0c   :  { %v4484_v2 = vpop.f32.mrf.mxu1 }
0x2a0e   :  { %v7269_v8 = vpop.f32.mrf.mxu1 }
0x2a3b   :  { %v9172_v36 = vpop.permute.xlu1 %4559 }
0x2a3c   :  { %7283 = vmatmul.mubr.msk.bf16.vlgmr.msra.gmra.mxu1 %vm189_vm3, %v9172_v36 }
0x2a3d   :  { %7295 = vmatpush3.bf16.msra.mxu1 %v7958_v51  ;;  %7298 = vmatprep.mubr.msk.bf16.mxu1 %vm7857_vm0, %v9530_v52 }
0x2a3e   :  { %7296 = vmatprep.subr.bf16.mxu1 %v9530_v52 }
0x2a41   :  { %7297 = vmatpush3.bf16.msra.mxu1 %v7762_v35 }
0x2a42   :  { %7320 = vmatprep.subr.bf16.mxu1 %v9530_v52 }
0x2afc   :  { %v4598_v63 = vpop.f32.mrf.mxu1 }
0x2afd   :  { %v4639_v18 = vadd.f32 %v9147_v50, %v4598_v63 }
0x2afe   :  { %v7284_v62 = vpop.f32.mrf.mxu1 }
0x2aff   :  { %v4644_v12 = vadd.f32 %v8758_v32, %v4639_v18 }
0x2b00   :  { %v4601_v1 = vpop.f32.mrf.mxu1 }
0x2b01   :  { %v9183_v42 = vmax.f32 %v4644_v12, 0.0 }
0x2b02   :  { %v7285_v61 = vpop.f32.mrf.mxu1 }
0x2b03   :  { %v4646_v51 = vpack.c.bf16 %v9183_v42, %v9183_v42 }
0x2b05   :  { %7299 = vmatmul.mubr.msk.bf16.vlgmr.msra.gmra.mxu1 %vm189_vm3, %v4646_v51 }
0x2b06   :  { %7321 = vmatpush3.bf16.msra.mxu1 %v8766_v44  ;;  %7322 = vmatprep.mubr.msk.bf16.mxu1 %vm7857_vm0, %v9530_v52 }
0x2b07   :  { %7326 = vmatprep.subr.bf16.mxu1 %v9530_v52 }
0x2bc5   :  { %v4684_v50 = vpop.f32.mrf.mxu1 }
0x2bc6   :  { %v4685_v37 = vadd.f32 %v8772_v30, %v4684_v50 }
0x2bc7   :  { %v7300_v32 = vpop.f32.mrf.mxu1 }
0x2bc8   :  { %v4690_v53 = vpack.c.bf16 %v4685_v37, %v4685_v37  ;;  %v9627_v37 = vld [vmem:[#allocation18_spill] sm:$0xff] }
0x2bc9   :  { %v4687_v9 = vpop.f32.mrf.mxu1 }
0x2bca   :  { %7317 = vmatmul.mubr.msk.bf16.vlgmr.msra.gmra.mxu0 %vm502_vm5, %v4690_v53  ;;  %v9628_v53 = vld [vmem:[#allocation19_spill] sm:$0xff] }
0x2bcb   :  { %v7301_v4 = vpop.f32.mrf.mxu1  ;;  %7343 = vmatpush3.bf16.msra.mxu0 %v8045_v41  ;;  %7346 = vmatprep.mubr.msk.bf16.mxu0 %vm7857_vm0, %v9530_v52 }
0x2bcc   :  { %7344 = vmatprep.subr.bf16.mxu0 %v9530_v52 }
0x2bcf   :  { %7345 = vmatpush3.bf16.msra.mxu0 %v8780_v22 }
0x2bd0   :  { %7356 = vmatprep.subr.bf16.mxu0 %v9530_v52 }
0x2bd2   :  { %7347 = vmatmul.mubr.msk.bf16.vlgmr.msra.gmra.mxu0 %vm189_vm3, %v4646_v51 }
0x2bd3   :  { %7357 = vmatpush3.bf16.msra.mxu0 %v8785_v3  ;;  %7358 = vmatprep.mubr.msk.bf16.mxu0 %vm7857_vm0, %v9530_v52 }
0x2bd4   :  { %7368 = vmatprep.subr.bf16.mxu0 %v9530_v52 }
0x2c8a   :  { %v4728_v44 = vpop.f32.mrf.mxu0 }
0x2c8b   :  { %v4729_v41 = vadd.f32 %v8791_v17, %v4728_v44 }
0x2c8c   :  { %v7318_v30 = vpop.f32.mrf.mxu0 }
0x2c8d   :  { %v4734_v6 = vpack.c.bf16 %v4729_v41, %v4729_v41 }
0x2c8e   :  { %v4731_v5 = vpop.f32.mrf.mxu0 }
0x2c8f   :  { %7323 = vmatmul.mubr.msk.bf16.vlgmr.msra.gmra.mxu1 %vm133_vm6, %v4734_v6  ;;  %v9629_v6 = vld [vmem:[#allocation20_spill] sm:$0xff]  ;;  %v9630_v5 = vld [vmem:[#allocation21_spill] sm:$0xff] }
0x2c90   :  { %v7319_v22 = vpop.f32.mrf.mxu0  ;;  %7327 = vmatpush3.bf16.msra.mxu1 %v8795_v29  ;;  %7330 = vmatprep.mubr.msk.bf16.mxu1 %vm7857_vm0, %v9530_v52 }
0x2c91   :  { %7328 = vmatprep.subr.bf16.mxu1 %v9530_v52  ;;  %v9631_v22 = vld [vmem:[#allocation22_spill] sm:$0xff] }
0x2c92   :  { %v4896_v3 = vpop.f32.mrf.mxu0 }
0x2c94   :  { %v7348_v39 = vpop.f32.mrf.mxu0  ;;  %7329 = vmatpush3.bf16.msra.mxu1 %v8801_v13 }
0x2c95   :  { %7334 = vmatprep.subr.bf16.mxu1 %v9530_v52 }
0x2c96   :  { %v4899_v17 = vpop.f32.mrf.mxu0 }
0x2c97   :  { %v9632_v17 = vld [vmem:[#allocation24_spill] sm:$0xff] }
0x2c98   :  { %v7349_v24 = vpop.f32.mrf.mxu0 }
0x2d4f   :  { %v4772_v38 = vpop.f32.mrf.mxu1 }
0x2d50   :  { %v4773_v2 = vadd.f32 %v8806_v10, %v4772_v38 }
0x2d51   :  { %v7324_v8 = vpop.f32.mrf.mxu1 }
0x2d52   :  { %v4778_v35 = vpack.c.bf16 %v4773_v2, %v4773_v2  ;;  %v5838_v29 = vrot.slane %v4773_v2, 2 }
0x2d53   :  { %v4775_v63 = vpop.f32.mrf.mxu1 }
0x2d54   :  { %7331 = vmatmul.mubr.msk.bf16.vlgmr.msra.gmra.mxu1 %vm78_vm2, %v4778_v35  ;;  %v5843_v18 = vsel %vm5842_vm8, %v8813_v57, %v5838_v29  ;;  %v9633_v63 = vld [vmem:[#allocation15_spill] sm:$0xff] }
0x2d55   :  { %v7325_v62 = vpop.f32.mrf.mxu1  ;;  %7335 = vmatpush3.bf16.msra.mxu1 %v8815_v7  ;;  %7338 = vmatprep.mubr.msk.bf16.mxu1 %vm7857_vm0, %v9530_v52  ;;  %5845 = vst [vmem:[#allocation8] sm:$0xff] %v5843_v18 }
0x2d56   :  { %7336 = vmatprep.subr.bf16.mxu1 %v9530_v52 }
0x2d59   :  { %7337 = vmatpush3.bf16.msra.mxu1 %v8821_v59 }
0x2d5a   :  { %7350 = vmatprep.subr.bf16.mxu1 %v9530_v52 }
0x2d5c   :  { %7339 = vmatmul.mubr.msk.bf16.vlgmr.msra.gmra.mxu1 %vm78_vm2, %v4778_v35 }
0x2d5d   :  { %7351 = vmatpush3.bf16.msra.mxu1 %v8826_v56  ;;  %7352 = vmatprep.mubr.msk.bf16.mxu1 %vm7857_vm0, %v9530_v52 }
0x2d5e   :  { %7362 = vmatprep.subr.bf16.mxu1 %v9530_v52 }
0x2e14   :  { %v4816_v13 = vpop.f32.mrf.mxu1 }
0x2e15   :  { %v4902_v10 = vmul.f32 %v4896_v3, %v4816_v13 }
0x2e16   :  { %v7332_v57 = vpop.f32.mrf.mxu1 }
0x2e17   :  { %v4903_v7 = vpack.c.bf16 %v4902_v10, %v4902_v10  ;;  %v9635_v10 = vld [vmem:[#allocation28_spill] sm:$0xff]  ;;  %v9636_v57 = vld [vmem:[#allocation29_spill] sm:$0xff] }
0x2e18   :  { %v4819_v12 = vpop.f32.mrf.mxu1 }
0x2e19   :  { %4993 = vrot.lane.b32.xlu1 %v4903_v7, %s7863_s5  ;;  %4948 = vrot.lane.b32.xlu0 %v4903_v7, %s7864_s6  ;;  %v9638_v12 = vld [vmem:[#allocation31_spill] sm:$0xff] }
0x2e1a   :  { %7353 = vmatmul.mubr.msk.bf16.vlgmr.msra.gmra.mxu1 %vm133_vm6, %v4903_v7  ;;  %v7333_v59 = vpop.f32.mrf.mxu1  ;;  %v9637_v7 = vld [vmem:[#allocation30_spill] sm:$0xff] }
0x2e1b   :  { %7363 = vmatpush3.bf16.msra.mxu1 %v8835_v46  ;;  %7364 = vmatprep.mubr.msk.bf16.mxu1 %vm7857_vm0, %v9530_v52  ;;  %v9639_v59 = vld [vmem:[#allocation32_spill] sm:$0xff] }
0x2e1c   :  { %v9233_v56 = vpop.f32.mrf.mxu1  ;;  %7386 = vmatprep.subr.bf16.mxu1 %v9530_v52 }
0x2e1d   :  { %5173 = vrot.lane.b32.xlu1 %v4816_v13, %s7859_s0  ;;  %5178 = vrot.lane.b32.xlu0 %v4816_v13, %s7862_s4  ;;  %v9634_v13 = vld [vmem:[#allocation26_spill] sm:$0xff] }
0x2e1e   :  { %v7340_v1 = vpop.f32.mrf.mxu1 }
0x2e20   :  { %v4859_v61 = vpop.f32.mrf.mxu1 }
0x2e21   :  { %5408 = vrot.lane.b32.xlu1 %v9233_v56, %s7862_s4  ;;  %5317 = vrot.lane.b32.xlu0 %v9233_v56, %s7865_s7  ;;  %v9640_v61 = vld [vmem:[#allocation33_spill] sm:$0xff] }
0x2e22   :  { %v7341_v46 = vpop.f32.mrf.mxu1 }
0x2e25   :  { %5593 = vrot.lane.b32.xlu0 %v9170_v60, %s7866_s8  ;;  %v9626_v60 = vld [vmem:[#allocation17_spill] sm:$0xff] }
0x2e8b   :  { %v4994_v51 = vpop.permute.xlu1 %4993  ;;  %v4949_v50 = vpop.permute.xlu0 %4948 }
0x2e8c   :  { %7359 = vmatmul.mubr.msk.bf16.vlgmr.msra.gmra.mxu0 %vm133_vm6, %v4949_v50  ;;  %7365 = vmatmul.mubr.msk.bf16.vlgmr.msra.gmra.mxu1 %vm133_vm6, %v4994_v51  ;;  %v9641_v51 = vld [vmem:[#allocation35_spill] sm:$0xff]  ;;  %v9642_v50 = vld [vmem:[#allocation36_spill] sm:$0xff] }
0x2e8d   :  { %7387 = vmatpush3.bf16.msra.mxu1 %v8087_v14  ;;  %7400 = vmatprep.mubr.msk.bf16.mxu1 %vm7857_vm0, %v9530_v52  ;;  %v9620_v14 = vld [vmem:[#allocation13_spill] sm:$0xff] }
0x2e8e   :  { %7388 = vmatprep.subr.bf16.mxu1 %v9530_v52  ;;  %7369 = vmatpush3.bf16.msra.mxu0 %v8090_v19  ;;  %v9621_v19 = vld [vmem:[#allocation23_spill] sm:$0xff] }
0x2e8f   :  { %7370 = vmatprep.subr.bf16.mxu0 %v9530_v52  ;;  %7382 = vmatprep.mubr.msk.bf16.mxu0 %vm7857_vm0, %v9530_v52 }
0x2e91   :  { %7389 = vmatpush3.bf16.msra.mxu1 %v8861_v45  ;;  %v9622_v45 = vld [vmem:[#allocation25_spill] sm:$0xff] }
0x2e92   :  { %7390 = vmatprep.subr.bf16.mxu1 %v9530_v52  ;;  %7371 = vmatpush3.bf16.msra.mxu0 %v8865_v11  ;;  %v9623_v11 = vld [vmem:[#allocation27_spill] sm:$0xff] }
0x2e93   :  { %7372 = vmatprep.subr.bf16.mxu0 %v9530_v52 }
0x2e95   :  { %7391 = vmatpush3.bf16.msra.mxu1 %v8869_v49  ;;  %v9624_v49 = vld [vmem:[#allocation14_spill] sm:$0xff] }
0x2e96   :  { %7392 = vmatprep.subr.bf16.mxu1 %v9530_v52  ;;  %7373 = vmatpush3.bf16.msra.mxu0 %v8873_v20  ;;  %v9625_v20 = vld [vmem:[#allocation16_spill] sm:$0xff] }
0x2e97   :  { %7374 = vmatprep.subr.bf16.mxu0 %v9530_v52 }
0x2e99   :  { %7393 = vmatpush3.bf16.msra.mxu1 %v9620_v14  ;;  %v9643_v14 = vld [vmem:[#allocation37_spill] sm:$0xff] }
0x2e9a   :  { %7394 = vmatprep.subr.bf16.mxu1 %v9530_v52  ;;  %7375 = vmatpush3.bf16.msra.mxu0 %v9621_v19 }
0x2e9b   :  { %7376 = vmatprep.subr.bf16.mxu0 %v9530_v52 }
0x2e9d   :  { %7395 = vmatpush3.bf16.msra.mxu1 %v9622_v45 }
0x2e9e   :  { %7396 = vmatprep.subr.bf16.mxu1 %v9530_v52  ;;  %7377 = vmatpush3.bf16.msra.mxu0 %v9623_v11 }
0x2e9f   :  { %7378 = vmatprep.subr.bf16.mxu0 %v9530_v52 }
0x2ea1   :  { %7397 = vmatpush3.bf16.msra.mxu1 %v9624_v49 }
0x2ea2   :  { %7398 = vmatprep.subr.bf16.mxu1 %v9530_v52  ;;  %7379 = vmatpush3.bf16.msra.mxu0 %v9625_v20 }
0x2ea3   :  { %7380 = vmatprep.subr.bf16.mxu0 %v9530_v52 }
0x2ea5   :  { %7399 = vmatpush3.bf16.msra.mxu1 %v9626_v60 }
0x2ea6   :  { %7381 = vmatpush3.bf16.msra.mxu0 %v9627_v37  ;;  %7422 = vmatprep.subr.bf16.mxu1 %v9530_v52 }
0x2ea7   :  { %7404 = vmatprep.subr.bf16.mxu0 %v9530_v52 }
0x2eda   :  { %v4941_v32 = vpop.f32.mrf.mxu1 }
0x2edb   :  { %v4942_v9 = vadd.f32 %v9628_v53, %v4941_v32  ;;  %v5179_v53 = vpop.permute.xlu0 %5178 }
0x2edc   :  { %v7354_v4 = vpop.f32.mrf.mxu1 }
0x2edd   :  { %v5038_v44 = vpack.c.bf16 %v4942_v9, %v4942_v9 }
0x2ede   :  { %v4944_v41 = vpop.f32.mrf.mxu1 }
0x2edf   :  { %7401 = vmatmul.mubr.msk.bf16.vlgmr.msra.gmra.mxu1 %vm502_vm5, %v5038_v44 }
0x2ee0   :  { %v7355_v30 = vpop.f32.mrf.mxu1  ;;  %7423 = vmatpush3.bf16.msra.mxu1 %v9629_v6  ;;  %7428 = vmatprep.mubr.msk.bf16.mxu1 %vm7857_vm0, %v9530_v52  ;;  %v5318_v6 = vpop.permute.xlu0 %5317 }
0x2ee1   :  { %7424 = vmatprep.subr.bf16.mxu1 %v9530_v52 }
0x2ee4   :  { %7425 = vmatpush3.bf16.msra.mxu1 %v9630_v5 }
0x2ee5   :  { %7426 = vmatprep.subr.bf16.mxu1 %v9530_v52 }
0x2ee8   :  { %7427 = vmatpush3.bf16.msra.mxu1 %v9631_v22 }
0x2ee9   :  { %7432 = vmatprep.subr.bf16.mxu1 %v9530_v52 }
0x2f4c   :  { %v4987_v3 = vpop.f32.mrf.mxu0  ;;  %v5032_v39 = vpop.f32.mrf.mxu1 }
0x2f4d   :  { %v4988_v24 = vadd.f32 %v9632_v17, %v4987_v3  ;;  %v5033_v1 = vadd.f32 %v9639_v59, %v5032_v39 }
0x2f4e   :  { %v7360_v38 = vpop.f32.mrf.mxu0  ;;  %v7366_v2 = vpop.f32.mrf.mxu1 }
0x2f4f   :  { %v5039_v8 = vpack.c.bf16 %v4988_v24, %v4988_v24  ;;  %v5126_v46 = vpack.c.bf16 %v5033_v1, %v5033_v1  ;;  %v5174_v38 = vpop.permute.xlu1 %5173  ;;  %v5314_v2 = vmul.f32 %v9233_v56, %v9183_v42  ;;  %v9647_v56 = vld [vmem:[#allocation40_spill] sm:$0xff] }
0x2f50   :  { %v4990_v35 = vpop.f32.mrf.mxu0  ;;  %v5035_v29 = vpop.f32.mrf.mxu1 }
0x2f51   :  { %7383 = vmatmul.mubr.msk.bf16.vlgmr.msra.gmra.mxu0 %vm502_vm5, %v5039_v8  ;;  %v9648_v8 = vld [vmem:[#allocation41_spill] sm:$0xff]  ;;  %v9649_v35 = vld [vmem:[#allocation43_spill] sm:$0xff]  ;;  %v9650_v29 = vld [vmem:[#allocation44_spill] sm:$0xff] }
0x2f52   :  { %7405 = vmatpush3.bf16.msra.mxu0 %v9633_v63  ;;  %v7361_v18 = vpop.f32.mrf.mxu0  ;;  %v7367_v62 = vpop.f32.mrf.mxu1  ;;  %7418 = vmatprep.mubr.msk.bf16.mxu0 %vm7857_vm0, %v9530_v52  ;;  %v9651_v63 = vld [vmem:[#allocation42_spill] sm:$0xff] }
0x2f53   :  { %7406 = vmatprep.subr.bf16.mxu0 %v9530_v52 }
0x2f56   :  { %7407 = vmatpush3.bf16.msra.mxu0 %v9634_v13 }
0x2f57   :  { %7408 = vmatprep.subr.bf16.mxu0 %v9530_v52 }
0x2f5a   :  { %7409 = vmatpush3.bf16.msra.mxu0 %v9635_v10 }
0x2f5b   :  { %7410 = vmatprep.subr.bf16.mxu0 %v9530_v52 }
0x2f5e   :  { %7411 = vmatpush3.bf16.msra.mxu0 %v9636_v57 }
0x2f5f   :  { %7412 = vmatprep.subr.bf16.mxu0 %v9530_v52 }
0x2f62   :  { %7413 = vmatpush3.bf16.msra.mxu0 %v9637_v7 }
0x2f63   :  { %7414 = vmatprep.subr.bf16.mxu0 %v9530_v52 }
0x2f66   :  { %7415 = vmatpush3.bf16.msra.mxu0 %v9638_v12 }
0x2f67   :  { %7416 = vmatprep.subr.bf16.mxu0 %v9530_v52 }
0x2f6a   :  { %7417 = vmatpush3.bf16.msra.mxu0 %v9640_v61 }
0x2f6b   :  { %7458 = vmatprep.subr.bf16.mxu0 %v9530_v52 }
0x2f6d   :  { %7419 = vmatmul.mubr.msk.bf16.vlgmr.msra.gmra.mxu0 %vm502_vm5, %v5126_v46 }
0x2f6e   :  { %7459 = vmatpush3.bf16.msra.mxu0 %v9641_v51  ;;  %7464 = vmatprep.mubr.msk.bf16.mxu0 %vm7857_vm0, %v9530_v52 }
0x2f6f   :  { %7460 = vmatprep.subr.bf16.mxu0 %v9530_v52 }
0x2f72   :  { %7461 = vmatpush3.bf16.msra.mxu0 %v9642_v50 }
0x2f73   :  { %7462 = vmatprep.subr.bf16.mxu0 %v9530_v52 }
0x2f76   :  { %7463 = vmatpush3.bf16.msra.mxu0 %v9643_v14 }
0x2f77   :  { %7468 = vmatprep.subr.bf16.mxu0 %v9530_v52 }
0x2f9f   :  { %v5120_v19 = vpop.f32.mrf.mxu1 }
0x2fa1   :  { %v7402_v45 = vpop.f32.mrf.mxu1 }
0x2fa3   :  { %v5123_v11 = vpop.f32.mrf.mxu1 }
0x2fa5   :  { %v7403_v49 = vpop.f32.mrf.mxu1 }
0x3011   :  { %v5077_v20 = vpop.f32.mrf.mxu0 }
0x3012   :  { %v5121_v9 = vadd.f32 %v5120_v19, %v5077_v20 }
0x3013   :  { %v7384_v60 = vpop.f32.mrf.mxu0 }
0x3015   :  { %v5080_v37 = vpop.f32.mrf.mxu0 }
0x3017   :  { %v7385_v32 = vpop.f32.mrf.mxu0 }
0x302d   :  { %v5164_v4 = vpop.f32.mrf.mxu0 }
0x302e   :  { %v5170_v44 = vadd.f32 %v5164_v4, %v5121_v9 }
0x302f   :  { %v7420_v41 = vpop.f32.mrf.mxu0 }
0x3030   :  { %v5171_v30 = vadd.f32 %v8977_v33, %v5170_v44  ;;  %v5176_v33 = vmul.f32 %v5174_v38, %v9183_v42  ;;  %v9644_v42 = vld [vmem:[#allocation34_spill] sm:$0xff]  ;;  %v9654_v44 = vld [vmem:[#allocation47_spill] sm:$0xff] }
0x3031   :  { %v5167_v5 = vpop.f32.mrf.mxu0 }
0x3032   :  { %v5181_v22 = vmul.f32 %v5179_v53, %v5171_v30  ;;  %v5320_v3 = vmul.f32 %v5318_v6, %v5171_v30 }
0x3033   :  { %v7421_v39 = vpop.f32.mrf.mxu0 }
0x3034   :  { %v5182_v17 = vpack.c.bf16 %v5181_v22, %v5181_v22  ;;  %v5321_v24 = vpack.c.bf16 %v5320_v3, %v5320_v3  ;;  %v9655_v3 = vld [vmem:[#allocation48_spill] sm:$0xff] }
0x3036   :  { %7429 = vmatmul.mubr.msk.bf16.vlgmr.msra.gmra.mxu1 %vm1295_vm7, %v5182_v17  ;;  %7465 = vmatmul.mubr.msk.bf16.vlgmr.msra.gmra.mxu0 %vm1295_vm7, %v5321_v24 }
0x3037   :  { %7433 = vmatpush3.bf16.msra.mxu1 %v9564_v27  ;;  %7469 = vmatpush3.bf16.msra.mxu0 %v9565_v31  ;;  %v5315_v27 = vpack.c.bf16 %v5314_v2, %v5314_v2  ;;  %v5177_v31 = vpack.c.bf16 %v5176_v33, %v5176_v33  ;;  %v9656_v33 = vld [vmem:[#allocation49_spill] sm:$0xff] }
0x3038   :  { %7434 = vmatprep.subr.bf16.mxu1 %v9530_v52  ;;  %7470 = vmatprep.subr.bf16.mxu0 %v9530_v52 }
0x3039   :  { %7436 = vmatprep.mubr.msk.bf16.mxu1 %vm7857_vm0, %v9530_v52  ;;  %7472 = vmatprep.mubr.msk.bf16.mxu0 %vm7857_vm0, %v9530_v52 }
0x303b   :  { %7435 = vmatpush3.bf16.msra.mxu1 %v8993_v23  ;;  %7471 = vmatpush3.bf16.msra.mxu0 %v8996_v34  ;;  %v9645_v23 = vld [vmem:[#allocation38_spill] sm:$0xff]  ;;  %v9646_v34 = vld [vmem:[#allocation39_spill] sm:$0xff] }
0x303c   :  { %7440 = vmatprep.subr.bf16.mxu1 %v9530_v52  ;;  %7476 = vmatprep.subr.bf16.mxu0 %v9530_v52 }
0x303e   :  { %7437 = vmatmul.mubr.msk.bf16.vlgmr.msra.gmra.mxu1 %vm189_vm3, %v5177_v31  ;;  %7473 = vmatmul.mubr.msk.bf16.vlgmr.msra.gmra.mxu0 %vm189_vm3, %v5315_v27 }
0x303f   :  { %7441 = vmatpush3.bf16.msra.mxu1 %v9644_v42  ;;  %7454 = vmatprep.mubr.msk.bf16.mxu1 %vm7857_vm0, %v9530_v52  ;;  %v5594_v42 = vpop.permute.xlu0 %5593 }
0x3040   :  { %7442 = vmatprep.subr.bf16.mxu1 %v9530_v52  ;;  %7477 = vmatpush3.bf16.msra.mxu0 %v9645_v23 }
0x3041   :  { %7478 = vmatprep.mubr.msk.bf16.mxu0 %vm7857_vm0, %v9530_v52  ;;  %7500 = vmatprep.subr.bf16.mxu0 %v9530_v52 }
0x3043   :  { %7443 = vmatpush3.bf16.msra.mxu1 %v9646_v34 }
0x3044   :  { %7444 = vmatprep.subr.bf16.mxu1 %v9530_v52 }
0x3047   :  { %7445 = vmatpush3.bf16.msra.mxu1 %v9647_v56 }
0x3048   :  { %7446 = vmatprep.subr.bf16.mxu1 %v9530_v52 }
0x304b   :  { %7447 = vmatpush3.bf16.msra.mxu1 %v9648_v8 }
0x304c   :  { %7448 = vmatprep.subr.bf16.mxu1 %v9530_v52 }
0x304f   :  { %7449 = vmatpush3.bf16.msra.mxu1 %v9649_v35 }
0x3050   :  { %7450 = vmatprep.subr.bf16.mxu1 %v9530_v52 }
0x3053   :  { %7451 = vmatpush3.bf16.msra.mxu1 %v9650_v29 }
0x3054   :  { %7452 = vmatprep.subr.bf16.mxu1 %v9530_v52 }
0x3057   :  { %7453 = vmatpush3.bf16.msra.mxu1 %v9651_v63 }
0x3058   :  { %7482 = vmatprep.subr.bf16.mxu1 %v9530_v52 }
0x30f6   :  { %v5220_v18 = vpop.f32.mrf.mxu1  ;;  %v5359_v62 = vpop.f32.mrf.mxu0 }
0x30f8   :  { %v7430_v13 = vpop.f32.mrf.mxu1  ;;  %v7466_v10 = vpop.f32.mrf.mxu0 }
0x30f9   :  { %v7638_v10 = vld [vmem:[#allocation5 + $0x270] sm:$0xff]  }
0x30fa   :  { %v5223_v57 = vpop.f32.mrf.mxu1  ;;  %v5362_v7 = vpop.f32.mrf.mxu0 }
0x30fc   :  { %v7431_v12 = vpop.f32.mrf.mxu1  ;;  %v7467_v59 = vpop.f32.mrf.mxu0 }
0x30fd   :  { %v7639_v59 = vld [vmem:[#allocation5 + $0x280] sm:$0xff]  }
0x30fe   :  { %v5263_v1 = vpop.f32.mrf.mxu1  ;;  %v5402_v61 = vpop.f32.mrf.mxu0 }
0x30ff   :  { %v5264_v46 = vadd.f32 %v5263_v1, %v5220_v18  ;;  %v5403_v51 = vadd.f32 %v5402_v61, %v5359_v62 }
0x3100   :  { %v7438_v50 = vpop.f32.mrf.mxu1  ;;  %v7474_v14 = vpop.f32.mrf.mxu0 }
0x3101   :  { %v5269_v19 = vadd.f32 %v9037_v43, %v5264_v46  ;;  %v9652_v43 = vld [vmem:[#allocation45_spill] sm:$0xff] }
0x3102   :  { %v5266_v45 = vpop.f32.mrf.mxu1  ;;  %v5405_v11 = vpop.f32.mrf.mxu0 }
0x3103   :  { %v5270_v49 = vpack.c.bf16 %v5269_v19, %v5269_v19 }
0x3104   :  { %v7439_v20 = vpop.f32.mrf.mxu1  ;;  %v7475_v60 = vpop.f32.mrf.mxu0 }
0x3105   :  { %7455 = vmatmul.mubr.msk.bf16.vlgmr.msra.gmra.mxu1 %vm502_vm5, %v5270_v49 }
0x3106   :  { %7483 = vmatpush3.bf16.msra.mxu1 %v8297_v0  ;;  %7496 = vmatprep.mubr.msk.bf16.mxu1 %vm7857_vm0, %v9530_v52 }
0x3107   :  { %7484 = vmatprep.subr.bf16.mxu1 %v9530_v52 }
0x310a   :  { %7485 = vmatpush3.bf16.msra.mxu1 %v9045_v47 }
0x310b   :  { %7486 = vmatprep.subr.bf16.mxu1 %v9530_v52 }
0x310e   :  { %7487 = vmatpush3.bf16.msra.mxu1 %v9049_v28  ;;  %v5409_v28 = vpop.permute.xlu1 %5408 }
0x310f   :  { %7488 = vmatprep.subr.bf16.mxu1 %v9530_v52 }
0x3112   :  { %7489 = vmatpush3.bf16.msra.mxu1 %v9053_v55 }
0x3113   :  { %7490 = vmatprep.subr.bf16.mxu1 %v9530_v52 }
0x3116   :  { %7491 = vmatpush3.bf16.msra.mxu1 %v9057_v21  ;;  %v9653_v21 = vld [vmem:[#allocation46_spill] sm:$0xff] }
0x3117   :  { %7492 = vmatprep.subr.bf16.mxu1 %v9530_v52 }
0x311a   :  { %7493 = vmatpush3.bf16.msra.mxu1 %v9061_v25 }
0x311b   :  { %7494 = vmatprep.subr.bf16.mxu1 %v9530_v52 }
0x311e   :  { %7495 = vmatpush3.bf16.msra.mxu1 %v9065_v16 }
0x311f   :  { %7520 = vmatprep.subr.bf16.mxu1 %v9530_v52 }
0x31c5   :  { %v5308_v0 = vpop.f32.mrf.mxu1 }
0x31c6   :  { %v5309_v47 = vadd.f32 %v9652_v43, %v5308_v0 }
0x31c7   :  { %v7456_v37 = vpop.f32.mrf.mxu1 }
0x31c8   :  { %v5411_v55 = vmul.f32 %v5409_v28, %v5309_v47 }
0x31c9   :  { %v5311_v32 = vpop.f32.mrf.mxu1 }
0x31ca   :  { %v5412_v53 = vpack.c.bf16 %v5411_v55, %v5411_v55  ;;  %v7640_v55 = vld [vmem:[#allocation5 + $0x288] sm:$0xff]  }
0x31cb   :  { %v7457_v9 = vpop.f32.mrf.mxu1 }
0x31cc   :  { %7479 = vmatmul.mubr.msk.bf16.vlgmr.msra.gmra.mxu0 %vm133_vm6, %v5412_v53  ;;  %v6066_v53 = vld [vmem:[#allocation7 + $0x10] ss:$0 sm:$0xff] }
0x31cd   :  { %7501 = vmatpush3.bf16.msra.mxu0 %v9653_v21  ;;  %7502 = vmatprep.mubr.msk.bf16.mxu0 %vm7857_vm0, %v9530_v52 }
0x31ce   :  { %7506 = vmatprep.subr.bf16.mxu0 %v9530_v52 }
0x328c   :  { %v5450_v25 = vpop.f32.mrf.mxu0 }
0x328d   :  { %v5456_v16 = vadd.f32 %v5450_v25, %v5403_v51 }
0x328e   :  { %v7480_v4 = vpop.f32.mrf.mxu0 }
0x328f   :  { %v5457_v41 = vadd.f32 %v9654_v44, %v5456_v16 }
0x3290   :  { %v5453_v30 = vpop.f32.mrf.mxu0 }
0x3291   :  { %v5458_v6 = vpack.c.bf16 %v5457_v41, %v5457_v41 }
0x3292   :  { %v7481_v5 = vpop.f32.mrf.mxu0 }
0x3293   :  { %7497 = vmatmul.mubr.msk.bf16.vlgmr.msra.gmra.mxu1 %vm502_vm5, %v5458_v6 }
0x3294   :  { %7522 = vmatprep.mubr.msk.bf16.mxu1 %vm7857_vm0, %v9530_v52  ;;  %7521 = vmatpush3.bf16.msra.mxu1 %v7639_v59 }
0x3295   :  { %7534 = vmatprep.subr.bf16.mxu1 %v9530_v52 }
0x3353   :  { %v5496_v22 = vpop.f32.mrf.mxu1 }
0x3354   :  { %v5497_v39 = vadd.f32 %v9655_v3, %v5496_v22 }
0x3355   :  { %v7498_v17 = vpop.f32.mrf.mxu1 }
0x3356   :  { %v5502_v24 = vpack.c.bf16 %v5497_v39, %v5497_v39 }
0x3357   :  { %v5499_v38 = vpop.f32.mrf.mxu1 }
0x3358   :  { %7503 = vmatmul.mubr.msk.bf16.vlgmr.msra.gmra.mxu0 %vm133_vm6, %v5502_v24 }
0x3359   :  { %v7499_v2 = vpop.f32.mrf.mxu1  ;;  %7507 = vmatpush3.bf16.msra.mxu0 %v9656_v33  ;;  %7508 = vmatprep.mubr.msk.bf16.mxu0 %vm7857_vm0, %v9530_v52 }
0x335a   :  { %7512 = vmatprep.subr.bf16.mxu0 %v9530_v52 }
0x3418   :  { %v5540_v27 = vpop.f32.mrf.mxu0 }
0x3419   :  { %v5541_v31 = vadd.f32 %v9096_v58, %v5540_v27  ;;  %v7637_v58 = vld [vmem:[#allocation5 + $0x278] ss:$0 sps:$4 sm:$0xff]  }
0x341a   :  { %v7504_v23 = vpop.f32.mrf.mxu0  ;;  %v5725_v62 = vsel %vm192_vm1, %v7637_v58, 0 }
0x341b   :  { %v5546_v34 = vmax.f32 %v5541_v31, 0.0  ;;  %v5596_v56 = vadd.f32 %v5594_v42, %v5541_v31 }
0x341c   :  { %v5543_v8 = vpop.f32.mrf.mxu0 }
0x341d   :  { %v5547_v35 = vpack.c.bf16 %v5546_v34, %v5546_v34  ;;  %v5597_v29 = vmax.f32 %v5596_v56, 0.0 }
0x341e   :  { %v7505_v63 = vpop.f32.mrf.mxu0 }
0x341f   :  { %v5598_v18 = vpack.c.bf16 %v5597_v29, %v5597_v29  ;;  %7509 = vmatmul.mubr.msk.bf16.vlgmr.msra.gmra.mxu0 %vm133_vm6, %v5547_v35 }
0x3420   :  { %7513 = vmatpush3.bf16.msra.mxu0 %v9100_v48  ;;  %7516 = vmatprep.mubr.msk.bf16.mxu0 %vm7857_vm0, %v9530_v52 }
0x3421   :  { %5600 = vrot.lane.b32.xlu1 %v5598_v18, %s7864_s6  ;;  %7514 = vmatprep.subr.bf16.mxu0 %v9530_v52 }
0x3424   :  { %7515 = vmatpush3.bf16.msra.mxu0 %v9107_v26 }
0x3425   :  { %7526 = vmatprep.subr.bf16.mxu0 %v9530_v52 }
0x3493   :  { %v5601_v13 = vpop.permute.xlu1 %5600 }
0x3494   :  { %7517 = vmatmul.mubr.msk.bf16.vlgmr.msra.gmra.mxu0 %vm78_vm2, %v5601_v13 }
0x3495   :  { %7527 = vmatpush3.bf16.msra.mxu0 %v5725_v62  ;;  %7530 = vmatprep.mubr.msk.bf16.mxu0 %vm7857_vm0, %v9530_v52 }
0x3496   :  { %7528 = vmatprep.subr.bf16.mxu0 %v9530_v52 }
0x3499   :  { %7529 = vmatpush3.bf16.msra.mxu0 %v7638_v10 }
0x349c   :  { %7531 = vmatmul.mubr.msk.bf16.vlgmr.msra.gmra.mxu0 %vm189_vm3, %v9172_v36 }
0x34df   :  { %v5585_v48 = vpop.f32.mrf.mxu0 }
0x34e0   :  { %v5586_v26 = vadd.f32 %v9144_v40, %v5585_v48 }
0x34e1   :  { %v7510_v57 = vpop.f32.mrf.mxu0 }
0x34e2   :  { %7677 = vtanh.f32 %v5586_v26 }
0x34e3   :  { %v5588_v7 = vpop.f32.mrf.mxu0 }
0x34e5   :  { %v7511_v12 = vpop.f32.mrf.mxu0 }
0x34ef   :  { %v7678_v1 = vpop.eup %7677 }
0x34f0   :  { %5651 = vrot.lane.b32.xlu0 %v7678_v1, %s7866_s8 }
0x3554   :  { %v5639_v61 = vpop.f32.mrf.mxu0 }
0x3555   :  { %v5640_v46 = vadd.f32 %v9151_v15, %v5639_v61 }
0x3556   :  { %v7518_v51 = vpop.f32.mrf.mxu0 }
0x3557   :  { %v5645_v50 = vmul.f32 0.5, %v5640_v46 }
0x3558   :  { %v5642_v36 = vpop.f32.mrf.mxu0 }
0x3559   :  { %7679 = vtanh.f32 %v5645_v50 }
0x355a   :  { %v7519_v14 = vpop.f32.mrf.mxu0 }
0x355c   :  { %v5761_v40 = vpop.f32.mrf.mxu0 }
0x355e   :  { %v7532_v19 = vpop.f32.mrf.mxu0 }
0x3560   :  { %v5764_v45 = vpop.f32.mrf.mxu0 }
0x3562   :  { %v7533_v11 = vpop.f32.mrf.mxu0  ;;  %v5652_v0 = vpop.permute.xlu0 %5651 }
0x3566   :  { %v7680_v49 = vpop.eup %7679 }
0x3567   :  { %v5647_v20 = vadd.f32 1.0, %v7680_v49 }
0x3569   :  { %v5648_v60 = vmul.f32 0.5, %v5647_v20 }
0x356b   :  { %v5654_v43 = vmul.f32 %v5652_v0, %v5648_v60  ;;  %v5649_v47 = vmul.f32 %v5648_v60, %v9158_v54  ;;  %v6067_v54 = vld [vmem:[#allocation7 + $0x11] ss:$0 sm:$0xff] }
0x356d   :  { %5656 = vrot.lane.b32.xlu1 %v5654_v43, %s7864_s6 }
0x35df   :  { %v5657_v28 = vpop.permute.xlu1 %5656 }
0x35e0   :  { %v5659_v15 = vadd.f32 %v5657_v28, %v5649_v47 }
0x35e2   :  { %v5663_v37 = vpack.c.bf16 %v5659_v15, %v5659_v15 }
0x35e4   :  { %7523 = vmatmul.mubr.msk.bf16.vlgmr.msra.gmra.mxu1 %vm133_vm6, %v5663_v37 }
0x35e5   :  { %7536 = vmatprep.mubr.msk.bf16.mxu1 %vm7857_vm0, %v9530_v52  ;;  %7535 = vmatpush3.bf16.msra.mxu1 %v7640_v55 }
0x36a4   :  { %v5709_v32 = vpop.f32.mrf.mxu1 }
0x36a5   :  { %v5762_v9 = vadd.f32 %v5761_v40, %v5709_v32 }
0x36a6   :  { %v7524_v21 = vpop.f32.mrf.mxu1 }
0x36a7   :  { %v5772_v25 = vadd.f32 %v6066_v53, %v5762_v9 }
0x36a8   :  { %v5712_v16 = vpop.f32.mrf.mxu1 }
0x36a9   :  { %v5773_v4 = vmax.f32 %v5772_v25, 0.0 }
0x36aa   :  { %v7525_v44 = vpop.f32.mrf.mxu1 }
0x36ab   :  { %v5774_v41 = vpack.c.bf16 %v5773_v4, %v5773_v4 }
0x36ad   :  { %7537 = vmatmul.mubr.msk.bf16.vlgmr.msra.gmra.mxu1 %vm133_vm6, %v5774_v41 }
0x376d   :  { %v5825_v30 = vpop.f32.mrf.mxu1 }
0x376e   :  { %v5826_v6 = vadd.f32 %v6067_v54, %v5825_v30 }
0x376f   :  { %v7538_v5 = vpop.f32.mrf.mxu1 }
0x3770   :  { %v5844_v52 = vsel %vm506_vm4, %v5826_v6, 0.0 }
0x3771   :  { %5846 = vst [vmem:[#allocation8 + $0x8] sm:$0xff] %v5844_v52  ;;  %v5828_v22 = vpop.f32.mrf.mxu1 }
0x3772   :  { %7834 = shalt.err (!%p7831_p5)
}
0x3773   :  { %5858 = dma.vmem_to_hbm [thread:$0]  %s5853_s10, 256, %s9426_s3, [#allocation4], %s7854_s1, %s7854_s1, %s7855_s27   ;;  %v7539_v3 = vpop.f32.mrf.mxu1 }
0x3774   :  { %7847 = dma.done.wait [#allocation4], 256  }
0x3775   :  { %7848 = vsyncadd [#allocation4], 4294967040 }
0x3776   :  { %5862 = vsyncpa [#allocation3], 1 }
0x3777   :  { %5863 = vsyncpa [#allocation6], 1 }
0x3778   :  { %5864 = vsyncpa [#allocation4], 1 }

</bundles_post_ra>
